<compile_context>
chip_gen: v5e
topology: v5e:2x2
jax: 0.10.0
libtpu: 0.0.40
codegen_flags: <defaults>
</compile_context>

<pallas_src>
import numpy as np

import jax
import jax.numpy as jnp
from jax.experimental import pallas as pl
from jax.experimental.pallas import tpu as pltpu


# Geometry of the default LeNet5_orig configuration.
N_CLASSES = 10
_C1, _C2 = 6, 16            # conv1 / conv2 output channels
_K = 5                      # conv kernel size
_DIM = 32                   # input spatial size
_D1, _P1 = 28, 14           # conv1 output / pool1 output spatial size
_D2, _P2 = 10, 5            # conv2 output / pool2 output spatial size
_NFEAT = _C2 * _P2 * _P2    # 400
_FCPAD = 128                # lane-dense padding of the FC widths
_BT_MAX = 128               # batch tile (rows per grid step)


# ----------------------------------------------------------------------------
# The fused, batch-vectorized Pallas kernel.
#   x_ref  : (32, bt, 32) f32   -- (spatial row, batch, spatial col)
#   out_ref: (bt, 128)    f32   -- logits in lanes 0..9, zeros elsewhere
# ----------------------------------------------------------------------------
def _lenet_kernel(x_ref,
                  w1_ref, b1_ref, c1e_ref, c1o_ref,
                  w2_ref, b2_ref, c2e_ref, c2o_ref,
                  fc1w_ref, fc1b_ref, fc2w_ref, fc2b_ref, fc3w_ref, fc3b_ref,
                  out_ref):
    bt = x_ref.shape[1]

    def mm(a, w_ref):
        # bf16 MXU matmul, f32 accumulation.
        return jnp.dot(a.astype(jnp.bfloat16), w_ref[...],
                       preferred_element_type=jnp.float32)

    # --- conv1 5x5 (1->6) + tanh -------------------------------------------
    # Merged-K banded matmul: LHS rows are (out-row i, batch b), K blocks are
    # the 5 vertically shifted windows of x.
    lhs1 = jnp.concatenate(
        [x_ref[kh:kh + _D1, :, :].reshape(_D1 * bt, _DIM) for kh in range(_K)],
        axis=-1)                                           # (28*bt, 160)
    y1 = jnp.tanh(mm(lhs1, w1_ref) + b1_ref[...])          # (28*bt, 168)

    # --- maxpool 2x2/2 -------------------------------------------------------
    # Column-pair max via 0/1 selection matmuls; row-pair max via reshape+max.
    cm1 = jnp.maximum(mm(y1, c1e_ref), mm(y1, c1o_ref))    # (28*bt, 84)
    cm1 = cm1.reshape(_P1, 2 * bt, _C1 * _P1)
    p1 = jnp.maximum(cm1[:, :bt, :], cm1[:, bt:, :])       # (14, bt, 84)

    # --- conv2 5x5 (6->16) + relu --------------------------------------------
    lhs2 = jnp.concatenate(
        [p1[kh:kh + _D2].reshape(_D2 * bt, _C1 * _P1) for kh in range(_K)],
        axis=-1)                                           # (10*bt, 420)
    y2 = jnp.maximum(mm(lhs2, w2_ref) + b2_ref[...], 0.0)  # (10*bt, 160)

    # --- maxpool 2x2/2 -------------------------------------------------------
    cm2 = jnp.maximum(mm(y2, c2e_ref), mm(y2, c2o_ref))    # (10*bt, 80)
    cm2 = cm2.reshape(_P2, 2 * bt, _C2 * _P2)
    p2 = jnp.maximum(cm2[:, :bt, :], cm2[:, bt:, :])       # (5, bt, 80)

    # --- flatten (lane concat; fc1 weights were permuted to this order) ------
    feat = jnp.concatenate([p2[i] for i in range(_P2)], axis=-1)  # (bt, 400)

    # --- fc1 -> relu -> dropout(p=0: identity) -> fc2 -> relu -> fc3 ---------
    h = jnp.maximum(mm(feat, fc1w_ref) + fc1b_ref[...], 0.0)   # (bt, 128)
    h = jnp.maximum(mm(h, fc2w_ref) + fc2b_ref[...], 0.0)      # (bt, 128)
    out_ref[...] = mm(h, fc3w_ref) + fc3b_ref[...]             # lane-dense


# ----------------------------------------------------------------------------
# One-time parameter packing (outside jit): merged-K banded conv matrices,
# pooling selection matrices, permuted / zero-padded FC weights, bf16 weights.
# ----------------------------------------------------------------------------
def pack_params(params):
    f32 = np.float32
    w1 = np.asarray(params["w1"], f32)       # (6,1,5,5)
    b1 = np.asarray(params["b1"], f32)       # (6,)
    w2 = np.asarray(params["w2"], f32)       # (16,6,5,5)
    b2 = np.asarray(params["b2"], f32)       # (16,)
    fc1_w = np.asarray(params["fc1_w"], f32)  # (120,400)
    fc1_b = np.asarray(params["fc1_b"], f32)
    fc2_w = np.asarray(params["fc2_w"], f32)  # (84,120)
    fc2_b = np.asarray(params["fc2_b"], f32)
    fc3_w = np.asarray(params["fc3_w"], f32)  # (10,84)
    fc3_b = np.asarray(params["fc3_b"], f32)

    # conv1: merged-K banded matrix (5*32, 6*28); result columns co*28 + j.
    w1s = np.zeros((_K * _DIM, _C1 * _D1), f32)
    for kh in range(_K):
        for co in range(_C1):
            for j in range(_D1):
                for kw in range(_K):
                    w1s[kh * _DIM + j + kw, co * _D1 + j] = w1[co, 0, kh, kw]
    b1row = np.repeat(b1, _D1)[None, :].astype(f32)                 # (1,168)

    # pool1 column-pair selection matrices (168, 84).
    c1e = np.zeros((_C1 * _D1, _C1 * _P1), f32)
    c1o = np.zeros((_C1 * _D1, _C1 * _P1), f32)
    for ci in range(_C1):
        for pj in range(_P1):
            c1e[ci * _D1 + 2 * pj, ci * _P1 + pj] = 1.0
            c1o[ci * _D1 + 2 * pj + 1, ci * _P1 + pj] = 1.0

    # conv2: merged-K banded matrix (5*84, 16*10); input cols ci*14 + q.
    w2s = np.zeros((_K * _C1 * _P1, _C2 * _D2), f32)
    for kh in range(_K):
        for co in range(_C2):
            for j in range(_D2):
                for ci in range(_C1):
                    for kw in range(_K):
                        w2s[kh * _C1 * _P1 + ci * _P1 + j + kw,
                            co * _D2 + j] = w2[co, ci, kh, kw]
    b2row = np.repeat(b2, _D2)[None, :].astype(f32)                 # (1,160)

    # pool2 column-pair selection matrices (160, 80).
    c2e = np.zeros((_C2 * _D2, _C2 * _P2), f32)
    c2o = np.zeros((_C2 * _D2, _C2 * _P2), f32)
    for co in range(_C2):
        for pj in range(_P2):
            c2e[co * _D2 + 2 * pj, co * _P2 + pj] = 1.0
            c2o[co * _D2 + 2 * pj + 1, co * _P2 + pj] = 1.0

    # fc1: rows reordered from PyTorch (co, pi, pj) flatten order to the
    # in-kernel (pi, co, pj) feature order; all FC mats zero-padded to 128.
    fc1w = np.zeros((_NFEAT, _FCPAD), f32)
    for pi in range(_P2):
        for co in range(_C2):
            for pj in range(_P2):
                fc1w[pi * _C2 * _P2 + co * _P2 + pj, :120] = \
                    fc1_w[:, co * _P2 * _P2 + pi * _P2 + pj]
    fc1b = np.zeros((1, _FCPAD), f32); fc1b[0, :120] = fc1_b
    fc2w = np.zeros((_FCPAD, _FCPAD), f32); fc2w[:120, :84] = fc2_w.T
    fc2b = np.zeros((1, _FCPAD), f32); fc2b[0, :84] = fc2_b
    fc3w = np.zeros((_FCPAD, _FCPAD), f32); fc3w[:84, :N_CLASSES] = fc3_w.T
    fc3b = np.zeros((1, _FCPAD), f32); fc3b[0, :N_CLASSES] = fc3_b

    bf = lambda a: jnp.asarray(a, jnp.bfloat16)   # matmul operands -> bf16
    fp = lambda a: jnp.asarray(a, jnp.float32)    # biases stay f32
    return (bf(w1s), fp(b1row), bf(c1e), bf(c1o),
            bf(w2s), fp(b2row), bf(c2e), bf(c2o),
            bf(fc1w), fp(fc1b), bf(fc2w), fp(fc2b), bf(fc3w), fp(fc3b))


# ----------------------------------------------------------------------------
# Jitted forward wrapper: one pallas_call, batch-tiled "parallel" grid.
# ----------------------------------------------------------------------------
def _lenet5_forward(x, packed):
    n = x.shape[0]
    m8 = ((n + 7) // 8) * 8                 # tile must be a multiple of 8
    bt = m8 if m8 <= _BT_MAX else _BT_MAX
    n_pad = ((n + bt - 1) // bt) * bt

    # (N,1,32,32) -> (row, batch, col) so the kernel's shifted conv windows
    # are contiguous leading-dim slices.
    xs = jnp.transpose(x.reshape(n, _DIM, _DIM), (1, 0, 2))   # (32, n, 32)
    if n_pad != n:
        xs = jnp.pad(xs, ((0, 0), (0, n_pad - n), (0, 0)))

    in_specs = [pl.BlockSpec((_DIM, bt, _DIM), lambda i: (0, i, 0))]
    in_specs += [pl.BlockSpec(t.shape, lambda i: (0, 0)) for t in packed]

    out = pl.pallas_call(
        _lenet_kernel,
        out_shape=jax.ShapeDtypeStruct((n_pad, _FCPAD), jnp.float32),
        grid=(n_pad // bt,),
        in_specs=in_specs,
        out_specs=pl.BlockSpec((bt, _FCPAD), lambda i: (i, 0)),
        compiler_params=pltpu.CompilerParams(
            dimension_semantics=("parallel",),
            vmem_limit_bytes=48 * 1024 * 1024),
    )(xs, *packed)
    # Narrow class slice happens outside the kernel (lane-dense store inside).
    return out[:n, :N_CLASSES]


lenet5_forward = jax.jit(_lenet5_forward)


# ----------------------------------------------------------------------------
# Synthetic parameters (PyTorch layout) and a pure-JAX reference for checking.
# ----------------------------------------------------------------------------
def init_params(key):
    shapes = {
        "w1": (6, 1, 5, 5), "b1": (6,),
        "w2": (16, 6, 5, 5), "b2": (16,),
        "fc1_w": (120, 400), "fc1_b": (120,),
        "fc2_w": (84, 120), "fc2_b": (84,),
        "fc3_w": (10, 84), "fc3_b": (10,),
    }
    params = {}
    keys = jax.random.split(key, len(shapes))
    for k, (name, shp) in zip(keys, sorted(shapes.items())):
        params[name] = jax.random.uniform(
            k, shp, dtype=jnp.float32, minval=-0.1, maxval=0.1)
    return params


def reference_forward(x, params):
    dn = ("NCHW", "OIHW", "NCHW")
    y = jax.lax.conv_general_dilated(
        x, params["w1"], (1, 1), "VALID", dimension_numbers=dn)
    y = jnp.tanh(y + params["b1"][None, :, None, None])
    y = jax.lax.reduce_window(y, -jnp.inf, jax.lax.max,
                              (1, 1, 2, 2), (1, 1, 2, 2), "VALID")
    y = jax.lax.conv_general_dilated(
        y, params["w2"], (1, 1), "VALID", dimension_numbers=dn)
    y = jnp.maximum(y + params["b2"][None, :, None, None], 0.0)
    y = jax.lax.reduce_window(y, -jnp.inf, jax.lax.max,
                              (1, 1, 2, 2), (1, 1, 2, 2), "VALID")
    y = y.reshape(x.shape[0], -1)
    y = jnp.maximum(y @ params["fc1_w"].T + params["fc1_b"], 0.0)
    y = jnp.maximum(y @ params["fc2_w"].T + params["fc2_b"], 0.0)
    return y @ params["fc3_w"].T + params["fc3_b"]


if __name__ == "__main__":
    key = jax.random.PRNGKey(0)
    pkey, xkey1, xkey2 = jax.random.split(key, 3)
    params = init_params(pkey)
    packed = pack_params(params)

    # Small batch (module defaults: dim=32, in_channels=1).
    x_small = jax.random.normal(xkey1, (2, 1, 32, 32), dtype=jnp.float32)
    out_small = jax.block_until_ready(lenet5_forward(x_small, packed))
    assert out_small.shape == (2, N_CLASSES) and out_small.dtype == jnp.float32

    with jax.default_matmul_precision("highest"):
        ref_small = jax.block_until_ready(reference_forward(x_small, params))
    err = float(jnp.max(jnp.abs(out_small - ref_small)))
    assert err < 2e-2, f"small-batch mismatch: max abs err = {err}"

    # Larger batch exercising the full 128-sample tile, padding and a 2-step
    # "parallel" grid.
    x_big = jax.random.normal(xkey2, (160, 1, 32, 32), dtype=jnp.float32)
    out_big = jax.block_until_ready(lenet5_forward(x_big, packed))
    assert out_big.shape == (160, N_CLASSES)

    with jax.default_matmul_precision("highest"):
        ref_big = jax.block_until_ready(reference_forward(x_big, params))
    err_big = float(jnp.max(jnp.abs(out_big - ref_big)))
    assert err_big < 2e-2, f"big-batch mismatch: max abs err = {err_big}"

    print("KERNEL_OK")
</pallas_src>

<mosaic_0001>
module attributes {stable_mosaic.version = 11 : i64} {
  func.func @_lenet_kernel(%arg0: i32, %arg1: memref<32x8x32xf32, #tpu.memory_space<vmem>>, %arg2: memref<160x168xbf16, #tpu.memory_space<vmem>>, %arg3: memref<1x168xf32, #tpu.memory_space<vmem>>, %arg4: memref<168x84xbf16, #tpu.memory_space<vmem>>, %arg5: memref<168x84xbf16, #tpu.memory_space<vmem>>, %arg6: memref<420x160xbf16, #tpu.memory_space<vmem>>, %arg7: memref<1x160xf32, #tpu.memory_space<vmem>>, %arg8: memref<160x80xbf16, #tpu.memory_space<vmem>>, %arg9: memref<160x80xbf16, #tpu.memory_space<vmem>>, %arg10: memref<400x128xbf16, #tpu.memory_space<vmem>>, %arg11: memref<1x128xf32, #tpu.memory_space<vmem>>, %arg12: memref<128x128xbf16, #tpu.memory_space<vmem>>, %arg13: memref<1x128xf32, #tpu.memory_space<vmem>>, %arg14: memref<128x128xbf16, #tpu.memory_space<vmem>>, %arg15: memref<1x128xf32, #tpu.memory_space<vmem>>, %arg16: memref<8x128xf32, #tpu.memory_space<vmem>>) attributes {dimension_semantics = [#tpu.dimension_semantics<parallel>], iteration_bounds = array<i64: 1>, scalar_prefetch = 0 : i64, scratch_operands = 0 : i64, tpu.core_type = #tpu.core_type<tc>, window_params = [{transform_indices = @transform_0, window_bounds = array<i64: 32, 8, 32>}, {pipeline_mode = #tpu.pipeline_mode<synchronous>, transform_indices = @transform_1, window_bounds = array<i64: 160, 168>}, {pipeline_mode = #tpu.pipeline_mode<synchronous>, transform_indices = @transform_2, window_bounds = array<i64: 1, 168>}, {pipeline_mode = #tpu.pipeline_mode<synchronous>, transform_indices = @transform_3, window_bounds = array<i64: 168, 84>}, {pipeline_mode = #tpu.pipeline_mode<synchronous>, transform_indices = @transform_4, window_bounds = array<i64: 168, 84>}, {pipeline_mode = #tpu.pipeline_mode<synchronous>, transform_indices = @transform_5, window_bounds = array<i64: 420, 160>}, {pipeline_mode = #tpu.pipeline_mode<synchronous>, transform_indices = @transform_6, window_bounds = array<i64: 1, 160>}, {pipeline_mode = #tpu.pipeline_mode<synchronous>, transform_indices = @transform_7, window_bounds = array<i64: 160, 80>}, {pipeline_mode = #tpu.pipeline_mode<synchronous>, transform_indices = @transform_8, window_bounds = array<i64: 160, 80>}, {pipeline_mode = #tpu.pipeline_mode<synchronous>, transform_indices = @transform_9, window_bounds = array<i64: 400, 128>}, {pipeline_mode = #tpu.pipeline_mode<synchronous>, transform_indices = @transform_10, window_bounds = array<i64: 1, 128>}, {pipeline_mode = #tpu.pipeline_mode<synchronous>, transform_indices = @transform_11, window_bounds = array<i64: 128, 128>}, {pipeline_mode = #tpu.pipeline_mode<synchronous>, transform_indices = @transform_12, window_bounds = array<i64: 1, 128>}, {pipeline_mode = #tpu.pipeline_mode<synchronous>, transform_indices = @transform_13, window_bounds = array<i64: 128, 128>}, {pipeline_mode = #tpu.pipeline_mode<synchronous>, transform_indices = @transform_14, window_bounds = array<i64: 1, 128>}, {transform_indices = @transform_15, window_bounds = array<i64: 8, 128>}]} {
    %c0 = arith.constant 0 : index
    %c0_0 = arith.constant 0 : index
    %c0_1 = arith.constant 0 : index
    %0 = vector.load %arg1[%c0, %c0_0, %c0_1] : memref<32x8x32xf32, #tpu.memory_space<vmem>>, vector<28x8x32xf32>
    %1 = vector.shape_cast %0 : vector<28x8x32xf32> to vector<224x32xf32>
    %c1 = arith.constant 1 : index
    %c0_2 = arith.constant 0 : index
    %c0_3 = arith.constant 0 : index
    %2 = vector.load %arg1[%c1, %c0_2, %c0_3] : memref<32x8x32xf32, #tpu.memory_space<vmem>>, vector<28x8x32xf32>
    %3 = vector.shape_cast %2 : vector<28x8x32xf32> to vector<224x32xf32>
    %c2 = arith.constant 2 : index
    %c0_4 = arith.constant 0 : index
    %c0_5 = arith.constant 0 : index
    %4 = vector.load %arg1[%c2, %c0_4, %c0_5] : memref<32x8x32xf32, #tpu.memory_space<vmem>>, vector<28x8x32xf32>
    %5 = vector.shape_cast %4 : vector<28x8x32xf32> to vector<224x32xf32>
    %c3 = arith.constant 3 : index
    %c0_6 = arith.constant 0 : index
    %c0_7 = arith.constant 0 : index
    %6 = vector.load %arg1[%c3, %c0_6, %c0_7] : memref<32x8x32xf32, #tpu.memory_space<vmem>>, vector<28x8x32xf32>
    %7 = vector.shape_cast %6 : vector<28x8x32xf32> to vector<224x32xf32>
    %c4 = arith.constant 4 : index
    %c0_8 = arith.constant 0 : index
    %c0_9 = arith.constant 0 : index
    %8 = vector.load %arg1[%c4, %c0_8, %c0_9] : memref<32x8x32xf32, #tpu.memory_space<vmem>>, vector<28x8x32xf32>
    %9 = vector.shape_cast %8 : vector<28x8x32xf32> to vector<224x32xf32>
    %10 = tpu.concatenate %1, %3, %5, %7, %9 in 1 : vector<224x32xf32>, vector<224x32xf32>, vector<224x32xf32>, vector<224x32xf32>, vector<224x32xf32> -> vector<224x160xf32>
    %11 = arith.truncf %10 : vector<224x160xf32> to vector<224x160xbf16>
    %c0_10 = arith.constant 0 : index
    %c0_11 = arith.constant 0 : index
    %12 = vector.load %arg2[%c0_10, %c0_11] : memref<160x168xbf16, #tpu.memory_space<vmem>>, vector<160x168xbf16>
    %cst = arith.constant dense<0.000000e+00> : vector<224x168xf32>
    %13 = tpu.matmul %11, %12, %cst {dimension_numbers = #tpu.dot_dimension_numbers<[1], [0], [0], [1], [0, 0, 1, 1], [], []>} : vector<224x160xbf16>, vector<160x168xbf16>, vector<224x168xf32> -> vector<224x168xf32>
    %c0_12 = arith.constant 0 : index
    %c0_13 = arith.constant 0 : index
    %14 = vector.load %arg3[%c0_12, %c0_13] : memref<1x168xf32, #tpu.memory_space<vmem>>, vector<1x168xf32>
    %15 = vector.broadcast %14 : vector<1x168xf32> to vector<224x168xf32>
    %16 = arith.addf %13, %15 : vector<224x168xf32>
    %17 = math.tanh %16 : vector<224x168xf32>
    %18 = arith.truncf %17 : vector<224x168xf32> to vector<224x168xbf16>
    %c0_14 = arith.constant 0 : index
    %c0_15 = arith.constant 0 : index
    %19 = vector.load %arg4[%c0_14, %c0_15] : memref<168x84xbf16, #tpu.memory_space<vmem>>, vector<168x84xbf16>
    %cst_16 = arith.constant dense<0.000000e+00> : vector<224x84xf32>
    %20 = tpu.matmul %18, %19, %cst_16 {dimension_numbers = #tpu.dot_dimension_numbers<[1], [0], [0], [1], [0, 0, 1, 1], [], []>} : vector<224x168xbf16>, vector<168x84xbf16>, vector<224x84xf32> -> vector<224x84xf32>
    %21 = arith.truncf %17 : vector<224x168xf32> to vector<224x168xbf16>
    %c0_17 = arith.constant 0 : index
    %c0_18 = arith.constant 0 : index
    %22 = vector.load %arg5[%c0_17, %c0_18] : memref<168x84xbf16, #tpu.memory_space<vmem>>, vector<168x84xbf16>
    %cst_19 = arith.constant dense<0.000000e+00> : vector<224x84xf32>
    %23 = tpu.matmul %21, %22, %cst_19 {dimension_numbers = #tpu.dot_dimension_numbers<[1], [0], [0], [1], [0, 0, 1, 1], [], []>} : vector<224x168xbf16>, vector<168x84xbf16>, vector<224x84xf32> -> vector<224x84xf32>
    %24 = arith.maximumf %20, %23 : vector<224x84xf32>
    %25 = vector.shape_cast %24 : vector<224x84xf32> to vector<14x16x84xf32>
    %26 = vector.extract_strided_slice %25 {offsets = [0, 0, 0], sizes = [14, 8, 84], strides = [1, 1, 1]} : vector<14x16x84xf32> to vector<14x8x84xf32>
    %27 = vector.extract_strided_slice %25 {offsets = [0, 8, 0], sizes = [14, 8, 84], strides = [1, 1, 1]} : vector<14x16x84xf32> to vector<14x8x84xf32>
    %28 = arith.maximumf %26, %27 : vector<14x8x84xf32>
    %29 = vector.extract_strided_slice %28 {offsets = [0, 0, 0], sizes = [10, 8, 84], strides = [1, 1, 1]} : vector<14x8x84xf32> to vector<10x8x84xf32>
    %30 = vector.shape_cast %29 : vector<10x8x84xf32> to vector<80x84xf32>
    %31 = vector.extract_strided_slice %28 {offsets = [1, 0, 0], sizes = [10, 8, 84], strides = [1, 1, 1]} : vector<14x8x84xf32> to vector<10x8x84xf32>
    %32 = vector.shape_cast %31 : vector<10x8x84xf32> to vector<80x84xf32>
    %33 = vector.extract_strided_slice %28 {offsets = [2, 0, 0], sizes = [10, 8, 84], strides = [1, 1, 1]} : vector<14x8x84xf32> to vector<10x8x84xf32>
    %34 = vector.shape_cast %33 : vector<10x8x84xf32> to vector<80x84xf32>
    %35 = vector.extract_strided_slice %28 {offsets = [3, 0, 0], sizes = [10, 8, 84], strides = [1, 1, 1]} : vector<14x8x84xf32> to vector<10x8x84xf32>
    %36 = vector.shape_cast %35 : vector<10x8x84xf32> to vector<80x84xf32>
    %37 = vector.extract_strided_slice %28 {offsets = [4, 0, 0], sizes = [10, 8, 84], strides = [1, 1, 1]} : vector<14x8x84xf32> to vector<10x8x84xf32>
    %38 = vector.shape_cast %37 : vector<10x8x84xf32> to vector<80x84xf32>
    %39 = tpu.concatenate %30, %32, %34, %36, %38 in 1 : vector<80x84xf32>, vector<80x84xf32>, vector<80x84xf32>, vector<80x84xf32>, vector<80x84xf32> -> vector<80x420xf32>
    %40 = arith.truncf %39 : vector<80x420xf32> to vector<80x420xbf16>
    %c0_20 = arith.constant 0 : index
    %c0_21 = arith.constant 0 : index
    %41 = vector.load %arg6[%c0_20, %c0_21] : memref<420x160xbf16, #tpu.memory_space<vmem>>, vector<420x160xbf16>
    %cst_22 = arith.constant dense<0.000000e+00> : vector<80x160xf32>
    %42 = tpu.matmul %40, %41, %cst_22 {dimension_numbers = #tpu.dot_dimension_numbers<[1], [0], [0], [1], [0, 0, 1, 1], [], []>} : vector<80x420xbf16>, vector<420x160xbf16>, vector<80x160xf32> -> vector<80x160xf32>
    %c0_23 = arith.constant 0 : index
    %c0_24 = arith.constant 0 : index
    %43 = vector.load %arg7[%c0_23, %c0_24] : memref<1x160xf32, #tpu.memory_space<vmem>>, vector<1x160xf32>
    %44 = vector.broadcast %43 : vector<1x160xf32> to vector<80x160xf32>
    %45 = arith.addf %42, %44 : vector<80x160xf32>
    %cst_25 = arith.constant 0.000000e+00 : f32
    %46 = vector.broadcast %cst_25 : f32 to vector<80x160xf32>
    %47 = arith.maximumf %45, %46 : vector<80x160xf32>
    %48 = arith.truncf %47 : vector<80x160xf32> to vector<80x160xbf16>
    %c0_26 = arith.constant 0 : index
    %c0_27 = arith.constant 0 : index
    %49 = vector.load %arg8[%c0_26, %c0_27] : memref<160x80xbf16, #tpu.memory_space<vmem>>, vector<160x80xbf16>
    %cst_28 = arith.constant dense<0.000000e+00> : vector<80x80xf32>
    %50 = tpu.matmul %48, %49, %cst_28 {dimension_numbers = #tpu.dot_dimension_numbers<[1], [0], [0], [1], [0, 0, 1, 1], [], []>} : vector<80x160xbf16>, vector<160x80xbf16>, vector<80x80xf32> -> vector<80x80xf32>
    %51 = arith.truncf %47 : vector<80x160xf32> to vector<80x160xbf16>
    %c0_29 = arith.constant 0 : index
    %c0_30 = arith.constant 0 : index
    %52 = vector.load %arg9[%c0_29, %c0_30] : memref<160x80xbf16, #tpu.memory_space<vmem>>, vector<160x80xbf16>
    %cst_31 = arith.constant dense<0.000000e+00> : vector<80x80xf32>
    %53 = tpu.matmul %51, %52, %cst_31 {dimension_numbers = #tpu.dot_dimension_numbers<[1], [0], [0], [1], [0, 0, 1, 1], [], []>} : vector<80x160xbf16>, vector<160x80xbf16>, vector<80x80xf32> -> vector<80x80xf32>
    %54 = arith.maximumf %50, %53 : vector<80x80xf32>
    %55 = vector.shape_cast %54 : vector<80x80xf32> to vector<5x16x80xf32>
    %56 = vector.extract_strided_slice %55 {offsets = [0, 0, 0], sizes = [5, 8, 80], strides = [1, 1, 1]} : vector<5x16x80xf32> to vector<5x8x80xf32>
    %57 = vector.extract_strided_slice %55 {offsets = [0, 8, 0], sizes = [5, 8, 80], strides = [1, 1, 1]} : vector<5x16x80xf32> to vector<5x8x80xf32>
    %58 = arith.maximumf %56, %57 : vector<5x8x80xf32>
    %59 = vector.extract_strided_slice %58 {offsets = [0, 0, 0], sizes = [1, 8, 80], strides = [1, 1, 1]} : vector<5x8x80xf32> to vector<1x8x80xf32>
    %60 = vector.shape_cast %59 : vector<1x8x80xf32> to vector<8x80xf32>
    %61 = vector.extract_strided_slice %58 {offsets = [1, 0, 0], sizes = [1, 8, 80], strides = [1, 1, 1]} : vector<5x8x80xf32> to vector<1x8x80xf32>
    %62 = vector.shape_cast %61 : vector<1x8x80xf32> to vector<8x80xf32>
    %63 = vector.extract_strided_slice %58 {offsets = [2, 0, 0], sizes = [1, 8, 80], strides = [1, 1, 1]} : vector<5x8x80xf32> to vector<1x8x80xf32>
    %64 = vector.shape_cast %63 : vector<1x8x80xf32> to vector<8x80xf32>
    %65 = vector.extract_strided_slice %58 {offsets = [3, 0, 0], sizes = [1, 8, 80], strides = [1, 1, 1]} : vector<5x8x80xf32> to vector<1x8x80xf32>
    %66 = vector.shape_cast %65 : vector<1x8x80xf32> to vector<8x80xf32>
    %67 = vector.extract_strided_slice %58 {offsets = [4, 0, 0], sizes = [1, 8, 80], strides = [1, 1, 1]} : vector<5x8x80xf32> to vector<1x8x80xf32>
    %68 = vector.shape_cast %67 : vector<1x8x80xf32> to vector<8x80xf32>
    %69 = tpu.concatenate %60, %62, %64, %66, %68 in 1 : vector<8x80xf32>, vector<8x80xf32>, vector<8x80xf32>, vector<8x80xf32>, vector<8x80xf32> -> vector<8x400xf32>
    %70 = arith.truncf %69 : vector<8x400xf32> to vector<8x400xbf16>
    %c0_32 = arith.constant 0 : index
    %c0_33 = arith.constant 0 : index
    %71 = vector.load %arg10[%c0_32, %c0_33] : memref<400x128xbf16, #tpu.memory_space<vmem>>, vector<400x128xbf16>
    %cst_34 = arith.constant dense<0.000000e+00> : vector<8x128xf32>
    %72 = tpu.matmul %70, %71, %cst_34 {dimension_numbers = #tpu.dot_dimension_numbers<[1], [0], [0], [1], [0, 0, 1, 1], [], []>} : vector<8x400xbf16>, vector<400x128xbf16>, vector<8x128xf32> -> vector<8x128xf32>
    %c0_35 = arith.constant 0 : index
    %c0_36 = arith.constant 0 : index
    %73 = vector.load %arg11[%c0_35, %c0_36] : memref<1x128xf32, #tpu.memory_space<vmem>>, vector<1x128xf32>
    %74 = vector.broadcast %73 : vector<1x128xf32> to vector<8x128xf32>
    %75 = arith.addf %72, %74 : vector<8x128xf32>
    %cst_37 = arith.constant 0.000000e+00 : f32
    %76 = vector.broadcast %cst_37 : f32 to vector<8x128xf32>
    %77 = arith.maximumf %75, %76 : vector<8x128xf32>
    %78 = arith.truncf %77 : vector<8x128xf32> to vector<8x128xbf16>
    %c0_38 = arith.constant 0 : index
    %c0_39 = arith.constant 0 : index
    %79 = vector.load %arg12[%c0_38, %c0_39] : memref<128x128xbf16, #tpu.memory_space<vmem>>, vector<128x128xbf16>
    %cst_40 = arith.constant dense<0.000000e+00> : vector<8x128xf32>
    %80 = tpu.matmul %78, %79, %cst_40 {dimension_numbers = #tpu.dot_dimension_numbers<[1], [0], [0], [1], [0, 0, 1, 1], [], []>} : vector<8x128xbf16>, vector<128x128xbf16>, vector<8x128xf32> -> vector<8x128xf32>
    %c0_41 = arith.constant 0 : index
    %c0_42 = arith.constant 0 : index
    %81 = vector.load %arg13[%c0_41, %c0_42] : memref<1x128xf32, #tpu.memory_space<vmem>>, vector<1x128xf32>
    %82 = vector.broadcast %81 : vector<1x128xf32> to vector<8x128xf32>
    %83 = arith.addf %80, %82 : vector<8x128xf32>
    %cst_43 = arith.constant 0.000000e+00 : f32
    %84 = vector.broadcast %cst_43 : f32 to vector<8x128xf32>
    %85 = arith.maximumf %83, %84 : vector<8x128xf32>
    %86 = arith.truncf %85 : vector<8x128xf32> to vector<8x128xbf16>
    %c0_44 = arith.constant 0 : index
    %c0_45 = arith.constant 0 : index
    %87 = vector.load %arg14[%c0_44, %c0_45] : memref<128x128xbf16, #tpu.memory_space<vmem>>, vector<128x128xbf16>
    %cst_46 = arith.constant dense<0.000000e+00> : vector<8x128xf32>
    %88 = tpu.matmul %86, %87, %cst_46 {dimension_numbers = #tpu.dot_dimension_numbers<[1], [0], [0], [1], [0, 0, 1, 1], [], []>} : vector<8x128xbf16>, vector<128x128xbf16>, vector<8x128xf32> -> vector<8x128xf32>
    %c0_47 = arith.constant 0 : index
    %c0_48 = arith.constant 0 : index
    %89 = vector.load %arg15[%c0_47, %c0_48] : memref<1x128xf32, #tpu.memory_space<vmem>>, vector<1x128xf32>
    %90 = vector.broadcast %89 : vector<1x128xf32> to vector<8x128xf32>
    %91 = arith.addf %88, %90 : vector<8x128xf32>
    %c0_49 = arith.constant 0 : index
    %c0_50 = arith.constant 0 : index
    %92 = vector.load %arg16[%c0_49, %c0_50] : memref<8x128xf32, #tpu.memory_space<vmem>>, vector<8x128xf32>
    tpu.vector_store %arg16[%c0_49, %c0_50], %91 {strides = array<i32>} : memref<8x128xf32, #tpu.memory_space<vmem>>, vector<8x128xf32>,
    return
  }
  func.func @transform_0(%arg0: i32) -> (i32, i32, i32) {
    %c0_i32 = arith.constant 0 : i32
    %c0_i32_0 = arith.constant 0 : i32
    %c0_i32_1 = arith.constant 0 : i32
    return %c0_i32, %arg0, %c0_i32_0 : i32, i32, i32
  }
  func.func @transform_1(%arg0: i32) -> (i32, i32) {
    %c0_i32 = arith.constant 0 : i32
    %c0_i32_0 = arith.constant 0 : i32
    %c0_i32_1 = arith.constant 0 : i32
    return %c0_i32, %c0_i32_0 : i32, i32
  }
  func.func @transform_2(%arg0: i32) -> (i32, i32) {
    %c0_i32 = arith.constant 0 : i32
    %c0_i32_0 = arith.constant 0 : i32
    %c0_i32_1 = arith.constant 0 : i32
    return %c0_i32, %c0_i32_0 : i32, i32
  }
  func.func @transform_3(%arg0: i32) -> (i32, i32) {
    %c0_i32 = arith.constant 0 : i32
    %c0_i32_0 = arith.constant 0 : i32
    %c0_i32_1 = arith.constant 0 : i32
    return %c0_i32, %c0_i32_0 : i32, i32
  }
  func.func @transform_4(%arg0: i32) -> (i32, i32) {
    %c0_i32 = arith.constant 0 : i32
    %c0_i32_0 = arith.constant 0 : i32
    %c0_i32_1 = arith.constant 0 : i32
    return %c0_i32, %c0_i32_0 : i32, i32
  }
  func.func @transform_5(%arg0: i32) -> (i32, i32) {
    %c0_i32 = arith.constant 0 : i32
    %c0_i32_0 = arith.constant 0 : i32
    %c0_i32_1 = arith.constant 0 : i32
    return %c0_i32, %c0_i32_0 : i32, i32
  }
  func.func @transform_6(%arg0: i32) -> (i32, i32) {
    %c0_i32 = arith.constant 0 : i32
    %c0_i32_0 = arith.constant 0 : i32
    %c0_i32_1 = arith.constant 0 : i32
    return %c0_i32, %c0_i32_0 : i32, i32
  }
  func.func @transform_7(%arg0: i32) -> (i32, i32) {
    %c0_i32 = arith.constant 0 : i32
    %c0_i32_0 = arith.constant 0 : i32
    %c0_i32_1 = arith.constant 0 : i32
    return %c0_i32, %c0_i32_0 : i32, i32
  }
  func.func @transform_8(%arg0: i32) -> (i32, i32) {
    %c0_i32 = arith.constant 0 : i32
    %c0_i32_0 = arith.constant 0 : i32
    %c0_i32_1 = arith.constant 0 : i32
    return %c0_i32, %c0_i32_0 : i32, i32
  }
  func.func @transform_9(%arg0: i32) -> (i32, i32) {
    %c0_i32 = arith.constant 0 : i32
    %c0_i32_0 = arith.constant 0 : i32
    %c0_i32_1 = arith.constant 0 : i32
    return %c0_i32, %c0_i32_0 : i32, i32
  }
  func.func @transform_10(%arg0: i32) -> (i32, i32) {
    %c0_i32 = arith.constant 0 : i32
    %c0_i32_0 = arith.constant 0 : i32
    %c0_i32_1 = arith.constant 0 : i32
    return %c0_i32, %c0_i32_0 : i32, i32
  }
  func.func @transform_11(%arg0: i32) -> (i32, i32) {
    %c0_i32 = arith.constant 0 : i32
    %c0_i32_0 = arith.constant 0 : i32
    %c0_i32_1 = arith.constant 0 : i32
    return %c0_i32, %c0_i32_0 : i32, i32
  }
  func.func @transform_12(%arg0: i32) -> (i32, i32) {
    %c0_i32 = arith.constant 0 : i32
    %c0_i32_0 = arith.constant 0 : i32
    %c0_i32_1 = arith.constant 0 : i32
    return %c0_i32, %c0_i32_0 : i32, i32
  }
  func.func @transform_13(%arg0: i32) -> (i32, i32) {
    %c0_i32 = arith.constant 0 : i32
    %c0_i32_0 = arith.constant 0 : i32
    %c0_i32_1 = arith.constant 0 : i32
    return %c0_i32, %c0_i32_0 : i32, i32
  }
  func.func @transform_14(%arg0: i32) -> (i32, i32) {
    %c0_i32 = arith.constant 0 : i32
    %c0_i32_0 = arith.constant 0 : i32
    %c0_i32_1 = arith.constant 0 : i32
    return %c0_i32, %c0_i32_0 : i32, i32
  }
  func.func @transform_15(%arg0: i32) -> (i32, i32) {
    %c0_i32 = arith.constant 0 : i32
    %c0_i32_0 = arith.constant 0 : i32
    return %arg0, %c0_i32 : i32, i32
  }
}

</mosaic_0001>

<bundles_post_ra>
// kernel: _lenet5_forward.1
= control target key start
LH: loop header
LB: loop body
LE: loop exit
PB: predicated region body
PF: predicated region fallthrough
CT: control target
= control target key end

     0   :  { %s4804_s17 = smov 32   ;;  %s4805_s24 = smov 96   ;;  %vm531_vm0 = vcmask 261120   ;;  %vm1341_vm1 = vcmask 1043456   ;;  %vm560_vm2 = vcmask 523264   ;;  %vm589_vm3 = vcmask 785408   ;;  %s6725_s0 = inlined_call_operand.vmem [shape: f32[32,8,32], index: 0, kind: input, shape index: {}]   ;;  %s6726_s1 = inlined_call_operand.vmem [shape: bf16[160,168], index: 1, kind: input, shape index: {}]   ;;  %s6727_s3 = inlined_call_operand.vmem [shape: bf16[168,84], index: 3, kind: input, shape index: {}]   ;;  %s6728_s4 = inlined_call_operand.vmem [shape: bf16[168,84], index: 4, kind: input, shape index: {}]   ;;  %s6729_s2 = inlined_call_operand.vmem [shape: f32[1,168], index: 2, kind: input, shape index: {}]   ;;  %s6730_s5 = inlined_call_operand.vmem [shape: bf16[420,160], index: 5, kind: input, shape index: {}]   ;;  %s6731_s7 = inlined_call_operand.vmem [shape: bf16[160,80], index: 7, kind: input, shape index: {}]   ;;  %s6732_s6 = inlined_call_operand.vmem [shape: f32[1,160], index: 6, kind: input, shape index: {}]   ;;  %s6733_s8 = inlined_call_operand.vmem [shape: bf16[160,80], index: 8, kind: input, shape index: {}]   ;;  %s6734_s9 = inlined_call_operand.vmem [shape: bf16[400,128], index: 9, kind: input, shape index: {}]   ;;  %s6735_s10 = inlined_call_operand.vmem [shape: f32[1,128], index: 10, kind: input, shape index: {}]   ;;  %s6736_s11 = inlined_call_operand.vmem [shape: bf16[128,128], index: 11, kind: input, shape index: {}]   ;;  %s6737_s12 = inlined_call_operand.vmem [shape: f32[1,128], index: 12, kind: input, shape index: {}]   ;;  %s6738_s13 = inlined_call_operand.vmem [shape: bf16[128,128], index: 13, kind: input, shape index: {}]   ;;  %s6739_s14 = inlined_call_operand.vmem [shape: f32[1,128], index: 14, kind: input, shape index: {}]   ;;  %s6740_s15 = inlined_call_operand.vmem [shape: f32[8,128], index: 15, kind: output, shape index: {}]  }
   0x1   :  { %v4895_v0 = vld [vmem:[%s6725_s0 + $0x8] sm:$0xff]  ;;  %v4900_v1 = vld [vmem:[%s6725_s0 + $0x10] sm:$0xff]  ;;  %v4905_v2 = vld [vmem:[%s6725_s0 + $0x18] sm:$0xff]  ;;  %s4806_s25 = smov 64   ;;  %vm1298_vm4 = vcmask 326656   ;;  %vm2326_vm5 = vcmask 1041408  }
   0x2   :  { %v4379_v3 = vpack.i.bf16 %v4900_v1, %v4895_v0  ;;  %v4912_v4 = vld [vmem:[%s6725_s0 + $0x20] sm:$0xff]  ;;  %v4917_v5 = vld [vmem:[%s6725_s0 + $0x28] sm:$0xff]  ;;  %v3603_v8 = vld [vmem:[%s6726_s1 + $0x90] sm:$0xf]  ;;  %v4384_v19 = vpack.i.bf16 %v4905_v2, %v4900_v1  ;;  %s4809_s27 = smov 124   ;;  %s4810_s19 = smov 80  }
   0x3   :  { %v4389_v6 = vpack.i.bf16 %v4912_v4, %v4905_v2  ;;  %v4399_v7 = vpack.i.bf16 %v4917_v5, %v4912_v4  ;;  %v4237_v9 = vld [vmem:[%s6726_s1 + $0x94] sm:$0xf0]  ;;  %v3595_v11 = vld [vmem:[%s6726_s1 + $0x80] sm:$0xf]  ;;  %v4235_v12 = vld [vmem:[%s6726_s1 + $0x84] sm:$0xf0]  ;;  %v619_v22 = vpack.c.bf16 %v4917_v5, %v4912_v4 }
   0x4   :  { %4380 = vrot.lane.b32.xlu0 %v4379_v3, %s4804_s17  ;;  %v3604_v10 = vor.u32 %v4237_v9, %v3603_v8  ;;  %v4236_v13 = vld [vmem:[%s6726_s1 + $0x94] sm:$0xf]  ;;  %v3605_v14 = vld [vmem:[%s6726_s1 + $0x98] sm:$0xf0]  ;;  %v4234_v15 = vld [vmem:[%s6726_s1 + $0x84] sm:$0xf]  ;;  %v3596_v16 = vor.u32 %v4235_v12, %v3595_v11 }
   0x5   :  { %4390 = vrot.lane.b32.xlu1 %v4389_v6, %s4805_s24  ;;  %4400 = vrot.lane.b32.xlu2 %v4399_v7, %s4806_s25  ;;  %v3608_v17 = vor.u32 %v4236_v13, %v3605_v14  ;;  %v3597_v18 = vld [vmem:[%s6726_s1 + $0x88] sm:$0xf0]  ;;  %v4955_v20 = vld [vmem:[%s6725_s0 + $0x30] sm:$0xff]  ;;  %vm1923_vm6 = vcmask 687104   ;;  %vm1944_vm7 = vcmask 1014784   ;;  %vm1955_vm8 = vcmask 654336  }
   0x6   :  { %899 = vmatpush.bf16.msra.mxu1 %v3604_v10  ;;  %v3600_v21 = vor.u32 %v4234_v15, %v3597_v18  ;;  %v4409_v23 = vpack.i.bf16 %v4955_v20, %v4917_v5  ;;  %v4967_v24 = vld [vmem:[%s6725_s0 + $0x38] sm:$0xff]  ;;  %v3587_v25 = vld [vmem:[%s6726_s1 + $0x70] sm:$0xf]  ;;  %v4232_v27 = vld [vmem:[%s6726_s1 + $0x74] sm:$0xf]  ;;  %vm2310_vm9 = vcmask 293888  }
   0x7   :  { %1057 = vmatpush.bf16.msra.mxu3 %v3608_v17  ;;  %v4233_v26 = vld [vmem:[%s6726_s1 + $0x74] sm:$0xf0]  ;;  %v4983_v28 = vld [vmem:[%s6725_s0 + $0x40] sm:$0xff]  ;;  %v3589_v30 = vld [vmem:[%s6726_s1 + $0x78] sm:$0xf0]  ;;  %v4414_v31 = vpack.i.bf16 %v4967_v24, %v4955_v20  ;;  %v621_v37 = vpack.c.bf16 %v4967_v24, %v4955_v20  ;;  %vm3190_vm10 = vcmask 130048  }
   0x8   :  { %v3588_v29 = vor.u32 %v4233_v26, %v3587_v25  ;;  %v3592_v32 = vor.u32 %v4232_v27, %v3589_v30  ;;  %v4424_v33 = vpack.i.bf16 %v4983_v28, %v4967_v24  ;;  %v4998_v34 = vld [vmem:[%s6725_s0 + $0x48] sm:$0xff]  ;;  %v5003_v35 = vld [vmem:[%s6725_s0 + $0x50] sm:$0xff]  ;;  %v5016_v39 = vld [vmem:[%s6725_s0 + $0x58] sm:$0xff]  ;;  %vm2979_vm11 = vcmask 916480  }
   0x9   :  { %v4429_v36 = vpack.i.bf16 %v4998_v34, %v4983_v28  ;;  %v4439_v38 = vpack.i.bf16 %v5003_v35, %v4998_v34  ;;  %v3579_v40 = vld [vmem:[%s6726_s1 + $0x60] sm:$0xf]  ;;  %v4231_v41 = vld [vmem:[%s6726_s1 + $0x64] sm:$0xf0]  ;;  %v4230_v42 = vld [vmem:[%s6726_s1 + $0x64] sm:$0xf]  ;;  %v4444_v50 = vpack.i.bf16 %v5016_v39, %v5003_v35  ;;  %v623_v9 = vpack.c.bf16 %v4998_v34, %v4983_v28 }
   0xa   :  { %900 = vmatpush.bf16.msra.mxu1 %v3596_v16  ;;  %814 = vmatpush.bf16.msra.mxu0 %v3588_v29  ;;  %v5033_v43 = vld [vmem:[%s6725_s0 + $0x60] sm:$0xff]  ;;  %v3580_v44 = vor.u32 %v4231_v41, %v3579_v40  ;;  %v3581_v45 = vld [vmem:[%s6726_s1 + $0x68] sm:$0xf0]  ;;  %v3571_v47 = vld [vmem:[%s6726_s1 + $0x50] sm:$0xf]  ;;  %v625_v15 = vpack.c.bf16 %v5016_v39, %v5003_v35 }
   0xb   :  { %1058 = vmatpush.bf16.msra.mxu3 %v3600_v21  ;;  %972 = vmatpush.bf16.msra.mxu2 %v3592_v32  ;;  %v3584_v46 = vor.u32 %v4230_v42, %v3581_v45  ;;  %v4229_v48 = vld [vmem:[%s6726_s1 + $0x54] sm:$0xf0]  ;;  %v4228_v49 = vld [vmem:[%s6726_s1 + $0x54] sm:$0xf]  ;;  %v3573_v51 = vld [vmem:[%s6726_s1 + $0x58] sm:$0xf0]  ;;  %v4454_v55 = vpack.i.bf16 %v5033_v43, %v5016_v39 }
   0xc   :  { %4385 = vrot.lane.b32.xlu0 %v4384_v19, %s4806_s25  ;;  %v3572_v52 = vor.u32 %v4229_v48, %v3571_v47  ;;  %v3576_v53 = vor.u32 %v4228_v49, %v3573_v51  ;;  %v3563_v54 = vld [vmem:[%s6726_s1 + $0x40] sm:$0xf]  ;;  %v4227_v56 = vld [vmem:[%s6726_s1 + $0x44] sm:$0xf0]  ;;  %v4226_v57 = vld [vmem:[%s6726_s1 + $0x44] sm:$0xf] }
   0xd   :  { %4395 = vrot.lane.b32.xlu1 %v4389_v6, %s4804_s17  ;;  %4405 = vrot.lane.b32.xlu2 %v4409_v23, %s4805_s24  ;;  %v3565_v58 = vld [vmem:[%s6726_s1 + $0x48] sm:$0xf0]  ;;  %v3564_v60 = vor.u32 %v4227_v56, %v3563_v54  ;;  %v3555_v62 = vld [vmem:[%s6726_s1 + $0x30] sm:$0xf] }
   0xe   :  { %3609 = vmatmul.msk.bf16.vlgmr.msra.gmra.mxu1 %vm531_vm0, %v619_v22  ;;  %3623 = vmatmul.msk.bf16.vlgmr.msra.gmra.mxu3 %vm531_vm0, %v619_v22  ;;  %v5072_v59 = vld [vmem:[%s6725_s0 + $0x68] sm:$0xff]  ;;  %v3568_v61 = vor.u32 %v4226_v57, %v3565_v58  ;;  %v4225_v63 = vld [vmem:[%s6726_s1 + $0x34] sm:$0xf0]  ;;  %v5083_v3 = vld [vmem:[%s6725_s0 + $0x70] sm:$0xff] }
   0xf   :  { %815 = vmatpush.bf16.msra.mxu0 %v3580_v44  ;;  %973 = vmatpush.bf16.msra.mxu2 %v3584_v46  ;;  %v4224_v6 = vld [vmem:[%s6726_s1 + $0x34] sm:$0xf]  ;;  %v3557_v7 = vld [vmem:[%s6726_s1 + $0x38] sm:$0xf0]  ;;  %v4459_v8 = vpack.i.bf16 %v5072_v59, %v5033_v43  ;;  %v3556_v10 = vor.u32 %v4225_v63, %v3555_v62  ;;  %v4469_v11 = vpack.i.bf16 %v5083_v3, %v5072_v59  ;;  %v3547_v17 = vld [vmem:[%s6726_s1 + $0x20] sm:$0xf] }
  0x10   :  { %v3560_v12 = vor.u32 %v4224_v6, %v3557_v7  ;;  %v5104_v13 = vld [vmem:[%s6725_s0 + $0x78] sm:$0xff]  ;;  %v627_v16 = vpack.c.bf16 %v5072_v59, %v5033_v43  ;;  %v4223_v18 = vld [vmem:[%s6726_s1 + $0x24] sm:$0xf0]  ;;  %v4222_v21 = vld [vmem:[%s6726_s1 + $0x24] sm:$0xf] }
  0x11   :  { %v4474_v14 = vpack.i.bf16 %v5104_v13, %v5083_v3  ;;  %v3548_v19 = vor.u32 %v4223_v18, %v3547_v17  ;;  %v3549_v22 = vld [vmem:[%s6726_s1 + $0x28] sm:$0xf0]  ;;  %v3539_v29 = vld [vmem:[%s6726_s1 + $0x10] sm:$0xf]  ;;  %v4221_v30 = vld [vmem:[%s6726_s1 + $0x14] sm:$0xf0] }
  0x12   :  { %v3552_v25 = vor.u32 %v4222_v21, %v3549_v22  ;;  %v5141_v27 = vld [vmem:[%s6725_s0 + $0x88] sm:$0xff]  ;;  %v3540_v32 = vor.u32 %v4221_v30, %v3539_v29  ;;  %v4218_v41 = vld [vmem:[%s6726_s1 + $0x4] sm:$0xf]  ;;  %v1234_v45 = vld [vmem:[%s6727_s3 + $0x50] sm:$0xf] }
  0x13   :  { %816 = vmatpush.bf16.msra.mxu0 %v3572_v52  ;;  %974 = vmatpush.bf16.msra.mxu2 %v3576_v53  ;;  %v4219_v40 = vld [vmem:[%s6726_s1 + $0x4] sm:$0xf0]  ;;  %v3533_v44 = vld [vmem:[%s6726_s1 + $0x8] sm:$0xf0]  ;;  %v1276_v47 = vunpack.c.l.b16 %v1234_v45  ;;  %v1523_v48 = vld [vmem:[%s6728_s4 + $0x50] sm:$0xf]  ;;  %v629_v53 = vpack.c.bf16 %v5104_v13, %v5083_v3 }
  0x14   :  { %4410 = vrot.lane.b32.xlu0 %v4409_v23, %s4804_s17  ;;  %v5133_v23 = vld [vmem:[%s6725_s0 + $0x80] sm:$0xff]  ;;  %v3536_v46 = vor.u32 %v4218_v41, %v3533_v44  ;;  %v1565_v49 = vunpack.c.l.b16 %v1523_v48  ;;  %v4245_v54 = vld [vmem:[%s6727_s3 + $0x38] sm:$0xff]  ;;  %v5189_v56 = vld [vmem:[%s6725_s0 + $0x90] sm:$0xff] }
  0x15   :  { %4415 = vrot.lane.b32.xlu1 %v4414_v31, %s4806_s25  ;;  %4420 = vrot.lane.b32.xlu2 %v4424_v33, %s4805_s24  ;;  %v4484_v26 = vpack.i.bf16 %v5133_v23, %v5104_v13  ;;  %v4489_v31 = vpack.i.bf16 %v5141_v27, %v5133_v23  ;;  %v4499_v58 = vpack.i.bf16 %v5189_v56, %v5141_v27  ;;  %v5210_v63 = vld [vmem:[%s6725_s0 + $0xa0] sm:$0xff]  ;;  %v5215_v6 = vld [vmem:[%s6725_s0 + $0xa8] sm:$0xff] }
  0x16   :  { %v1576_v51 = vpack.c.b16 %v1565_v49, %v1565_v49  ;;  %1345 = vmatpush.bf16.msrb.mxu1 %v4245_v54  ;;  %v631_v62 = vpack.c.bf16 %v5141_v27, %v5133_v23  ;;  %v5254_v44 = vld [vmem:[%s6725_s0 + $0xb8] sm:$0xff] }
  0x17   :  { %817 = vmatpush.bf16.msra.mxu0 %v3564_v60  ;;  %975 = vmatpush.bf16.msra.mxu2 %v3568_v61  ;;  %v5196_v60 = vld [vmem:[%s6725_s0 + $0x98] sm:$0xff] }
  0x18   :  { %v1588_v57 = vsel %vm1341_vm1, %v1576_v51, 0  ;;  %v4504_v61 = vpack.i.bf16 %v5196_v60, %v5189_v56 }
  0x1b   :  { %818 = vmatpush.bf16.msra.mxu0 %v3556_v10  ;;  %976 = vmatpush.bf16.msra.mxu2 %v3560_v12 }
  0x1c   :  { %4425 = vrot.lane.b32.xlu0 %v4424_v33, %s4804_s17  ;;  %v4220_v33 = vld [vmem:[%s6726_s1 + $0x14] sm:$0xf] }
  0x1d   :  { %4430 = vrot.lane.b32.xlu1 %v4429_v36, %s4806_s25  ;;  %4435 = vrot.lane.b32.xlu2 %v4439_v38, %s4805_s24  ;;  %v3541_v36 = vld [vmem:[%s6726_s1 + $0x18] sm:$0xf0] }
  0x1e   :  { %3610 = vmatmul.msk.bf16.gmra.mxu1 %vm531_vm0, %v621_v37  ;;  %3624 = vmatmul.msk.bf16.gmra.mxu3 %vm531_vm0, %v621_v37  ;;  %v3544_v37 = vor.u32 %v4220_v33, %v3541_v36  ;;  %v4244_v36 = vld [vmem:[%s6727_s3 + $0x30] sm:$0xff] }
  0x1f   :  { %819 = vmatpush.bf16.msra.mxu0 %v3548_v19  ;;  %977 = vmatpush.bf16.msra.mxu2 %v3552_v25 }
  0x20   :  { %1346 = vmatpush.bf16.msrb.mxu1 %v4244_v36 }
  0x23   :  { %820 = vmatpush.bf16.msra.mxu0 %v3540_v32  ;;  %978 = vmatpush.bf16.msra.mxu2 %v3544_v37  ;;  %v633_v37 = vpack.c.bf16 %v5196_v60, %v5189_v56 }
  0x24   :  { %4440 = vrot.lane.b32.xlu0 %v4439_v38, %s4804_s17  ;;  %v3531_v38 = vld [vmem:[%s6726_s1] sm:$0xf] }
  0x25   :  { %4445 = vrot.lane.b32.xlu1 %v4444_v50, %s4806_s25  ;;  %4450 = vrot.lane.b32.xlu2 %v4454_v55, %s4805_s24  ;;  %v3532_v42 = vor.u32 %v4219_v40, %v3531_v38  ;;  %v1287_v50 = vpack.c.b16 %v1276_v47, %v1276_v47  ;;  %v5247_v38 = vld [vmem:[%s6725_s0 + $0xb0] sm:$0xff] }
  0x26   :  { %v4534_v45 = vpack.i.bf16 %v5254_v44, %v5247_v38 }
  0x27   :  { %821 = vmatpush.bf16.msra.mxu0 %v3532_v42  ;;  %979 = vmatpush.bf16.msra.mxu2 %v3536_v46  ;;  %v1343_v52 = vsel %vm1341_vm1, %v1287_v50, 0  ;;  %v4529_v42 = vpack.i.bf16 %v5247_v38, %v5215_v6 }
  0x28   :  { %1429 = vmatpush.bf16.msrb.mxu3 %v1343_v52 }
  0x2b   :  { %1674 = vmatpush.bf16.msrb.mxu2 %v1588_v57 }
  0x2c   :  { %4455 = vrot.lane.b32.xlu0 %v4454_v55, %s4804_s17  ;;  %v4255_v55 = vld [vmem:[%s6728_s4 + $0x38] sm:$0xff] }
  0x2d   :  { %4460 = vrot.lane.b32.xlu1 %v4459_v8, %s4806_s25  ;;  %4465 = vrot.lane.b32.xlu2 %v4469_v11, %s4805_s24  ;;  %v4514_v8 = vpack.i.bf16 %v5210_v63, %v5196_v60 }
  0x2e   :  { %3611 = vmatmul.msk.bf16.gmra.mxu1 %vm531_vm0, %v623_v9  ;;  %3625 = vmatmul.msk.bf16.gmra.mxu3 %vm531_vm0, %v623_v9  ;;  %v4519_v9 = vpack.i.bf16 %v5215_v6, %v5210_v63 }
  0x2f   :  { %1590 = vmatpush.bf16.msrb.mxu0 %v4255_v55 }
  0x34   :  { %4470 = vrot.lane.b32.xlu0 %v4469_v11, %s4804_s17 }
  0x35   :  { %4475 = vrot.lane.b32.xlu1 %v4474_v14, %s4806_s25  ;;  %4480 = vrot.lane.b32.xlu2 %v4484_v26, %s4805_s24  ;;  %v51_v14 = vld [vmem:[%s6725_s0] sm:$0xff] }
  0x3c   :  { %4485 = vrot.lane.b32.xlu0 %v4484_v26, %s4804_s17 }
  0x3d   :  { %4490 = vrot.lane.b32.xlu1 %v4489_v31, %s4806_s25  ;;  %4495 = vrot.lane.b32.xlu2 %v4499_v58, %s4805_s24 }
  0x3e   :  { %3612 = vmatmul.msk.bf16.gmra.mxu1 %vm531_vm0, %v625_v15  ;;  %3626 = vmatmul.msk.bf16.gmra.mxu3 %vm531_vm0, %v625_v15 }
  0x44   :  { %4500 = vrot.lane.b32.xlu0 %v4499_v58, %s4804_s17 }
  0x45   :  { %4505 = vrot.lane.b32.xlu1 %v4504_v61, %s4806_s25  ;;  %4510 = vrot.lane.b32.xlu2 %v4514_v8, %s4805_s24 }
  0x4c   :  { %4515 = vrot.lane.b32.xlu0 %v4514_v8, %s4804_s17 }
  0x4d   :  { %4520 = vrot.lane.b32.xlu1 %v4519_v9, %s4806_s25  ;;  %4525 = vrot.lane.b32.xlu2 %v4529_v42, %s4805_s24  ;;  %v5278_v9 = vld [vmem:[%s6725_s0 + $0xc0] sm:$0xff] }
  0x4e   :  { %3613 = vmatmul.msk.bf16.gmra.mxu1 %vm531_vm0, %v627_v16  ;;  %3627 = vmatmul.msk.bf16.gmra.mxu3 %vm531_vm0, %v627_v16 }
  0x54   :  { %4530 = vrot.lane.b32.xlu0 %v4529_v42, %s4804_s17 }
  0x55   :  { %4535 = vrot.lane.b32.xlu1 %v4534_v45, %s4806_s25  ;;  %v5321_v45 = vld [vmem:[%s6725_s0 + $0xd0] sm:$0xff] }
  0x5e   :  { %3614 = vmatmul.msk.bf16.gmra.mxu1 %vm531_vm0, %v629_v53  ;;  %3628 = vmatmul.msk.bf16.gmra.mxu3 %vm531_vm0, %v629_v53 }
  0x5f   :  { %v4401_v21 = vpop.permute.xlu2 %4400 }
  0x60   :  { %v4403_v46 = vunpack.i.h.bf16 %v4401_v21  ;;  %v4402_v47 = vunpack.i.l.bf16 %v4401_v21 }
  0x67   :  { %v4406_v48 = vpop.permute.xlu2 %4405 }
  0x68   :  { %v4408_v52 = vunpack.i.h.bf16 %v4406_v48  ;;  %v4407_v53 = vunpack.i.l.bf16 %v4406_v48  ;;  %v4247_v48 = vld [vmem:[%s6727_s3 + $0x48] sm:$0xff] }
  0x69   :  { %1430 = vmatpush.bf16.msrb.mxu3 %v4247_v48 }
  0x6e   :  { %3615 = vmatmul.msk.bf16.gmra.mxu1 %vm531_vm0, %v631_v62  ;;  %3629 = vmatmul.msk.bf16.gmra.mxu3 %vm531_vm0, %v631_v62 }
  0x76   :  { %v4381_v7 = vpop.permute.xlu0 %4380 }
  0x77   :  { %v4391_v10 = vpop.permute.xlu1 %4390  ;;  %v4383_v11 = vunpack.i.h.bf16 %v4381_v7  ;;  %v4382_v12 = vunpack.i.l.bf16 %v4381_v7 }
  0x78   :  { %v4393_v15 = vunpack.i.h.bf16 %v4391_v10  ;;  %v4392_v16 = vunpack.i.l.bf16 %v4391_v10  ;;  %v5283_v10 = vld [vmem:[%s6725_s0 + $0xc8] sm:$0xff] }
  0x79   :  { %v532_v22 = vsel %vm531_vm0, %v51_v14, %v4382_v12  ;;  %v533_v25 = vsel %vm531_vm0, %v4895_v0, %v4383_v11  ;;  %v4254_v0 = vld [vmem:[%s6728_s4 + $0x30] sm:$0xff]  ;;  %v4243_v12 = vld [vmem:[%s6727_s3 + $0x28] sm:$0xff]  ;;  %v4544_v14 = vpack.i.bf16 %v5278_v9, %v5254_v44 }
  0x7a   :  { %1591 = vmatpush.bf16.msrb.mxu0 %v4254_v0  ;;  %1347 = vmatpush.bf16.msrb.mxu1 %v4243_v12 }
  0x7b   :  { %4545 = vrot.lane.b32.xlu0 %v4544_v14, %s4804_s17  ;;  %4540 = vrot.lane.b32.xlu2 %v4544_v14, %s4805_s24 }
  0x7e   :  { %v4386_v17 = vpop.permute.xlu0 %4385  ;;  %3616 = vmatmul.msk.bf16.gmra.mxu1 %vm531_vm0, %v633_v37  ;;  %3630 = vmatmul.msk.bf16.gmra.mxu3 %vm531_vm0, %v633_v37 }
  0x7f   :  { %v4388_v18 = vunpack.i.h.bf16 %v4386_v17  ;;  %v4387_v19 = vunpack.i.l.bf16 %v4386_v17  ;;  %v4396_v33 = vpop.permute.xlu1 %4395 }
  0x80   :  { %v4398_v40 = vunpack.i.h.bf16 %v4396_v33  ;;  %v4397_v41 = vunpack.i.l.bf16 %v4396_v33 }
  0x81   :  { %v561_v26 = vsel %vm560_vm2, %v532_v22, %v4387_v19  ;;  %v562_v29 = vsel %vm560_vm2, %v533_v25, %v4388_v18  ;;  %v4421_v19 = vpop.permute.xlu2 %4420 }
  0x82   :  { %v590_v30 = vsel %vm589_vm3, %v561_v26, %v4392_v16  ;;  %v591_v31 = vsel %vm589_vm3, %v562_v29, %v4393_v15  ;;  %v534_v49 = vsel %vm531_vm0, %v4900_v1, %v4397_v41  ;;  %v535_v50 = vsel %vm531_vm0, %v4905_v2, %v4398_v40  ;;  %v4253_v16 = vld [vmem:[%s6728_s4 + $0x28] sm:$0xff] }
  0x83   :  { %v618_v32 = vpack.c.bf16 %v591_v31, %v590_v30  ;;  %v563_v54 = vsel %vm560_vm2, %v534_v49, %v4402_v47  ;;  %v564_v55 = vsel %vm560_vm2, %v535_v50, %v4403_v46  ;;  %v635_v2 = vpack.c.bf16 %v5215_v6, %v5210_v63  ;;  %1592 = vmatpush.bf16.msrb.mxu0 %v4253_v16  ;;  %v5326_v46 = vld [vmem:[%s6725_s0 + $0xd8] sm:$0xff] }
  0x84   :  { %v592_v57 = vsel %vm589_vm3, %v563_v54, %v4407_v53  ;;  %v593_v58 = vsel %vm589_vm3, %v564_v55, %v4408_v52  ;;  %v4549_v15 = vpack.i.bf16 %v5283_v10, %v5278_v9  ;;  %v4423_v25 = vunpack.i.h.bf16 %v4421_v19  ;;  %v4257_v52 = vld [vmem:[%s6728_s4 + $0x48] sm:$0xff] }
  0x85   :  { %822 = vmatmul.bf16.vlgmr.msra.gmra.mxu0 %v618_v32  ;;  %980 = vmatmul.bf16.vlgmr.msra.gmra.mxu2 %v618_v32  ;;  %v620_v62 = vpack.c.bf16 %v593_v58, %v592_v57  ;;  %v4422_v26 = vunpack.i.l.bf16 %v4421_v19  ;;  %v637_v41 = vpack.c.bf16 %v5254_v44, %v5247_v38  ;;  %v4559_v49 = vpack.i.bf16 %v5321_v45, %v5283_v10 }
  0x86   :  { %v4411_v61 = vpop.permute.xlu0 %4410  ;;  %4550 = vrot.lane.b32.xlu1 %v4549_v15, %s4806_s25  ;;  %v4564_v50 = vpack.i.bf16 %v5326_v46, %v5321_v45  ;;  %1675 = vmatpush.bf16.msrb.mxu2 %v4257_v52 }
  0x87   :  { %v4413_v1 = vunpack.i.h.bf16 %v4411_v61  ;;  %v4412_v7 = vunpack.i.l.bf16 %v4411_v61  ;;  %v4416_v8 = vpop.permute.xlu1 %4415  ;;  %4560 = vrot.lane.b32.xlu0 %v4559_v49, %s4804_s17  ;;  %4555 = vrot.lane.b32.xlu2 %v4559_v49, %s4805_s24 }
  0x88   :  { %v4418_v17 = vunpack.i.h.bf16 %v4416_v8  ;;  %v4417_v18 = vunpack.i.l.bf16 %v4416_v8 }
  0x89   :  { %v536_v21 = vsel %vm531_vm0, %v4912_v4, %v4412_v7  ;;  %v537_v22 = vsel %vm531_vm0, %v4917_v5, %v4413_v1  ;;  %v4436_v55 = vpop.permute.xlu2 %4435 }
  0x8a   :  { %v565_v29 = vsel %vm560_vm2, %v536_v21, %v4417_v18  ;;  %v566_v4 = vsel %vm560_vm2, %v537_v22, %v4418_v17  ;;  %v4438_v61 = vunpack.i.h.bf16 %v4436_v55  ;;  %v639_v18 = vpack.c.bf16 %v5283_v10, %v5278_v9  ;;  %v3444_v21 = vld [vmem:[%s6725_s0 + $0xe0] sm:$0xff]  ;;  %v3472_v22 = vld [vmem:[%s6725_s0 + $0xe8] sm:$0xff] }
  0x8b   :  { %v5267_v51 = vpop.f32.mrf.mxu1  ;;  %v594_v31 = vsel %vm589_vm3, %v565_v29, %v4422_v26  ;;  %v595_v32 = vsel %vm589_vm3, %v566_v4, %v4423_v25  ;;  %v4242_v25 = vld [vmem:[%s6727_s3 + $0x20] sm:$0xff]  ;;  %v4574_v26 = vpack.i.bf16 %v3444_v21, %v5326_v46  ;;  %v4579_v29 = vpack.i.bf16 %v3472_v22, %v3444_v21 }
  0x8c   :  { %v622_v33 = vpack.c.bf16 %v595_v32, %v594_v31  ;;  %v4252_v4 = vld [vmem:[%s6728_s4 + $0x20] sm:$0xff]  ;;  %1348 = vmatpush.bf16.msrb.mxu1 %v4242_v25 }
  0x8d   :  { %1593 = vmatpush.bf16.msrb.mxu0 %v4252_v4 }
  0x8e   :  { %3617 = vmatmul.msk.bf16.gmra.mxu1 %vm531_vm0, %v635_v2  ;;  %3631 = vmatmul.msk.bf16.gmra.mxu3 %vm531_vm0, %v635_v2  ;;  %v4426_v36 = vpop.permute.xlu0 %4425 }
  0x8f   :  { %v4428_v0 = vunpack.i.h.bf16 %v4426_v36  ;;  %v4427_v37 = vunpack.i.l.bf16 %v4426_v36  ;;  %v4431_v40 = vpop.permute.xlu1 %4430  ;;  %4565 = vrot.lane.b32.xlu1 %v4564_v50, %s4806_s25  ;;  %4575 = vrot.lane.b32.xlu0 %v4574_v26, %s4804_s17 }
  0x90   :  { %v4433_v53 = vunpack.i.h.bf16 %v4431_v40  ;;  %v4432_v54 = vunpack.i.l.bf16 %v4431_v40  ;;  %4570 = vrot.lane.b32.xlu2 %v4574_v26, %s4805_s24 }
  0x91   :  { %v5308_v30 = vpop.f32.mrf.mxu3  ;;  %v538_v57 = vsel %vm531_vm0, %v4955_v20, %v4427_v37  ;;  %v539_v58 = vsel %vm531_vm0, %v4967_v24, %v4428_v0 }
  0x92   :  { %v567_v1 = vsel %vm560_vm2, %v538_v57, %v4432_v54  ;;  %v568_v20 = vsel %vm560_vm2, %v539_v58, %v4433_v53 }
  0x93   :  { %v5285_v11 = vpop.f32.mrf.mxu1  ;;  %v597_v8 = vsel %vm589_vm3, %v568_v20, %v4438_v61  ;;  %v641_v61 = vpack.c.bf16 %v5326_v46, %v5321_v45 }
  0x95   :  { %827 = vmatmul.bf16.gmra.mxu0 %v620_v62  ;;  %985 = vmatmul.bf16.gmra.mxu2 %v620_v62  ;;  %v4437_v62 = vunpack.i.l.bf16 %v4436_v55 }
  0x96   :  { %v4441_v14 = vpop.permute.xlu0 %4440 }
  0x97   :  { %v596_v24 = vsel %vm589_vm3, %v567_v1, %v4437_v62  ;;  %v4443_v15 = vunpack.i.h.bf16 %v4441_v14  ;;  %v4442_v16 = vunpack.i.l.bf16 %v4441_v14  ;;  %v4446_v17 = vpop.permute.xlu1 %4445  ;;  %4580 = vrot.lane.b32.xlu1 %v4579_v29, %s4806_s25  ;;  %v3500_v1 = vld [vmem:[%s6725_s0 + $0xf0] sm:$0xff] }
  0x98   :  { %v624_v12 = vpack.c.bf16 %v597_v8, %v596_v24  ;;  %v4448_v31 = vunpack.i.h.bf16 %v4446_v17  ;;  %v4447_v32 = vunpack.i.l.bf16 %v4446_v17  ;;  %v4584_v20 = vpack.i.bf16 %v3500_v1, %v3472_v22 }
  0x99   :  { %v5316_v42 = vpop.f32.mrf.mxu3  ;;  %v540_v36 = vsel %vm531_vm0, %v4983_v28, %v4442_v16  ;;  %v541_v0 = vsel %vm531_vm0, %v4998_v34, %v4443_v15 }
  0x9a   :  { %v569_v28 = vsel %vm560_vm2, %v540_v36, %v4447_v32  ;;  %v570_v48 = vsel %vm560_vm2, %v541_v0, %v4448_v31  ;;  %4585 = vrot.lane.b32.xlu2 %v4584_v20, %s4805_s24  ;;  %v643_v0 = vpack.c.bf16 %v3472_v22, %v3444_v21  ;;  %s4808_s24 = smov 40  }
  0x9b   :  { %v5310_v5 = vpop.f32.mrf.mxu1 }
  0x9e   :  { %3618 = vmatmul.msk.bf16.gmra.mxu1 %vm531_vm0, %v637_v41  ;;  %3632 = vmatmul.msk.bf16.gmra.mxu3 %vm531_vm0, %v637_v41  ;;  %v4456_v53 = vpop.permute.xlu0 %4455 }
  0x9f   :  { %v4458_v55 = vunpack.i.h.bf16 %v4456_v53  ;;  %v4457_v57 = vunpack.i.l.bf16 %v4456_v53  ;;  %v4461_v58 = vpop.permute.xlu1 %4460 }
  0xa0   :  { %v4463_v24 = vunpack.i.h.bf16 %v4461_v58  ;;  %v4462_v8 = vunpack.i.l.bf16 %v4461_v58 }
  0xa1   :  { %v5351_v7 = vpop.f32.mrf.mxu3  ;;  %v542_v14 = vsel %vm531_vm0, %v5003_v35, %v4457_v57  ;;  %v543_v15 = vsel %vm531_vm0, %v5016_v39, %v4458_v55 }
  0xa2   :  { %v572_v25 = vsel %vm560_vm2, %v543_v15, %v4463_v24 }
  0xa3   :  { %v5328_v47 = vpop.f32.mrf.mxu1 }
  0xa5   :  { %832 = vmatmul.bf16.gmra.mxu0 %v622_v33  ;;  %990 = vmatmul.bf16.gmra.mxu2 %v622_v33  ;;  %v4451_v33 = vpop.permute.xlu2 %4450 }
  0xa6   :  { %v4453_v40 = vunpack.i.h.bf16 %v4451_v33  ;;  %v4452_v41 = vunpack.i.l.bf16 %v4451_v33  ;;  %v4471_v31 = vpop.permute.xlu0 %4470 }
  0xa7   :  { %v4473_v32 = vunpack.i.h.bf16 %v4471_v31  ;;  %v4472_v33 = vunpack.i.l.bf16 %v4471_v31  ;;  %v4476_v36 = vpop.permute.xlu1 %4475 }
  0xa8   :  { %v598_v49 = vsel %vm589_vm3, %v569_v28, %v4452_v41  ;;  %v599_v50 = vsel %vm589_vm3, %v570_v48, %v4453_v40  ;;  %v4241_v41 = vld [vmem:[%s6727_s3 + $0x18] sm:$0xff]  ;;  %v4478_v48 = vunpack.i.h.bf16 %v4476_v36 }
  0xa9   :  { %v5359_v19 = vpop.f32.mrf.mxu3  ;;  %v626_v52 = vpack.c.bf16 %v599_v50, %v598_v49  ;;  %v4251_v28 = vld [vmem:[%s6728_s4 + $0x18] sm:$0xff]  ;;  %v4477_v49 = vunpack.i.l.bf16 %v4476_v36  ;;  %1349 = vmatpush.bf16.msrb.mxu1 %v4241_v41  ;;  %v544_v21 = vsel %vm531_vm0, %v5033_v43, %v4472_v33  ;;  %v545_v22 = vsel %vm531_vm0, %v5072_v59, %v4473_v32 }
  0xaa   :  { %1594 = vmatpush.bf16.msrb.mxu0 %v4251_v28  ;;  %v574_v58 = vsel %vm560_vm2, %v545_v22, %v4478_v48  ;;  %v4239_v28 = vld [vmem:[%s6727_s3 + $0x8] sm:$0xff] }
  0xab   :  { %v5355_v2 = vpop.f32.mrf.mxu1  ;;  %v573_v57 = vsel %vm560_vm2, %v544_v21, %v4477_v49  ;;  %v4238_v21 = vld [vmem:[%s6727_s3] sm:$0xff] }
  0xae   :  { %3619 = vmatmul.msk.bf16.gmra.mxu1 %vm531_vm0, %v639_v18  ;;  %3633 = vmatmul.msk.bf16.gmra.mxu3 %vm531_vm0, %v639_v18  ;;  %v571_v18 = vsel %vm560_vm2, %v542_v14, %v4462_v8  ;;  %v4486_v8 = vpop.permute.xlu0 %4485 }
  0xaf   :  { %v4488_v59 = vunpack.i.h.bf16 %v4486_v8  ;;  %v4487_v14 = vunpack.i.l.bf16 %v4486_v8  ;;  %v4491_v15 = vpop.permute.xlu1 %4490 }
  0xb1   :  { %v5387_v34 = vpop.f32.mrf.mxu3 }
  0xb3   :  { %v5381_v37 = vpop.f32.mrf.mxu1 }
  0xb5   :  { %837 = vmatmul.bf16.gmra.mxu0 %v624_v12  ;;  %995 = vmatmul.bf16.gmra.mxu2 %v624_v12  ;;  %v4466_v12 = vpop.permute.xlu2 %4465 }
  0xb6   :  { %v4468_v16 = vunpack.i.h.bf16 %v4466_v12  ;;  %v4467_v17 = vunpack.i.l.bf16 %v4466_v12  ;;  %v4501_v49 = vpop.permute.xlu0 %4500 }
  0xb7   :  { %v4503_v22 = vunpack.i.h.bf16 %v4501_v49 }
  0xb8   :  { %v600_v35 = vsel %vm589_vm3, %v571_v18, %v4467_v17  ;;  %v601_v39 = vsel %vm589_vm3, %v572_v25, %v4468_v16  ;;  %v3528_v16 = vld [vmem:[%s6725_s0 + $0xf8] sm:$0xff]  ;;  %v4493_v18 = vunpack.i.h.bf16 %v4491_v15  ;;  %v4492_v25 = vunpack.i.l.bf16 %v4491_v15 }
  0xb9   :  { %v5395_v62 = vpop.f32.mrf.mxu3  ;;  %v628_v4 = vpack.c.bf16 %v601_v39, %v600_v35  ;;  %v645_v17 = vpack.c.bf16 %v3528_v16, %v3500_v1  ;;  %v546_v39 = vsel %vm531_vm0, %v5083_v3, %v4487_v14  ;;  %v4240_v3 = vld [vmem:[%s6727_s3 + $0x10] sm:$0xff]  ;;  %v549_v8 = vsel %vm531_vm0, %v5141_v27, %v4503_v22  ;;  %v4246_v14 = vld [vmem:[%s6727_s3 + $0x40] sm:$0xff] }
  0xba   :  { %v575_v36 = vsel %vm560_vm2, %v546_v39, %v4492_v25  ;;  %1350 = vmatpush.bf16.msrb.mxu1 %v4240_v3  ;;  %1431 = vmatpush.bf16.msrb.mxu3 %v4246_v14 }
  0xbb   :  { %v5391_v54 = vpop.f32.mrf.mxu1 }
  0xbd   :  { %v4481_v50 = vpop.permute.xlu2 %4480 }
  0xbe   :  { %3620 = vmatmul.msk.bf16.gmra.mxu1 %vm531_vm0, %v641_v61  ;;  %3634 = vmatmul.msk.bf16.gmra.mxu3 %vm531_vm0, %v641_v61  ;;  %v4483_v53 = vunpack.i.h.bf16 %v4481_v50  ;;  %v4482_v55 = vunpack.i.l.bf16 %v4481_v50 }
  0xbf   :  { %1351 = vmatpush.bf16.msrb.mxu1 %v4239_v28 }
  0xc0   :  { %v602_v61 = vsel %vm589_vm3, %v573_v57, %v4482_v55  ;;  %v603_v20 = vsel %vm589_vm3, %v574_v58, %v4483_v53  ;;  %v4502_v53 = vunpack.i.l.bf16 %v4501_v49  ;;  %v4506_v55 = vpop.permute.xlu1 %4505 }
  0xc1   :  { %v5411_v29 = vpop.f32.mrf.mxu3  ;;  %v630_v43 = vpack.c.bf16 %v603_v20, %v602_v61  ;;  %v4508_v58 = vunpack.i.h.bf16 %v4506_v55  ;;  %v4507_v61 = vunpack.i.l.bf16 %v4506_v55 }
  0xc3   :  { %v5409_v26 = vpop.f32.mrf.mxu1  ;;  %1352 = vmatpush.bf16.msrb.mxu1 %v4238_v21 }
  0xc5   :  { %842 = vmatmul.bf16.gmra.mxu0 %v626_v52  ;;  %1000 = vmatmul.bf16.gmra.mxu2 %v626_v52  ;;  %v4496_v35 = vpop.permute.xlu2 %4495 }
  0xc6   :  { %v4498_v32 = vunpack.i.h.bf16 %v4496_v35  ;;  %v4497_v33 = vunpack.i.l.bf16 %v4496_v35  ;;  %v666_v35 = vld [vmem:[%s6729_s2] sm:$0x3]  ;;  %s4807_s2 = smov 84  }
  0xc8   :  { %v4521_v28 = vpop.permute.xlu1 %4520 }
  0xc9   :  { %v5415_v40 = vpop.f32.mrf.mxu3  ;;  %v4523_v49 = vunpack.i.h.bf16 %v4521_v28  ;;  %v4522_v21 = vunpack.i.l.bf16 %v4521_v28 }
  0xcb   :  { %v5423_v52 = vpop.f32.mrf.mxu1 }
  0xcd   :  { %v4511_v20 = vpop.permute.xlu2 %4510 }
  0xce   :  { %3621 = vmatmul.msk.bf16.gmra.mxu1 %vm531_vm0, %v643_v0  ;;  %3635 = vmatmul.msk.bf16.gmra.mxu3 %vm531_vm0, %v643_v0  ;;  %v4513_v15 = vunpack.i.h.bf16 %v4511_v20  ;;  %v4512_v16 = vunpack.i.l.bf16 %v4511_v20 }
  0xd1   :  { %v5435_v24 = vpop.f32.mrf.mxu3 }
  0xd3   :  { %v5437_v12 = vpop.f32.mrf.mxu1 }
  0xd5   :  { %847 = vmatmul.bf16.gmra.mxu0 %v628_v4  ;;  %1005 = vmatmul.bf16.gmra.mxu2 %v628_v4  ;;  %v547_v4 = vsel %vm531_vm0, %v5104_v13, %v4488_v59  ;;  %v604_v13 = vsel %vm589_vm3, %v575_v36, %v4497_v33  ;;  %v4516_v33 = vpop.permute.xlu0 %4515  ;;  %v4526_v22 = vpop.permute.xlu2 %4525 }
  0xd6   :  { %v576_v1 = vsel %vm560_vm2, %v547_v4, %v4493_v18  ;;  %v578_v18 = vsel %vm560_vm2, %v549_v8, %v4508_v58  ;;  %v4256_v4 = vld [vmem:[%s6728_s4 + $0x40] sm:$0xff]  ;;  %v4528_v14 = vunpack.i.h.bf16 %v4526_v22 }
  0xd7   :  { %v605_v41 = vsel %vm589_vm3, %v576_v1, %v4498_v32  ;;  %v607_v27 = vsel %vm589_vm3, %v578_v18, %v4513_v15  ;;  %1676 = vmatpush.bf16.msrb.mxu2 %v4256_v4  ;;  %v5495_v1 = vperm.slane %v666_v35, 0  ;;  %v4527_v15 = vunpack.i.l.bf16 %v4526_v22 }
  0xd8   :  { %v632_v48 = vpack.c.bf16 %v605_v41, %v604_v13  ;;  %v4518_v13 = vunpack.i.h.bf16 %v4516_v33  ;;  %v4517_v41 = vunpack.i.l.bf16 %v4516_v33 }
  0xd9   :  { %v5447_v31 = vpop.f32.mrf.mxu3 }
  0xda   :  { %v550_v58 = vsel %vm531_vm0, %v5189_v56, %v4517_v41 }
  0xdb   :  { %v5452_v0 = vpop.f32.mrf.mxu1 }
  0xdd   :  { %v4531_v33 = vpop.permute.xlu0 %4530 }
  0xde   :  { %3622 = vmatmul.msk.bf16.gmra.mxu1 %vm531_vm0, %v645_v17  ;;  %3636 = vmatmul.msk.bf16.gmra.mxu3 %vm531_vm0, %v645_v17 }
  0xe1   :  { %v5462_v50 = vpop.f32.mrf.mxu3 }
  0xe3   :  { %v5467_v57 = vpop.f32.mrf.mxu1 }
  0xe5   :  { %852 = vmatmul.bf16.gmra.mxu0 %v630_v43  ;;  %1010 = vmatmul.bf16.gmra.mxu2 %v630_v43  ;;  %v548_v43 = vsel %vm531_vm0, %v5133_v23, %v4502_v53  ;;  %v4250_v23 = vld [vmem:[%s6728_s4 + $0x10] sm:$0xff]  ;;  %v5498_v53 = vperm.slane %v666_v35, 1 }
  0xe6   :  { %v577_v17 = vsel %vm560_vm2, %v548_v43, %v4507_v61  ;;  %1595 = vmatpush.bf16.msrb.mxu0 %v4250_v23  ;;  %v551_v61 = vsel %vm531_vm0, %v5196_v60, %v4518_v13 }
  0xe7   :  { %v606_v25 = vsel %vm589_vm3, %v577_v17, %v4512_v16  ;;  %v579_v17 = vsel %vm560_vm2, %v550_v58, %v4522_v21  ;;  %v580_v18 = vsel %vm560_vm2, %v551_v61, %v4523_v49  ;;  %v4536_v49 = vpop.permute.xlu1 %4535 }
  0xe8   :  { %v634_v32 = vpack.c.bf16 %v607_v27, %v606_v25  ;;  %v608_v60 = vsel %vm589_vm3, %v579_v17, %v4527_v15  ;;  %v4538_v58 = vunpack.i.h.bf16 %v4536_v49  ;;  %v4537_v61 = vunpack.i.l.bf16 %v4536_v49 }
  0xe9   :  { %v5473_v59 = vpop.f32.mrf.mxu3 }
  0xeb   :  { %v5488_v39 = vpop.f32.mrf.mxu1 }
  0xf1   :  { %v5493_v36 = vpop.f32.mrf.mxu3 }
  0xf3   :  { %v5504_v20 = vpop.f32.mrf.mxu1 }
  0xf5   :  { %857 = vmatmul.bf16.gmra.mxu0 %v632_v48  ;;  %1015 = vmatmul.bf16.gmra.mxu2 %v632_v48 }
  0xf9   :  { %v5510_v23 = vpop.f32.mrf.mxu3 }
  0xfb   :  { %v5519_v41 = vpop.f32.mrf.mxu1 }
 0x102   :  { %v823_v3 = vpop.f32.mrf.mxu0 }
 0x103   :  { %v824_v48 = vadd.f32 %v823_v3, %v5495_v1 }
 0x105   :  { %862 = vmatmul.bf16.gmra.mxu0 %v634_v32  ;;  %1020 = vmatmul.bf16.gmra.mxu2 %v634_v32  ;;  %v903_v43 = vadd.f32 %v5267_v51, %v824_v48  ;;  %v609_v51 = vsel %vm589_vm3, %v580_v18, %v4528_v14  ;;  %v4532_v48 = vunpack.i.l.bf16 %v4531_v33 }
 0x106   :  { %v636_v32 = vpack.c.bf16 %v609_v51, %v608_v60 }
 0x107   :  { %4692 = vtanh.f32 %v903_v43  ;;  %v4249_v43 = vld [vmem:[%s6728_s4 + $0x8] sm:$0xff]  ;;  %v552_v14 = vsel %vm531_vm0, %v5210_v63, %v4532_v48 }
 0x108   :  { %v981_v55 = vpop.f32.mrf.mxu2  ;;  %1596 = vmatpush.bf16.msrb.mxu0 %v4249_v43 }
 0x109   :  { %v982_v56 = vadd.f32 %v981_v55, %v5498_v53 }
 0x10a   :  { %v825_v8 = vpop.f32.mrf.mxu0 }
 0x10b   :  { %v826_v16 = vadd.f32 %v825_v8, %v5495_v1  ;;  %v1061_v27 = vadd.f32 %v5308_v30, %v982_v56  ;;  %v5521_v30 = vpop.f32.mrf.mxu3 }
 0x10d   :  { %v905_v25 = vadd.f32 %v5285_v11, %v826_v16  ;;  %v4693_v28 = vpop.eup %4692  ;;  %v4533_v11 = vunpack.i.h.bf16 %v4531_v33 }
 0x10f   :  { %4694 = vtanh.f32 %v905_v25  ;;  %v553_v15 = vsel %vm531_vm0, %v5215_v6, %v4533_v11 }
 0x110   :  { %v983_v35 = vpop.f32.mrf.mxu2  ;;  %4696 = vtanh.f32 %v1061_v27  ;;  %v581_v27 = vsel %vm560_vm2, %v552_v14, %v4537_v61 }
 0x111   :  { %v984_v4 = vadd.f32 %v983_v35, %v5498_v53  ;;  %v582_v35 = vsel %vm560_vm2, %v553_v15, %v4538_v58 }
 0x112   :  { %v828_v3 = vpop.f32.mrf.mxu0 }
 0x113   :  { %v1063_v13 = vadd.f32 %v5316_v42, %v984_v4  ;;  %v829_v22 = vadd.f32 %v828_v3, %v5495_v1  ;;  %v4541_v42 = vpop.permute.xlu2 %4540  ;;  %v5548_v3 = vpop.f32.mrf.mxu3 }
 0x114   :  { %v4543_v56 = vunpack.i.h.bf16 %v4541_v42  ;;  %v4542_v25 = vunpack.i.l.bf16 %v4541_v42  ;;  %v4551_v42 = vpop.permute.xlu1 %4550 }
 0x115   :  { %v4695_v21 = vpop.eup %4694  ;;  %4698 = vtanh.f32 %v1063_v13  ;;  %867 = vmatmul.bf16.gmra.mxu0 %v636_v32  ;;  %1025 = vmatmul.bf16.gmra.mxu2 %v636_v32  ;;  %v908_v17 = vadd.f32 %v5310_v5, %v829_v22  ;;  %v5542_v32 = vpop.f32.mrf.mxu1  ;;  %v4553_v14 = vunpack.i.h.bf16 %v4551_v42  ;;  %v4552_v15 = vunpack.i.l.bf16 %v4551_v42 }
 0x116   :  { %v5524_v55 = vpack.c.bf16 %v4695_v21, %v4693_v28  ;;  %v4697_v16 = vpop.eup %4696  ;;  %v610_v5 = vsel %vm589_vm3, %v581_v27, %v4542_v25  ;;  %v611_v33 = vsel %vm589_vm3, %v582_v35, %v4543_v56 }
 0x117   :  { %4700 = vtanh.f32 %v908_v17  ;;  %v638_v48 = vpack.c.bf16 %v611_v33, %v610_v5 }
 0x118   :  { %v986_v8 = vpop.f32.mrf.mxu2  ;;  %1353 = vmatmul.bf16.vlgmr.msrb.gmra.mxu1 %v5524_v55 }
 0x119   :  { %v987_v63 = vadd.f32 %v986_v8, %v5498_v53 }
 0x11a   :  { %v830_v18 = vpop.f32.mrf.mxu0 }
 0x11b   :  { %v4699_v60 = vpop.eup %4698  ;;  %v831_v51 = vadd.f32 %v830_v18, %v5495_v1  ;;  %v1066_v13 = vadd.f32 %v5351_v7, %v987_v63  ;;  %v5563_v25 = vpop.f32.mrf.mxu3 }
 0x11c   :  { %v5538_v4 = vpack.c.bf16 %v4699_v60, %v4697_v16  ;;  %v4556_v16 = vpop.permute.xlu2 %4555 }
 0x11d   :  { %v910_v6 = vadd.f32 %v5328_v47, %v831_v51  ;;  %v4546_v47 = vpop.permute.xlu0 %4545  ;;  %v4701_v22 = vpop.eup %4700  ;;  %v4558_v35 = vunpack.i.h.bf16 %v4556_v16  ;;  %v4557_v63 = vunpack.i.l.bf16 %v4556_v16 }
 0x11e   :  { %3677 = vmatmul.msk.bf16.vlgmr.msrb.gmra.mxu3 %vm1298_vm4, %v5538_v4  ;;  %v4548_v58 = vunpack.i.h.bf16 %v4546_v47  ;;  %v4547_v61 = vunpack.i.l.bf16 %v4546_v47  ;;  %v5556_v17 = vpop.f32.mrf.mxu1  ;;  %v4566_v16 = vpop.permute.xlu1 %4565 }
 0x11f   :  { %4702 = vtanh.f32 %v910_v6 }
 0x120   :  { %v988_v28 = vpop.f32.mrf.mxu2  ;;  %4704 = vtanh.f32 %v1066_v13  ;;  %v555_v56 = vsel %vm531_vm0, %v5254_v44, %v4548_v58 }
 0x121   :  { %v989_v11 = vadd.f32 %v988_v28, %v5498_v53  ;;  %v584_v13 = vsel %vm560_vm2, %v555_v56, %v4553_v14  ;;  %v4568_v56 = vunpack.i.h.bf16 %v4566_v16 }
 0x122   :  { %v833_v49 = vpop.f32.mrf.mxu0 }
 0x123   :  { %v1068_v21 = vadd.f32 %v5359_v19, %v989_v11  ;;  %v834_v8 = vadd.f32 %v833_v49, %v5495_v1  ;;  %v554_v19 = vsel %vm531_vm0, %v5247_v38, %v4547_v61  ;;  %v613_v11 = vsel %vm589_vm3, %v584_v13, %v4558_v35 }
 0x124   :  { %v583_v33 = vsel %vm560_vm2, %v554_v19, %v4552_v15 }
 0x125   :  { %v4703_v43 = vpop.eup %4702  ;;  %4706 = vtanh.f32 %v1068_v21  ;;  %872 = vmatmul.bf16.gmra.mxu0 %v638_v48  ;;  %1030 = vmatmul.bf16.gmra.mxu2 %v638_v48  ;;  %v913_v51 = vadd.f32 %v5355_v2, %v834_v8  ;;  %v612_v2 = vsel %vm589_vm3, %v583_v33, %v4557_v63  ;;  %v4248_v48 = vld [vmem:[%s6728_s4] sm:$0xff]  ;;  %v4561_v58 = vpop.permute.xlu0 %4560 }
 0x126   :  { %v5554_v7 = vpack.c.bf16 %v4703_v43, %v4701_v22  ;;  %v4705_v60 = vpop.eup %4704  ;;  %v640_v22 = vpack.c.bf16 %v613_v11, %v612_v2  ;;  %1597 = vmatpush.bf16.msrb.mxu0 %v4248_v48  ;;  %v5585_v43 = vpop.f32.mrf.mxu3  ;;  %v4563_v14 = vunpack.i.h.bf16 %v4561_v58  ;;  %v4562_v15 = vunpack.i.l.bf16 %v4561_v58 }
 0x127   :  { %4708 = vtanh.f32 %v913_v51  ;;  %v4571_v51 = vpop.permute.xlu2 %4570 }
 0x128   :  { %v991_v18 = vpop.f32.mrf.mxu2  ;;  %1358 = vmatmul.bf16.gmra.mxu1 %v5554_v7  ;;  %v557_v35 = vsel %vm531_vm0, %v5283_v10, %v4563_v14  ;;  %v4573_v33 = vunpack.i.h.bf16 %v4571_v51  ;;  %v4572_v13 = vunpack.i.l.bf16 %v4571_v51 }
 0x129   :  { %v992_v38 = vadd.f32 %v991_v18, %v5498_v53  ;;  %v586_v11 = vsel %vm560_vm2, %v557_v35, %v4568_v56 }
 0x12a   :  { %v835_v27 = vpop.f32.mrf.mxu0 }
 0x12b   :  { %v4707_v6 = vpop.eup %4706  ;;  %v836_v5 = vadd.f32 %v835_v27, %v5495_v1  ;;  %v1071_v47 = vadd.f32 %v5387_v34, %v992_v38 }
 0x12c   :  { %v5570_v28 = vpack.c.bf16 %v4707_v6, %v4705_v60  ;;  %v4567_v60 = vunpack.i.l.bf16 %v4566_v16 }
 0x12d   :  { %v915_v44 = vadd.f32 %v5381_v37, %v836_v5  ;;  %v5582_v37 = vpop.f32.mrf.mxu1  ;;  %v4709_v8 = vpop.eup %4708 }
 0x12e   :  { %3678 = vmatmul.msk.bf16.gmra.mxu3 %vm1298_vm4, %v5570_v28 }
 0x12f   :  { %4710 = vtanh.f32 %v915_v44  ;;  %v4586_v35 = vpop.permute.xlu2 %4585 }
 0x130   :  { %v993_v49 = vpop.f32.mrf.mxu2  ;;  %4712 = vtanh.f32 %v1071_v47 }
 0x131   :  { %v994_v21 = vadd.f32 %v993_v49, %v5498_v53  ;;  %v5605_v49 = vpop.f32.mrf.mxu3 }
 0x132   :  { %v838_v61 = vpop.f32.mrf.mxu0 }
 0x133   :  { %v1073_v42 = vadd.f32 %v5395_v62, %v994_v21  ;;  %v839_v34 = vadd.f32 %v838_v61, %v5495_v1  ;;  %v556_v62 = vsel %vm531_vm0, %v5278_v9, %v4562_v15  ;;  %v615_v21 = vsel %vm589_vm3, %v586_v11, %v4573_v33 }
 0x134   :  { %v585_v2 = vsel %vm560_vm2, %v556_v62, %v4567_v60 }
 0x135   :  { %v4711_v18 = vpop.eup %4710  ;;  %4714 = vtanh.f32 %v1073_v42  ;;  %877 = vmatmul.bf16.gmra.mxu0 %v640_v22  ;;  %1035 = vmatmul.bf16.gmra.mxu2 %v640_v22  ;;  %v918_v6 = vadd.f32 %v5391_v54, %v839_v34  ;;  %v5599_v48 = vpop.f32.mrf.mxu1  ;;  %v614_v54 = vsel %vm589_vm3, %v585_v2, %v4572_v13  ;;  %v4587_v2 = vunpack.i.l.bf16 %v4586_v35 }
 0x136   :  { %v5588_v19 = vpack.c.bf16 %v4711_v18, %v4709_v8  ;;  %v4713_v63 = vpop.eup %4712  ;;  %v642_v42 = vpack.c.bf16 %v615_v21, %v614_v54  ;;  %v4576_v8 = vpop.permute.xlu0 %4575 }
 0x137   :  { %4716 = vtanh.f32 %v918_v6  ;;  %v4578_v16 = vunpack.i.h.bf16 %v4576_v8  ;;  %v4577_v18 = vunpack.i.l.bf16 %v4576_v8  ;;  %v4581_v34 = vpop.permute.xlu1 %4580 }
 0x138   :  { %v996_v27 = vpop.f32.mrf.mxu2  ;;  %1363 = vmatmul.bf16.gmra.mxu1 %v5588_v19  ;;  %v4582_v62 = vunpack.i.l.bf16 %v4581_v34 }
 0x139   :  { %v997_v9 = vadd.f32 %v996_v27, %v5498_v53  ;;  %v4583_v27 = vunpack.i.h.bf16 %v4581_v34  ;;  %v558_v6 = vsel %vm531_vm0, %v5321_v45, %v4577_v18 }
 0x13a   :  { %v840_v5 = vpop.f32.mrf.mxu0 }
 0x13b   :  { %v4715_v38 = vpop.eup %4714  ;;  %v841_v44 = vadd.f32 %v840_v5, %v5495_v1  ;;  %v1076_v22 = vadd.f32 %v5411_v29, %v997_v9  ;;  %v559_v5 = vsel %vm531_vm0, %v5326_v46, %v4578_v16 }
 0x13c   :  { %v5602_v47 = vpack.c.bf16 %v4715_v38, %v4713_v63  ;;  %v5619_v63 = vpop.f32.mrf.mxu3  ;;  %v588_v54 = vsel %vm560_vm2, %v559_v5, %v4583_v27 }
 0x13d   :  { %v920_v10 = vadd.f32 %v5409_v26, %v841_v44  ;;  %v4717_v15 = vpop.eup %4716  ;;  %v5614_v60 = vpop.f32.mrf.mxu1  ;;  %v4588_v44 = vunpack.i.h.bf16 %v4586_v35 }
 0x13e   :  { %3679 = vmatmul.msk.bf16.gmra.mxu3 %vm1298_vm4, %v5602_v47 }
 0x13f   :  { %4718 = vtanh.f32 %v920_v10  ;;  %v587_v10 = vsel %vm560_vm2, %v558_v6, %v4582_v62 }
 0x140   :  { %v998_v58 = vpop.f32.mrf.mxu2  ;;  %4720 = vtanh.f32 %v1076_v22  ;;  %v616_v46 = vsel %vm589_vm3, %v587_v10, %v4587_v2 }
 0x141   :  { %v999_v61 = vadd.f32 %v998_v58, %v5498_v53 }
 0x142   :  { %v843_v14 = vpop.f32.mrf.mxu0 }
 0x143   :  { %v1078_v26 = vadd.f32 %v5415_v40, %v999_v61  ;;  %v844_v29 = vadd.f32 %v843_v14, %v5495_v1 }
 0x145   :  { %v4719_v56 = vpop.eup %4718  ;;  %4722 = vtanh.f32 %v1078_v26  ;;  %882 = vmatmul.bf16.gmra.mxu0 %v642_v42  ;;  %1040 = vmatmul.bf16.gmra.mxu2 %v642_v42  ;;  %v923_v13 = vadd.f32 %v5423_v52, %v844_v29  ;;  %v617_v52 = vsel %vm589_vm3, %v588_v54, %v4588_v44  ;;  %v5638_v58 = vpop.f32.mrf.mxu1 }
 0x146   :  { %v5617_v51 = vpack.c.bf16 %v4719_v56, %v4717_v15  ;;  %v4721_v33 = vpop.eup %4720  ;;  %v644_v14 = vpack.c.bf16 %v617_v52, %v616_v46  ;;  %v5642_v26 = vpop.f32.mrf.mxu3 }
 0x147   :  { %4724 = vtanh.f32 %v923_v13 }
 0x148   :  { %v1001_v40 = vpop.f32.mrf.mxu2  ;;  %1368 = vmatmul.bf16.gmra.mxu1 %v5617_v51 }
 0x149   :  { %v1002_v21 = vadd.f32 %v1001_v40, %v5498_v53 }
 0x14a   :  { %v845_v38 = vpop.f32.mrf.mxu0 }
 0x14b   :  { %v4723_v11 = vpop.eup %4722  ;;  %v846_v9 = vadd.f32 %v845_v38, %v5495_v1  ;;  %v1081_v61 = vadd.f32 %v5435_v24, %v1002_v21 }
 0x14c   :  { %v5631_v22 = vpack.c.bf16 %v4723_v11, %v4721_v33 }
 0x14d   :  { %v925_v45 = vadd.f32 %v5437_v12, %v846_v9  ;;  %v4725_v16 = vpop.eup %4724  ;;  %v5649_v29 = vpop.f32.mrf.mxu1 }
 0x14e   :  { %3680 = vmatmul.msk.bf16.gmra.mxu3 %vm1298_vm4, %v5631_v22  ;;  %v5653_v6 = vpop.f32.mrf.mxu3 }
 0x14f   :  { %4726 = vtanh.f32 %v925_v45 }
 0x150   :  { %v1003_v42 = vpop.f32.mrf.mxu2  ;;  %4728 = vtanh.f32 %v1081_v61 }
 0x151   :  { %v1004_v8 = vadd.f32 %v1003_v42, %v5498_v53 }
 0x152   :  { %v848_v12 = vpop.f32.mrf.mxu0 }
 0x153   :  { %v1083_v15 = vadd.f32 %v5447_v31, %v1004_v8  ;;  %v849_v34 = vadd.f32 %v848_v12, %v5495_v1 }
 0x155   :  { %v4727_v18 = vpop.eup %4726  ;;  %4730 = vtanh.f32 %v1083_v15  ;;  %887 = vmatmul.bf16.gmra.mxu0 %v644_v14  ;;  %1045 = vmatmul.bf16.gmra.mxu2 %v644_v14  ;;  %v928_v62 = vadd.f32 %v5452_v0, %v849_v34  ;;  %v5664_v9 = vpop.f32.mrf.mxu1 }
 0x156   :  { %v5646_v56 = vpack.c.bf16 %v4727_v18, %v4725_v16  ;;  %v4729_v27 = vpop.eup %4728 }
 0x157   :  { %4732 = vtanh.f32 %v928_v62 }
 0x158   :  { %v1006_v24 = vpop.f32.mrf.mxu2  ;;  %1373 = vmatmul.bf16.gmra.mxu1 %v5646_v56 }
 0x159   :  { %v1007_v5 = vadd.f32 %v1006_v24, %v5498_v53 }
 0x15a   :  { %v850_v35 = vpop.f32.mrf.mxu0 }
 0x15b   :  { %v4731_v31 = vpop.eup %4730  ;;  %v851_v40 = vadd.f32 %v850_v35, %v5495_v1  ;;  %v1086_v38 = vadd.f32 %v5462_v50, %v1007_v5 }
 0x15c   :  { %v5656_v33 = vpack.c.bf16 %v4731_v31, %v4729_v27 }
 0x15d   :  { %v930_v13 = vadd.f32 %v5467_v57, %v851_v40  ;;  %v4733_v10 = vpop.eup %4732  ;;  %v5669_v57 = vpop.f32.mrf.mxu3 }
 0x15e   :  { %3681 = vmatmul.msk.bf16.gmra.mxu3 %vm1298_vm4, %v5656_v33  ;;  %v5681_v14 = vpop.f32.mrf.mxu1 }
 0x15f   :  { %4734 = vtanh.f32 %v930_v13 }
 0x160   :  { %v1008_v0 = vpop.f32.mrf.mxu2  ;;  %4736 = vtanh.f32 %v1086_v38 }
 0x161   :  { %v1009_v44 = vadd.f32 %v1008_v0, %v5498_v53 }
 0x162   :  { %v853_v2 = vpop.f32.mrf.mxu0 }
 0x163   :  { %v1088_v11 = vadd.f32 %v5473_v59, %v1009_v44  ;;  %v854_v50 = vadd.f32 %v853_v2, %v5495_v1 }
 0x165   :  { %v4735_v54 = vpop.eup %4734  ;;  %4738 = vtanh.f32 %v1088_v11  ;;  %1598 = vmatmul.bf16.vlgmr.msrb.gmra.mxu0 %v5524_v55  ;;  %3731 = vmatmul.msk.bf16.vlgmr.msrb.gmra.mxu2 %vm1298_vm4, %v5538_v4  ;;  %v933_v46 = vadd.f32 %v5488_v39, %v854_v50  ;;  %v5685_v12 = vpop.f32.mrf.mxu3 }
 0x166   :  { %v5672_v21 = vpack.c.bf16 %v4735_v54, %v4733_v10  ;;  %v4737_v59 = vpop.eup %4736 }
 0x167   :  { %4740 = vtanh.f32 %v933_v46 }
 0x168   :  { %v1011_v45 = vpop.f32.mrf.mxu2  ;;  %1378 = vmatmul.bf16.gmra.mxu1 %v5672_v21 }
 0x169   :  { %v1012_v55 = vadd.f32 %v1011_v45, %v5498_v53 }
 0x16a   :  { %v855_v52 = vpop.f32.mrf.mxu0 }
 0x16b   :  { %v4739_v61 = vpop.eup %4738  ;;  %v856_v42 = vadd.f32 %v855_v52, %v5495_v1  ;;  %v1091_v39 = vadd.f32 %v5493_v36, %v1012_v55  ;;  %v5696_v36 = vpop.f32.mrf.mxu1 }
 0x16c   :  { %v5678_v8 = vpack.c.bf16 %v4739_v61, %v4737_v59 }
 0x16d   :  { %v935_v4 = vadd.f32 %v5504_v20, %v856_v42  ;;  %v4741_v24 = vpop.eup %4740  ;;  %v5699_v31 = vpop.f32.mrf.mxu3 }
 0x16e   :  { %3682 = vmatmul.msk.bf16.gmra.mxu3 %vm1298_vm4, %v5678_v8 }
 0x16f   :  { %4742 = vtanh.f32 %v935_v4 }
 0x170   :  { %v1013_v15 = vpop.f32.mrf.mxu2  ;;  %4744 = vtanh.f32 %v1091_v39 }
 0x171   :  { %v1014_v16 = vadd.f32 %v1013_v15, %v5498_v53 }
 0x172   :  { %v858_v18 = vpop.f32.mrf.mxu0 }
 0x173   :  { %v1093_v34 = vadd.f32 %v5510_v23, %v1014_v16  ;;  %v859_v27 = vadd.f32 %v858_v18, %v5495_v1  ;;  %v5710_v11 = vpop.f32.mrf.mxu1 }
 0x175   :  { %v4743_v20 = vpop.eup %4742  ;;  %4746 = vtanh.f32 %v1093_v34  ;;  %1603 = vmatmul.bf16.gmra.mxu0 %v5554_v7  ;;  %3732 = vmatmul.msk.bf16.gmra.mxu2 %vm1298_vm4, %v5570_v28  ;;  %v938_v40 = vadd.f32 %v5519_v41, %v859_v27  ;;  %v5714_v50 = vpop.f32.mrf.mxu3 }
 0x176   :  { %v5694_v62 = vpack.c.bf16 %v4743_v20, %v4741_v24  ;;  %v4745_v23 = vpop.eup %4744 }
 0x177   :  { %4748 = vtanh.f32 %v938_v40 }
 0x178   :  { %v1016_v35 = vpop.f32.mrf.mxu2  ;;  %1383 = vmatmul.bf16.gmra.mxu1 %v5694_v62 }
 0x179   :  { %v1017_v28 = vadd.f32 %v1016_v35, %v5498_v53 }
 0x17a   :  { %v860_v5 = vpop.f32.mrf.mxu0 }
 0x17b   :  { %v4747_v13 = vpop.eup %4746  ;;  %v861_v7 = vadd.f32 %v860_v5, %v5495_v1  ;;  %v1096_v44 = vadd.f32 %v5521_v30, %v1017_v28  ;;  %v5724_v55 = vpop.f32.mrf.mxu1 }
 0x17c   :  { %v5704_v38 = vpack.c.bf16 %v4747_v13, %v4745_v23 }
 0x17d   :  { %v940_v0 = vadd.f32 %v5542_v32, %v861_v7  ;;  %v4749_v45 = vpop.eup %4748  ;;  %v5731_v15 = vpop.f32.mrf.mxu3 }
 0x17e   :  { %3683 = vmatmul.msk.bf16.gmra.mxu3 %vm1298_vm4, %v5704_v38 }
 0x17f   :  { %4750 = vtanh.f32 %v940_v0 }
 0x180   :  { %v1018_v2 = vpop.f32.mrf.mxu2  ;;  %4752 = vtanh.f32 %v1096_v44 }
 0x181   :  { %v1019_v41 = vadd.f32 %v1018_v2, %v5498_v53 }
 0x182   :  { %v863_v10 = vpop.f32.mrf.mxu0 }
 0x183   :  { %v1098_v54 = vadd.f32 %v5548_v3, %v1019_v41  ;;  %v864_v30 = vadd.f32 %v863_v10, %v5495_v1  ;;  %v5738_v35 = vpop.f32.mrf.mxu1 }
 0x185   :  { %v4751_v32 = vpop.eup %4750  ;;  %4754 = vtanh.f32 %v1098_v54  ;;  %1608 = vmatmul.bf16.gmra.mxu0 %v5588_v19  ;;  %3733 = vmatmul.msk.bf16.gmra.mxu2 %vm1298_vm4, %v5602_v47  ;;  %v943_v3 = vadd.f32 %v5556_v17, %v864_v30  ;;  %v5746_v23 = vpop.f32.mrf.mxu3 }
 0x186   :  { %v5720_v59 = vpack.c.bf16 %v4751_v32, %v4749_v45  ;;  %v4753_v52 = vpop.eup %4752 }
 0x187   :  { %4756 = vtanh.f32 %v943_v3 }
 0x188   :  { %v1021_v46 = vpop.f32.mrf.mxu2  ;;  %1388 = vmatmul.bf16.gmra.mxu1 %v5720_v59 }
 0x189   :  { %v1022_v19 = vadd.f32 %v1021_v46, %v5498_v53 }
 0x18a   :  { %v865_v61 = vpop.f32.mrf.mxu0 }
 0x18b   :  { %v4755_v42 = vpop.eup %4754  ;;  %v866_v4 = vadd.f32 %v865_v61, %v5495_v1  ;;  %v1101_v17 = vadd.f32 %v5563_v25, %v1022_v19 }
 0x18c   :  { %v5728_v39 = vpack.c.bf16 %v4755_v42, %v4753_v52 }
 0x18d   :  { %v945_v47 = vadd.f32 %v5582_v37, %v866_v4  ;;  %v4757_v20 = vpop.eup %4756 }
 0x18e   :  { %3684 = vmatmul.msk.bf16.gmra.mxu3 %vm1298_vm4, %v5728_v39 }
 0x18f   :  { %4758 = vtanh.f32 %v945_v47 }
 0x190   :  { %v1023_v16 = vpop.f32.mrf.mxu2  ;;  %4760 = vtanh.f32 %v1101_v17 }
 0x191   :  { %v1024_v18 = vadd.f32 %v1023_v16, %v5498_v53 }
 0x192   :  { %v868_v34 = vpop.f32.mrf.mxu0 }
 0x193   :  { %v1103_v24 = vadd.f32 %v5585_v43, %v1024_v18  ;;  %v869_v37 = vadd.f32 %v868_v34, %v5495_v1 }
 0x195   :  { %v4759_v27 = vpop.eup %4758  ;;  %4762 = vtanh.f32 %v1103_v24  ;;  %1613 = vmatmul.bf16.gmra.mxu0 %v5617_v51  ;;  %3734 = vmatmul.msk.bf16.gmra.mxu2 %vm1298_vm4, %v5631_v22  ;;  %v948_v5 = vadd.f32 %v5599_v48, %v869_v37  ;;  %v1354_v44 = vpop.f32.mrf.mxu1 }
 0x196   :  { %v5744_v25 = vpack.c.bf16 %v4759_v27, %v4757_v20  ;;  %v4761_v43 = vpop.eup %4760 }
 0x197   :  { %4764 = vtanh.f32 %v948_v5 }
 0x198   :  { %v1026_v40 = vpop.f32.mrf.mxu2  ;;  %1393 = vmatmul.bf16.gmra.mxu1 %v5744_v25 }
 0x199   :  { %v1027_v51 = vadd.f32 %v1026_v40, %v5498_v53 }
 0x19a   :  { %v870_v13 = vpop.f32.mrf.mxu0 }
 0x19b   :  { %v4763_v7 = vpop.eup %4762  ;;  %v871_v28 = vadd.f32 %v870_v13, %v5495_v1  ;;  %v1106_v2 = vadd.f32 %v5605_v49, %v1027_v51 }
 0x19c   :  { %v5752_v0 = vpack.c.bf16 %v4763_v7, %v4761_v43 }
 0x19d   :  { %v950_v22 = vadd.f32 %v5614_v60, %v871_v28  ;;  %v4765_v30 = vpop.eup %4764  ;;  %v1356_v3 = vpop.f32.mrf.mxu1 }
 0x19e   :  { %3685 = vmatmul.msk.bf16.gmra.mxu3 %vm1298_vm4, %v5752_v0 }
 0x19f   :  { %4766 = vtanh.f32 %v950_v22 }
 0x1a0   :  { %v1028_v41 = vpop.f32.mrf.mxu2  ;;  %4768 = vtanh.f32 %v1106_v2 }
 0x1a1   :  { %v1029_v48 = vadd.f32 %v1028_v41, %v5498_v53  ;;  %v1433_v10 = vpop.f32.mrf.mxu3 }
 0x1a2   :  { %v5759_v54 = vadd.f32 %v1433_v10, %v1354_v44  ;;  %v873_v45 = vpop.f32.mrf.mxu0 }
 0x1a3   :  { %v1108_v32 = vadd.f32 %v5619_v63, %v1029_v48  ;;  %v874_v49 = vadd.f32 %v873_v45, %v5495_v1 }
 0x1a5   :  { %v4767_v60 = vpop.eup %4766  ;;  %4770 = vtanh.f32 %v1108_v32  ;;  %1618 = vmatmul.bf16.gmra.mxu0 %v5646_v56  ;;  %3735 = vmatmul.msk.bf16.gmra.mxu2 %vm1298_vm4, %v5656_v33  ;;  %v953_v63 = vadd.f32 %v5638_v58, %v874_v49  ;;  %v5802_v45 = vpop.f32.mrf.mxu1 }
 0x1a6   :  { %v5766_v46 = vpack.c.bf16 %v4767_v60, %v4765_v30  ;;  %v4769_v42 = vpop.eup %4768 }
 0x1a7   :  { %4772 = vtanh.f32 %v953_v63 }
 0x1a8   :  { %v1031_v52 = vpop.f32.mrf.mxu2  ;;  %1398 = vmatmul.bf16.gmra.mxu1 %v5766_v46 }
 0x1a9   :  { %v1435_v61 = vpop.f32.mrf.mxu3  ;;  %v1032_v33 = vadd.f32 %v1031_v52, %v5498_v53 }
 0x1aa   :  { %v5770_v4 = vadd.f32 %v1435_v61, %v1356_v3  ;;  %v875_v19 = vpop.f32.mrf.mxu0 }
 0x1ab   :  { %v4771_v47 = vpop.eup %4770  ;;  %v876_v56 = vadd.f32 %v875_v19, %v5495_v1  ;;  %v1111_v18 = vadd.f32 %v5642_v26, %v1032_v33 }
 0x1ac   :  { %v5774_v17 = vpack.c.bf16 %v4771_v47, %v4769_v42 }
 0x1ad   :  { %v955_v16 = vadd.f32 %v5649_v29, %v876_v56  ;;  %v4773_v27 = vpop.eup %4772  ;;  %v5821_v42 = vpop.f32.mrf.mxu1 }
 0x1ae   :  { %3686 = vmatmul.msk.bf16.gmra.mxu3 %vm1298_vm4, %v5774_v17 }
 0x1af   :  { %4774 = vtanh.f32 %v955_v16 }
 0x1b0   :  { %v1033_v58 = vpop.f32.mrf.mxu2  ;;  %4776 = vtanh.f32 %v1111_v18 }
 0x1b1   :  { %v1034_v34 = vadd.f32 %v1033_v58, %v5498_v53  ;;  %v5800_v48 = vpop.f32.mrf.mxu3 }
 0x1b2   :  { %v878_v24 = vpop.f32.mrf.mxu0 }
 0x1b3   :  { %v1113_v20 = vadd.f32 %v5653_v6, %v1034_v34  ;;  %v879_v29 = vadd.f32 %v878_v24, %v5495_v1 }
 0x1b5   :  { %v4775_v37 = vpop.eup %4774  ;;  %4778 = vtanh.f32 %v1113_v20  ;;  %1623 = vmatmul.bf16.gmra.mxu0 %v5672_v21  ;;  %3736 = vmatmul.msk.bf16.gmra.mxu2 %vm1298_vm4, %v5678_v8  ;;  %v958_v5 = vadd.f32 %v5664_v9, %v879_v29  ;;  %v5835_v34 = vpop.f32.mrf.mxu1 }
 0x1b6   :  { %v5786_v40 = vpack.c.bf16 %v4775_v37, %v4773_v27  ;;  %v4777_v43 = vpop.eup %4776 }
 0x1b7   :  { %4780 = vtanh.f32 %v958_v5 }
 0x1b8   :  { %v1036_v26 = vpop.f32.mrf.mxu2  ;;  %1403 = vmatmul.bf16.gmra.mxu1 %v5786_v40 }
 0x1b9   :  { %v1037_v28 = vadd.f32 %v1036_v26, %v5498_v53  ;;  %v5817_v61 = vpop.f32.mrf.mxu3 }
 0x1ba   :  { %v880_v6 = vpop.f32.mrf.mxu0 }
 0x1bb   :  { %v4779_v13 = vpop.eup %4778  ;;  %v881_v7 = vadd.f32 %v880_v6, %v5495_v1  ;;  %v1116_v51 = vadd.f32 %v5669_v57, %v1037_v28 }
 0x1bc   :  { %v5792_v21 = vpack.c.bf16 %v4779_v13, %v4777_v43 }
 0x1bd   :  { %v960_v8 = vadd.f32 %v5681_v14, %v881_v7  ;;  %v4781_v41 = vpop.eup %4780 }
 0x1be   :  { %3687 = vmatmul.msk.bf16.gmra.mxu3 %vm1298_vm4, %v5792_v21 }
 0x1bf   :  { %4782 = vtanh.f32 %v960_v8 }
 0x1c0   :  { %v1038_v22 = vpop.f32.mrf.mxu2  ;;  %4784 = vtanh.f32 %v1116_v51 }
 0x1c1   :  { %v1039_v9 = vadd.f32 %v1038_v22, %v5498_v53 }
 0x1c2   :  { %v883_v44 = vpop.f32.mrf.mxu0 }
 0x1c3   :  { %v1118_v2 = vadd.f32 %v5685_v12, %v1039_v9  ;;  %v884_v57 = vadd.f32 %v883_v44, %v5495_v1 }
 0x1c5   :  { %v4783_v10 = vpop.eup %4782  ;;  %4786 = vtanh.f32 %v1118_v2  ;;  %1628 = vmatmul.bf16.gmra.mxu0 %v5694_v62  ;;  %3737 = vmatmul.msk.bf16.gmra.mxu2 %vm1298_vm4, %v5704_v38  ;;  %v963_v30 = vadd.f32 %v5696_v36, %v884_v57 }
 0x1c6   :  { %v5808_v14 = vpack.c.bf16 %v4783_v10, %v4781_v41  ;;  %v4785_v12 = vpop.eup %4784 }
 0x1c7   :  { %4788 = vtanh.f32 %v963_v30 }
 0x1c8   :  { %v1041_v32 = vpop.f32.mrf.mxu2  ;;  %1408 = vmatmul.bf16.gmra.mxu1 %v5808_v14 }
 0x1c9   :  { %v1042_v3 = vadd.f32 %v1041_v32, %v5498_v53 }
 0x1ca   :  { %v885_v60 = vpop.f32.mrf.mxu0 }
 0x1cb   :  { %v4787_v49 = vpop.eup %4786  ;;  %v886_v52 = vadd.f32 %v885_v60, %v5495_v1  ;;  %v1121_v36 = vadd.f32 %v5699_v31, %v1042_v3  ;;  %v5832_v31 = vpop.f32.mrf.mxu3  ;;  %v3867_v60 = vld [vmem:[%s6730_s5 + $0xf0] sm:$0xf] }
 0x1cc   :  { %v5814_v62 = vpack.c.bf16 %v4787_v49, %v4785_v12 }
 0x1cd   :  { %v965_v38 = vadd.f32 %v5710_v11, %v886_v52  ;;  %v4789_v33 = vpop.eup %4788 }
 0x1ce   :  { %3688 = vmatmul.msk.bf16.gmra.mxu3 %vm1298_vm4, %v5814_v62 }
 0x1cf   :  { %4790 = vtanh.f32 %v965_v38  ;;  %v3803_v38 = vld [vmem:[%s6730_s5 + $0x70] sm:$0xf] }
 0x1d0   :  { %v1043_v63 = vpop.f32.mrf.mxu2  ;;  %4792 = vtanh.f32 %v1121_v36  ;;  %v4273_v36 = vld [vmem:[%s6730_s5 + $0x74] sm:$0xf0] }
 0x1d1   :  { %v1044_v19 = vadd.f32 %v1043_v63, %v5498_v53  ;;  %v5899_v63 = vld [vmem:[%s6730_s5 + $0x1a0] sm:$0x33] }
 0x1d2   :  { %v888_v47 = vpop.f32.mrf.mxu0 }
 0x1d3   :  { %v1123_v56 = vadd.f32 %v5714_v50, %v1044_v19  ;;  %v889_v16 = vadd.f32 %v888_v47, %v5495_v1  ;;  %v5847_v5 = vpop.f32.mrf.mxu3  ;;  %v3804_v19 = vor.u32 %v4273_v36, %v3803_v38  ;;  %v2202_v47 = vunpack.c.l.b16 %v5899_v63 }
 0x1d5   :  { %v4791_v11 = vpop.eup %4790  ;;  %4794 = vtanh.f32 %v1123_v56  ;;  %1633 = vmatmul.bf16.gmra.mxu0 %v5720_v59  ;;  %3738 = vmatmul.msk.bf16.gmra.mxu2 %vm1298_vm4, %v5728_v39  ;;  %v968_v24 = vadd.f32 %v5724_v55, %v889_v16 }
 0x1d6   :  { %v5830_v18 = vpack.c.bf16 %v4791_v11, %v4789_v33  ;;  %v4793_v50 = vpop.eup %4792  ;;  %2333 = vmatpush.bf16.msra.mxu1 %v3804_v19  ;;  %v2256_v11 = vpack.c.b16 %v2202_v47, %v2202_v47 }
 0x1d7   :  { %4796 = vtanh.f32 %v968_v24 }
 0x1d8   :  { %v1046_v58 = vpop.f32.mrf.mxu2  ;;  %1413 = vmatmul.bf16.gmra.mxu1 %v5830_v18 }
 0x1d9   :  { %v1047_v39 = vadd.f32 %v1046_v58, %v5498_v53 }
 0x1da   :  { %v890_v20 = vpop.f32.mrf.mxu0 }
 0x1db   :  { %v4795_v27 = vpop.eup %4794  ;;  %v891_v59 = vadd.f32 %v890_v20, %v5495_v1  ;;  %v1126_v26 = vadd.f32 %v5731_v15, %v1047_v39  ;;  %v5849_v1 = vpop.f32.mrf.mxu1 }
 0x1dc   :  { %v5840_v37 = vpack.c.bf16 %v4795_v27, %v4793_v50  ;;  %v5859_v9 = vpop.f32.mrf.mxu3  ;;  %v2328_v50 = vsel %vm2326_vm5, %v2256_v11, 0  ;;  %v1441_v27 = vadd.f32 %v5817_v61, %v5821_v42 }
 0x1dd   :  { %v970_v29 = vadd.f32 %v5738_v35, %v891_v59  ;;  %v4797_v7 = vpop.eup %4796  ;;  %2440 = vmatpush.bf16.msra.mxu2 %v2328_v50 }
 0x1de   :  { %3689 = vmatmul.msk.bf16.gmra.mxu3 %vm1298_vm4, %v5840_v37 }
 0x1df   :  { %4798 = vtanh.f32 %v970_v29  ;;  %v1439_v29 = vadd.f32 %v5800_v48, %v5802_v45 }
 0x1e0   :  { %v1048_v43 = vpop.f32.mrf.mxu2  ;;  %4800 = vtanh.f32 %v1126_v26 }
 0x1e1   :  { %v1049_v55 = vadd.f32 %v1048_v43, %v5498_v53  ;;  %v1444_v43 = vadd.f32 %v5832_v31, %v5835_v34 }
 0x1e2   :  { %v1599_v6 = vpop.f32.mrf.mxu0 }
 0x1e3   :  { %v1128_v13 = vadd.f32 %v5746_v23, %v1049_v55  ;;  %v5863_v2 = vpop.f32.mrf.mxu1  ;;  %v1446_v55 = vadd.f32 %v5847_v5, %v5849_v1  ;;  %v3859_v5 = vld [vmem:[%s6730_s5 + $0xe0] sm:$0xf]  ;;  %v4287_v1 = vld [vmem:[%s6730_s5 + $0xe4] sm:$0xf0] }
 0x1e5   :  { %v4799_v35 = vpop.eup %4798  ;;  %4802 = vtanh.f32 %v1128_v13  ;;  %1638 = vmatmul.bf16.gmra.mxu0 %v5744_v25  ;;  %3739 = vmatmul.msk.bf16.gmra.mxu2 %vm1298_vm4, %v5752_v0 }
 0x1e6   :  { %v5855_v15 = vpack.c.bf16 %v4799_v35, %v4797_v7  ;;  %v4801_v8 = vpop.eup %4800 }
 0x1e8   :  { %1418 = vmatmul.bf16.gmra.mxu1 %v5855_v15  ;;  %v1678_v53 = vpop.f32.mrf.mxu2 }
 0x1e9   :  { %v1679_v28 = vadd.f32 %v1678_v53, %v1599_v6 }
 0x1ea   :  { %v1601_v51 = vpop.f32.mrf.mxu0 }
 0x1eb   :  { %v4803_v22 = vpop.eup %4802  ;;  %v1748_v23 = vmax.f32 %v5759_v54, %v1679_v28  ;;  %v5873_v54 = vpop.f32.mrf.mxu3 }
 0x1ec   :  { %v5861_v44 = vpack.c.bf16 %v4803_v22, %v4801_v8  ;;  %v5875_v32 = vpop.f32.mrf.mxu1 }
 0x1ee   :  { %3690 = vmatmul.msk.bf16.gmra.mxu3 %vm1298_vm4, %v5861_v44 }
 0x1f0   :  { %v1680_v25 = vpop.f32.mrf.mxu2 }
 0x1f1   :  { %v1681_v0 = vadd.f32 %v1680_v25, %v1601_v51  ;;  %v4271_v51 = vld [vmem:[%s6730_s5 + $0x64] sm:$0xf0] }
 0x1f2   :  { %v1604_v41 = vpop.f32.mrf.mxu0 }
 0x1f3   :  { %v1749_v10 = vmax.f32 %v5770_v4, %v1681_v0  ;;  %v4289_v4 = vld [vmem:[%s6730_s5 + $0xf4] sm:$0xf0] }
 0x1f4   :  { %v3868_v49 = vor.u32 %v4289_v4, %v3867_v60 }
 0x1f5   :  { %v5868_v57 = vmax.f32 %v1748_v23, %v1749_v10  ;;  %1643 = vmatmul.bf16.gmra.mxu0 %v5766_v46  ;;  %3740 = vmatmul.msk.bf16.gmra.mxu2 %vm1298_vm4, %v5774_v17  ;;  %v5883_v46 = vpop.f32.mrf.mxu3  ;;  %v5885_v17 = vpop.f32.mrf.mxu1  ;;  %v1449_v10 = vadd.f32 %v5859_v9, %v5863_v2  ;;  %v4303_v9 = vld [vmem:[%s6730_s5 + $0x164] sm:$0xf0] }
 0x1f6   :  { %2367 = vmatpush.bf16.msra.mxu3 %v3868_v49  ;;  %v1454_v47 = vadd.f32 %v5883_v46, %v5885_v17  ;;  %v4285_v46 = vld [vmem:[%s6730_s5 + $0xd4] sm:$0xf0] }
 0x1f8   :  { %v1683_v12 = vpop.f32.mrf.mxu2 }
 0x1f9   :  { %v1684_v59 = vadd.f32 %v1683_v12, %v1604_v41  ;;  %v1451_v12 = vadd.f32 %v5873_v54, %v5875_v32 }
 0x1fa   :  { %v1606_v30 = vpop.f32.mrf.mxu0 }
 0x1fb   :  { %v1750_v35 = vmax.f32 %v1439_v29, %v1684_v59  ;;  %v4269_v59 = vld [vmem:[%s6730_s5 + $0x54] sm:$0xf0] }
 0x1fd   :  { %v5908_v16 = vpop.f32.mrf.mxu3  ;;  %v1376_v24 = vpop.f32.mrf.mxu1 }
 0x200   :  { %v1685_v52 = vpop.f32.mrf.mxu2 }
 0x201   :  { %v1686_v20 = vadd.f32 %v1685_v52, %v1606_v30 }
 0x202   :  { %v1609_v3 = vpop.f32.mrf.mxu0 }
 0x203   :  { %v1751_v6 = vmax.f32 %v1441_v27, %v1686_v20  ;;  %v3851_v27 = vld [vmem:[%s6730_s5 + $0xd0] sm:$0xf] }
 0x204   :  { %v3852_v17 = vor.u32 %v4285_v46, %v3851_v27  ;;  %v4265_v27 = vld [vmem:[%s6730_s5 + $0x34] sm:$0xf0] }
 0x205   :  { %1648 = vmatmul.bf16.gmra.mxu0 %v5786_v40  ;;  %3741 = vmatmul.msk.bf16.gmra.mxu2 %vm1298_vm4, %v5792_v21  ;;  %v3931_v40 = vld [vmem:[%s6730_s5 + $0x170] sm:$0xf]  ;;  %v4305_v21 = vld [vmem:[%s6730_s5 + $0x174] sm:$0xf0]  ;;  %v5919_v8 = vpop.f32.mrf.mxu3  ;;  %v5921_v61 = vpop.f32.mrf.mxu1  ;;  %v5923_v42 = vmax.f32 %v1750_v35, %v1751_v6 }
 0x206   :  { %v3932_v56 = vor.u32 %v4305_v21, %v3931_v40  ;;  %v1456_v40 = vadd.f32 %v5908_v16, %v1376_v24  ;;  %v1459_v35 = vadd.f32 %v5919_v8, %v5921_v61  ;;  %v3947_v8 = vld [vmem:[%s6730_s5 + $0x190] sm:$0xf]  ;;  %v4309_v61 = vld [vmem:[%s6730_s5 + $0x194] sm:$0xf0] }
 0x208   :  { %v1688_v33 = vpop.f32.mrf.mxu2  ;;  %2401 = vmatpush.bf16.msra.mxu0 %v3932_v56 }
 0x209   :  { %v1689_v39 = vadd.f32 %v1688_v33, %v1609_v3  ;;  %v3923_v3 = vld [vmem:[%s6730_s5 + $0x160] sm:$0xf] }
 0x20a   :  { %v1611_v58 = vpop.f32.mrf.mxu0  ;;  %v3924_v2 = vor.u32 %v4303_v9, %v3923_v3 }
 0x20b   :  { %v1752_v53 = vmax.f32 %v1444_v43, %v1689_v39  ;;  %v3915_v39 = vld [vmem:[%s6730_s5 + $0x150] sm:$0xf]  ;;  %v4301_v43 = vld [vmem:[%s6730_s5 + $0x154] sm:$0xf0] }
 0x20c   :  { %2402 = vmatpush.bf16.msra.mxu0 %v3924_v2  ;;  %v3916_v6 = vor.u32 %v4301_v43, %v3915_v39  ;;  %v3843_v2 = vld [vmem:[%s6730_s5 + $0xc0] sm:$0xf]  ;;  %v4263_v43 = vld [vmem:[%s6730_s5 + $0x24] sm:$0xf0] }
 0x20d   :  { %v1460_v23 = vpop.f32.mrf.mxu3  ;;  %v1381_v25 = vpop.f32.mrf.mxu1 }
 0x210   :  { %v1690_v26 = vpop.f32.mrf.mxu2  ;;  %2403 = vmatpush.bf16.msra.mxu0 %v3916_v6 }
 0x211   :  { %v1691_v13 = vadd.f32 %v1690_v26, %v1611_v58 }
 0x212   :  { %v1614_v7 = vpop.f32.mrf.mxu0 }
 0x213   :  { %v1753_v28 = vmax.f32 %v1446_v55, %v1691_v13 }
 0x215   :  { %v5925_v48 = vmax.f32 %v1752_v53, %v1753_v28  ;;  %1653 = vmatmul.bf16.gmra.mxu0 %v5808_v14  ;;  %3742 = vmatmul.msk.bf16.gmra.mxu2 %vm1298_vm4, %v5814_v62  ;;  %v3795_v14 = vld [vmem:[%s6730_s5 + $0x60] sm:$0xf]  ;;  %v3860_v62 = vor.u32 %v4287_v1, %v3859_v5  ;;  %v5962_v32 = vpop.f32.mrf.mxu3  ;;  %v1461_v53 = vadd.f32 %v1460_v23, %v1381_v25 }
 0x216   :  { %v3796_v22 = vor.u32 %v4271_v51, %v3795_v14  ;;  %v3948_v23 = vor.u32 %v4309_v61, %v3947_v8  ;;  %v3835_v8 = vld [vmem:[%s6730_s5 + $0xb0] sm:$0xf]  ;;  %v4281_v61 = vld [vmem:[%s6730_s5 + $0xb4] sm:$0xf0] }
 0x217   :  { %v4589_v45 = vpack.i.bf16 %v5925_v48, %v5923_v42  ;;  %2368 = vmatpush.bf16.msra.mxu3 %v3860_v62 }
 0x218   :  { %v1693_v31 = vpop.f32.mrf.mxu2  ;;  %2334 = vmatpush.bf16.msra.mxu1 %v3796_v22  ;;  %2441 = vmatpush.bf16.msra.mxu2 %v3948_v23 }
 0x219   :  { %4590 = vrot.lane.b32.xlu0 %v4589_v45, %s4807_s2  ;;  %v1694_v0 = vadd.f32 %v1693_v31, %v1614_v7 }
 0x21a   :  { %v1616_v34 = vpop.f32.mrf.mxu0 }
 0x21b   :  { %v1754_v4 = vmax.f32 %v1449_v10, %v1694_v0  ;;  %2369 = vmatpush.bf16.msra.mxu3 %v3852_v17 }
 0x21d   :  { %v1465_v56 = vpop.f32.mrf.mxu3 }
 0x220   :  { %v1695_v41 = vpop.f32.mrf.mxu2 }
 0x221   :  { %v1696_v30 = vadd.f32 %v1695_v41, %v1616_v34 }
 0x222   :  { %v1619_v60 = vpop.f32.mrf.mxu0 }
 0x223   :  { %v1755_v49 = vmax.f32 %v1451_v12, %v1696_v30 }
 0x225   :  { %v5949_v52 = vmax.f32 %v1754_v4, %v1755_v49  ;;  %1658 = vmatmul.bf16.gmra.mxu0 %v5830_v18  ;;  %3743 = vmatmul.msk.bf16.gmra.mxu2 %vm1298_vm4, %v5840_v37  ;;  %v1384_v18 = vpop.f32.mrf.mxu1  ;;  %v5992_v29 = vpop.f32.mrf.mxu3 }
 0x226   :  { %v1464_v10 = vadd.f32 %v5962_v32, %v1384_v18  ;;  %v3779_v32 = vld [vmem:[%s6730_s5 + $0x40] sm:$0xf]  ;;  %v4267_v18 = vld [vmem:[%s6730_s5 + $0x44] sm:$0xf0] }
 0x227   :  { %v4594_v54 = vpack.i.bf16 %v5949_v52, %v5925_v48 }
 0x228   :  { %v1698_v38 = vpop.f32.mrf.mxu2 }
 0x229   :  { %4595 = vrot.lane.b32.xlu1 %v4594_v54, %s4808_s24  ;;  %v1699_v36 = vadd.f32 %v1698_v38, %v1619_v60  ;;  %v4283_v54 = vld [vmem:[%s6730_s5 + $0xc4] sm:$0xf0] }
 0x22a   :  { %v1621_v37 = vpop.f32.mrf.mxu0  ;;  %v3844_v38 = vor.u32 %v4283_v54, %v3843_v2  ;;  %v4279_v2 = vld [vmem:[%s6730_s5 + $0xa4] sm:$0xf0] }
 0x22b   :  { %v1756_v58 = vmax.f32 %v1454_v47, %v1699_v36  ;;  %v3780_v36 = vor.u32 %v4267_v18, %v3779_v32 }
 0x22c   :  { %2370 = vmatpush.bf16.msra.mxu3 %v3844_v38 }
 0x22d   :  { %v1386_v11 = vpop.f32.mrf.mxu1  ;;  %v1470_v1 = vpop.f32.mrf.mxu3 }
 0x22e   :  { %v1466_v12 = vadd.f32 %v1465_v56, %v1386_v11  ;;  %v3907_v56 = vld [vmem:[%s6730_s5 + $0x140] sm:$0xf] }
 0x230   :  { %v1700_v19 = vpop.f32.mrf.mxu2 }
 0x231   :  { %v1701_v21 = vadd.f32 %v1700_v19, %v1621_v37 }
 0x232   :  { %v1624_v33 = vpop.f32.mrf.mxu0 }
 0x233   :  { %v1757_v50 = vmax.f32 %v1456_v40, %v1701_v21 }
 0x235   :  { %v5968_v20 = vmax.f32 %v1756_v58, %v1757_v50  ;;  %1663 = vmatmul.bf16.gmra.mxu0 %v5855_v15  ;;  %3744 = vmatmul.msk.bf16.gmra.mxu2 %vm1298_vm4, %v5861_v44  ;;  %v3787_v44 = vld [vmem:[%s6730_s5 + $0x50] sm:$0xf]  ;;  %v1389_v55 = vpop.f32.mrf.mxu1  ;;  %v6011_v0 = vpop.f32.mrf.mxu3 }
 0x236   :  { %v3788_v26 = vor.u32 %v4269_v59, %v3787_v44  ;;  %v3771_v50 = vld [vmem:[%s6730_s5 + $0x30] sm:$0xf] }
 0x237   :  { %v4609_v16 = vpack.i.bf16 %v5968_v20, %v5949_v52  ;;  %v3772_v17 = vor.u32 %v4265_v27, %v3771_v50 }
 0x238   :  { %v1703_v24 = vpop.f32.mrf.mxu2  ;;  %2335 = vmatpush.bf16.msra.mxu1 %v3788_v26  ;;  %v3763_v26 = vld [vmem:[%s6730_s5 + $0x20] sm:$0xf] }
 0x239   :  { %4610 = vrot.lane.b32.xlu1 %v4609_v16, %s4807_s2  ;;  %4600 = vrot.lane.b32.xlu2 %v4609_v16, %s4809_s27  ;;  %v1704_v13 = vadd.f32 %v1703_v24, %v1624_v33  ;;  %v4299_v33 = vld [vmem:[%s6730_s5 + $0x144] sm:$0xf0]  ;;  %v1469_v16 = vadd.f32 %v5992_v29, %v1389_v55  ;;  %v3755_v55 = vld [vmem:[%s6730_s5 + $0x10] sm:$0xf] }
 0x23a   :  { %v1626_v15 = vpop.f32.mrf.mxu0  ;;  %v3908_v11 = vor.u32 %v4299_v33, %v3907_v56  ;;  %v3811_v33 = vld [vmem:[%s6730_s5 + $0x80] sm:$0xf] }
 0x23b   :  { %v1758_v31 = vmax.f32 %v1459_v35, %v1704_v13  ;;  %v3764_v13 = vor.u32 %v4263_v43, %v3763_v26 }
 0x23c   :  { %2336 = vmatpush.bf16.msra.mxu1 %v3780_v36  ;;  %2404 = vmatpush.bf16.msra.mxu0 %v3908_v11  ;;  %v4275_v11 = vld [vmem:[%s6730_s5 + $0x84] sm:$0xf0] }
 0x23d   :  { %v1391_v14 = vpop.f32.mrf.mxu1  ;;  %v1475_v47 = vpop.f32.mrf.mxu3 }
 0x23e   :  { %v1471_v24 = vadd.f32 %v1470_v1, %v1391_v14  ;;  %v4259_v1 = vld [vmem:[%s6730_s5 + $0x4] sm:$0xf0] }
 0x240   :  { %v1705_v7 = vpop.f32.mrf.mxu2  ;;  %2337 = vmatpush.bf16.msra.mxu1 %v3772_v17 }
 0x241   :  { %v1706_v28 = vadd.f32 %v1705_v7, %v1626_v15 }
 0x242   :  { %v1629_v45 = vpop.f32.mrf.mxu0 }
 0x243   :  { %v1759_v34 = vmax.f32 %v1461_v53, %v1706_v28  ;;  %v4261_v53 = vld [vmem:[%s6730_s5 + $0x14] sm:$0xf0] }
 0x244   :  { %2338 = vmatpush.bf16.msra.mxu1 %v3764_v13 }
 0x245   :  { %v5999_v5 = vmax.f32 %v1758_v31, %v1759_v34  ;;  %v6014_v30 = vpop.f32.mrf.mxu1  ;;  %v1478_v6 = vpop.f32.mrf.mxu3  ;;  %v3747_v34 = vld [vmem:[%s6730_s5] sm:$0xf] }
 0x246   :  { %v3748_v14 = vor.u32 %v4259_v1, %v3747_v34 }
 0x247   :  { %v4614_v62 = vpack.i.bf16 %v5999_v5, %v5968_v20 }
 0x248   :  { %v1708_v51 = vpop.f32.mrf.mxu2 }
 0x249   :  { %4615 = vrot.lane.b32.xlu2 %v4614_v62, %s4808_s24  ;;  %4605 = vrot.lane.b32.xlu0 %v4614_v62, %s4810_s19  ;;  %v1709_v25 = vadd.f32 %v1708_v51, %v1629_v45  ;;  %v3756_v45 = vor.u32 %v4261_v53, %v3755_v55 }
 0x24a   :  { %v1631_v22 = vpop.f32.mrf.mxu0 }
 0x24b   :  { %v1760_v49 = vmax.f32 %v1464_v10, %v1709_v25  ;;  %2339 = vmatpush.bf16.msra.mxu1 %v3756_v45  ;;  %v3836_v25 = vor.u32 %v4281_v61, %v3835_v8 }
 0x24d   :  { %v1396_v21 = vpop.f32.mrf.mxu1  ;;  %v1480_v62 = vpop.f32.mrf.mxu3  ;;  %2371 = vmatpush.bf16.msra.mxu3 %v3836_v25  ;;  %v3891_v25 = vld [vmem:[%s6730_s5 + $0x120] sm:$0xf] }
 0x24e   :  { %v1476_v10 = vadd.f32 %v1475_v47, %v1396_v21  ;;  %v4277_v47 = vld [vmem:[%s6730_s5 + $0x94] sm:$0xf0] }
 0x24f   :  { %2340 = vmatpush.bf16.msra.mxu1 %v3748_v14 }
 0x250   :  { %v1710_v41 = vpop.f32.mrf.mxu2 }
 0x251   :  { %v1711_v60 = vadd.f32 %v1710_v41, %v1631_v22  ;;  %v1474_v41 = vadd.f32 %v6011_v0, %v6014_v30  ;;  %v3899_v0 = vld [vmem:[%s6730_s5 + $0x130] sm:$0xf]  ;;  %v4297_v30 = vld [vmem:[%s6730_s5 + $0x134] sm:$0xf0] }
 0x252   :  { %v1634_v4 = vpop.f32.mrf.mxu0  ;;  %v3900_v38 = vor.u32 %v4297_v30, %v3899_v0  ;;  %v4293_v0 = vld [vmem:[%s6730_s5 + $0x114] sm:$0xf0] }
 0x253   :  { %v1761_v3 = vmax.f32 %v1466_v12, %v1711_v60 }
 0x254   :  { %2405 = vmatpush.bf16.msra.mxu0 %v3900_v38 }
 0x255   :  { %v6016_v9 = vmax.f32 %v1760_v49, %v1761_v3  ;;  %v1399_v7 = vpop.f32.mrf.mxu1  ;;  %v3827_v3 = vld [vmem:[%s6730_s5 + $0xa0] sm:$0xf] }
 0x256   :  { %v3828_v32 = vor.u32 %v4279_v2, %v3827_v3  ;;  %v3883_v2 = vld [vmem:[%s6730_s5 + $0x110] sm:$0xf] }
 0x257   :  { %v4629_v37 = vpack.i.bf16 %v6016_v9, %v5999_v5 }
 0x258   :  { %v1713_v19 = vpop.f32.mrf.mxu2  ;;  %2372 = vmatpush.bf16.msra.mxu3 %v3828_v32  ;;  %v3884_v32 = vor.u32 %v4293_v0, %v3883_v2 }
 0x259   :  { %4630 = vrot.lane.b32.xlu2 %v4629_v37, %s4807_s2  ;;  %4620 = vrot.lane.b32.xlu0 %v4629_v37, %s4809_s27  ;;  %v1714_v58 = vadd.f32 %v1713_v19, %v1634_v4  ;;  %v1483_v37 = vpop.f32.mrf.mxu3  ;;  %v3819_v19 = vld [vmem:[%s6730_s5 + $0x90] sm:$0xf] }
 0x25a   :  { %v1636_v40 = vpop.f32.mrf.mxu0  ;;  %v3820_v21 = vor.u32 %v4277_v47, %v3819_v19  ;;  %v4291_v19 = vld [vmem:[%s6730_s5 + $0x104] sm:$0xf0] }
 0x25b   :  { %v1762_v59 = vmax.f32 %v1469_v16, %v1714_v58  ;;  %v3812_v58 = vor.u32 %v4275_v11, %v3811_v33 }
 0x25c   :  { %2373 = vmatpush.bf16.msra.mxu3 %v3820_v21 }
 0x25d   :  { %v1401_v51 = vpop.f32.mrf.mxu1 }
 0x25e   :  { %v1481_v17 = vadd.f32 %v1480_v62, %v1401_v51 }
 0x260   :  { %v1715_v46 = vpop.f32.mrf.mxu2  ;;  %2374 = vmatpush.bf16.msra.mxu3 %v3812_v58 }
 0x261   :  { %v1716_v15 = vadd.f32 %v1715_v46, %v1636_v40  ;;  %v1479_v46 = vadd.f32 %v1478_v6, %v1399_v7 }
 0x262   :  { %v1639_v44 = vpop.f32.mrf.mxu0 }
 0x263   :  { %v1763_v39 = vmax.f32 %v1471_v24, %v1716_v15  ;;  %v1485_v24 = vpop.f32.mrf.mxu3 }
 0x265   :  { %v6053_v35 = vmax.f32 %v1762_v59, %v1763_v39  ;;  %v1404_v40 = vpop.f32.mrf.mxu1 }
 0x266   :  { %v1484_v62 = vadd.f32 %v1483_v37, %v1404_v40 }
 0x267   :  { %v4634_v29 = vpack.i.bf16 %v6053_v35, %v6016_v9 }
 0x268   :  { %v1718_v28 = vpop.f32.mrf.mxu2 }
 0x269   :  { %4635 = vrot.lane.b32.xlu0 %v4634_v29, %s4808_s24  ;;  %4625 = vrot.lane.b32.xlu1 %v4634_v29, %s4810_s19  ;;  %v1719_v22 = vadd.f32 %v1718_v28, %v1639_v44 }
 0x26a   :  { %v1641_v31 = vpop.f32.mrf.mxu0 }
 0x26b   :  { %v1764_v4 = vmax.f32 %v1474_v41, %v1719_v22  ;;  %v1488_v7 = vpop.f32.mrf.mxu3 }
 0x26d   :  { %v1406_v44 = vpop.f32.mrf.mxu1 }
 0x26e   :  { %v1486_v51 = vadd.f32 %v1485_v24, %v1406_v44 }
 0x270   :  { %v1720_v23 = vpop.f32.mrf.mxu2 }
 0x271   :  { %v1721_v12 = vadd.f32 %v1720_v23, %v1641_v31 }
 0x272   :  { %v1644_v60 = vpop.f32.mrf.mxu0 }
 0x273   :  { %v1765_v49 = vmax.f32 %v1476_v10, %v1721_v12  ;;  %v3939_v10 = vld [vmem:[%s6730_s5 + $0x180] sm:$0xf]  ;;  %v4307_v12 = vld [vmem:[%s6730_s5 + $0x184] sm:$0xf0] }
 0x275   :  { %v6085_v54 = vmax.f32 %v1764_v4, %v1765_v49  ;;  %v1409_v28 = vpop.f32.mrf.mxu1  ;;  %v3940_v4 = vor.u32 %v4307_v12, %v3939_v10 }
 0x277   :  { %v4649_v18 = vpack.i.bf16 %v6085_v54, %v6053_v35  ;;  %2442 = vmatpush.bf16.msra.mxu2 %v3940_v4 }
 0x278   :  { %v1723_v36 = vpop.f32.mrf.mxu2 }
 0x279   :  { %4650 = vrot.lane.b32.xlu0 %v4649_v18, %s4807_s2  ;;  %4640 = vrot.lane.b32.xlu1 %v4649_v18, %s4809_s27  ;;  %v1724_v50 = vadd.f32 %v1723_v36, %v1644_v60  ;;  %v1490_v60 = vpop.f32.mrf.mxu3  ;;  %v3875_v36 = vld [vmem:[%s6730_s5 + $0x100] sm:$0xf] }
 0x27a   :  { %v1646_v56 = vpop.f32.mrf.mxu0  ;;  %v3876_v21 = vor.u32 %v4291_v19, %v3875_v36 }
 0x27b   :  { %v1766_v59 = vmax.f32 %v1479_v46, %v1724_v50 }
 0x27d   :  { %v1411_v49 = vpop.f32.mrf.mxu1 }
 0x280   :  { %v1725_v27 = vpop.f32.mrf.mxu2 }
 0x281   :  { %v1726_v16 = vadd.f32 %v1725_v27, %v1646_v56 }
 0x282   :  { %v1649_v15 = vpop.f32.mrf.mxu0 }
 0x283   :  { %v1767_v39 = vmax.f32 %v1481_v17, %v1726_v16  ;;  %v1493_v17 = vpop.f32.mrf.mxu3 }
 0x285   :  { %v6109_v26 = vmax.f32 %v1766_v59, %v1767_v39  ;;  %v1414_v44 = vpop.f32.mrf.mxu1  ;;  %v1491_v59 = vadd.f32 %v1490_v60, %v1411_v49 }
 0x287   :  { %v4654_v43 = vpack.i.bf16 %v6109_v26, %v6085_v54 }
 0x288   :  { %v1728_v13 = vpop.f32.mrf.mxu2 }
 0x289   :  { %4655 = vrot.lane.b32.xlu1 %v4654_v43, %s4808_s24  ;;  %4645 = vrot.lane.b32.xlu2 %v4654_v43, %s4810_s19  ;;  %v1729_v34 = vadd.f32 %v1728_v13, %v1649_v15  ;;  %v1489_v15 = vadd.f32 %v1488_v7, %v1409_v28 }
 0x28a   :  { %v1651_v29 = vpop.f32.mrf.mxu0 }
 0x28b   :  { %v4591_v6 = vpop.permute.xlu0 %4590  ;;  %v1768_v61 = vmax.f32 %v1484_v62, %v1729_v34 }
 0x28c   :  { %v4593_v55 = vunpack.i.h.bf16 %v4591_v6  ;;  %v4592_v53 = vunpack.i.l.bf16 %v4591_v6 }
 0x28e   :  { %v1925_v45 = vsel %vm1923_vm6, %v5923_v42, %v4593_v55  ;;  %v1924_v31 = vsel %vm1923_vm6, %v5868_v57, %v4592_v53  ;;  %v4295_v57 = vld [vmem:[%s6730_s5 + $0x124] sm:$0xf0] }
 0x28f   :  { %v6119_v1 = vpack.c.bf16 %v1925_v45, %v1924_v31  ;;  %v3892_v42 = vor.u32 %v4295_v57, %v3891_v25  ;;  %v1495_v45 = vpop.f32.mrf.mxu3  ;;  %v1416_v31 = vpop.f32.mrf.mxu1  ;;  %v1494_v25 = vadd.f32 %v1493_v17, %v1414_v44 }
 0x290   :  { %v1730_v14 = vpop.f32.mrf.mxu2  ;;  %v1496_v57 = vadd.f32 %v1495_v45, %v1416_v31 }
 0x291   :  { %v1731_v22 = vadd.f32 %v1730_v14, %v1651_v29  ;;  %2341 = vmatmul.bf16.vlgmr.msra.gmra.mxu1 %v6119_v1  ;;  %2406 = vmatpush.bf16.msra.mxu0 %v3892_v42 }
 0x292   :  { %v1654_v8 = vpop.f32.mrf.mxu0 }
 0x293   :  { %v1769_v23 = vmax.f32 %v1486_v51, %v1731_v22  ;;  %v6143_v38 = vpop.permute.xlu2 %4600 }
 0x294   :  { %v4603_v56 = vunpack.i.h.bf16 %v6143_v38  ;;  %v4602_v33 = vunpack.i.l.bf16 %v6143_v38 }
 0x295   :  { %v1786_v41 = vmax.f32 %v1768_v61, %v1769_v23  ;;  %2407 = vmatpush.bf16.msra.mxu0 %v3884_v32 }
 0x297   :  { %v4669_v3 = vpack.i.bf16 %v1786_v41, %v6109_v26  ;;  %v1498_v12 = vpop.f32.mrf.mxu3  ;;  %v1419_v60 = vpop.f32.mrf.mxu1 }
 0x298   :  { %v1733_v30 = vpop.f32.mrf.mxu2 }
 0x299   :  { %4670 = vrot.lane.b32.xlu1 %v4669_v3, %s4807_s2  ;;  %4660 = vrot.lane.b32.xlu2 %v4669_v3, %s4809_s27  ;;  %v1734_v50 = vadd.f32 %v1733_v30, %v1654_v8 }
 0x29a   :  { %v1656_v18 = vpop.f32.mrf.mxu0  ;;  %2408 = vmatpush.bf16.msra.mxu0 %v3876_v21 }
 0x29b   :  { %v4596_v37 = vpop.permute.xlu1 %4595  ;;  %v1770_v13 = vmax.f32 %v1489_v15, %v1734_v50 }
 0x29c   :  { %v4598_v47 = vunpack.i.h.bf16 %v4596_v37  ;;  %v4597_v40 = vunpack.i.l.bf16 %v4596_v37 }
 0x29e   :  { %v1935_v11 = vsel %vm1298_vm4, %v4593_v55, %v4598_v47  ;;  %v1934_v58 = vsel %vm1298_vm4, %v4592_v53, %v4597_v40 }
 0x29f   :  { %v1945_v27 = vsel %vm1944_vm7, %v1934_v58, %v4602_v33  ;;  %v1946_v46 = vsel %vm1944_vm7, %v1935_v11, %v4603_v56  ;;  %v1500_v36 = vpop.f32.mrf.mxu3  ;;  %v1421_v21 = vpop.f32.mrf.mxu1 }
 0x2a0   :  { %v6157_v16 = vpack.c.bf16 %v1946_v46, %v1945_v27  ;;  %v1735_v24 = vpop.f32.mrf.mxu2  ;;  %v1501_v46 = vadd.f32 %v1500_v36, %v1421_v21  ;;  %v4268_v36 = vld [vmem:[%s6730_s5 + $0x54] sm:$0xf] }
 0x2a1   :  { %v1736_v39 = vadd.f32 %v1735_v24, %v1656_v18 }
 0x2a2   :  { %v1659_v43 = vpop.f32.mrf.mxu0  ;;  %2375 = vmatmul.bf16.vlgmr.msra.gmra.mxu3 %v6157_v16 }
 0x2a3   :  { %v1771_v29 = vmax.f32 %v1491_v59, %v1736_v39  ;;  %v4616_v62 = vpop.permute.xlu2 %4615 }
 0x2a4   :  { %v4618_v44 = vunpack.i.h.bf16 %v4616_v62  ;;  %v4617_v59 = vunpack.i.l.bf16 %v4616_v62 }
 0x2a5   :  { %v1787_v6 = vmax.f32 %v1770_v13, %v1771_v29 }
 0x2a7   :  { %v4674_v55 = vpack.i.bf16 %v1787_v6, %v1786_v41 }
 0x2a8   :  { %v1738_v53 = vpop.f32.mrf.mxu2 }
 0x2a9   :  { %4675 = vrot.lane.b32.xlu2 %v4674_v55, %s4808_s24  ;;  %4665 = vrot.lane.b32.xlu0 %v4674_v55, %s4810_s19  ;;  %v1739_v8 = vadd.f32 %v1738_v53, %v1659_v43 }
 0x2aa   :  { %v1661_v14 = vpop.f32.mrf.mxu0 }
 0x2ab   :  { %v4611_v34 = vpop.permute.xlu1 %4610  ;;  %v1772_v41 = vmax.f32 %v1494_v25, %v1739_v8  ;;  %v3805_v25 = vld [vmem:[%s6730_s5 + $0x78] sm:$0xf0] }
 0x2ac   :  { %v4613_v7 = vunpack.i.h.bf16 %v4611_v34  ;;  %v4612_v28 = vunpack.i.l.bf16 %v4611_v34 }
 0x2ae   :  { %v1926_v51 = vsel %vm1923_vm6, %v5925_v48, %v4612_v28  ;;  %v1927_v22 = vsel %vm1923_vm6, %v5949_v52, %v4613_v7  ;;  %v1936_v29 = vsel %vm1298_vm4, %v4612_v28, %v4617_v59  ;;  %v4288_v28 = vld [vmem:[%s6730_s5 + $0xf4] sm:$0xf] }
 0x2af   :  { %v6166_v61 = vpack.c.bf16 %v1927_v22, %v1926_v51  ;;  %v4272_v22 = vld [vmem:[%s6730_s5 + $0x74] sm:$0xf] }
 0x2b0   :  { %v1740_v23 = vpop.f32.mrf.mxu2 }
 0x2b1   :  { %v1741_v42 = vadd.f32 %v1740_v23, %v1661_v14  ;;  %2346 = vmatmul.bf16.gmra.mxu1 %v6166_v61 }
 0x2b2   :  { %v1664_v48 = vpop.f32.mrf.mxu0 }
 0x2b3   :  { %v1773_v10 = vmax.f32 %v1496_v57, %v1741_v42  ;;  %v6169_v49 = vpop.permute.xlu2 %4630  ;;  %v2203_v57 = vunpack.c.h.b16 %v5899_v63  ;;  %v3933_v63 = vld [vmem:[%s6730_s5 + $0x178] sm:$0xf0] }
 0x2b4   :  { %v4633_v52 = vunpack.i.h.bf16 %v6169_v49  ;;  %v4632_v2 = vunpack.i.l.bf16 %v6169_v49 }
 0x2b5   :  { %v1788_v4 = vmax.f32 %v1772_v41, %v1773_v10  ;;  %v3808_v41 = vor.u32 %v4272_v22, %v3805_v25  ;;  %v2257_v10 = vpack.c.b16 %v2203_v57, %v2203_v57  ;;  %v4262_v25 = vld [vmem:[%s6730_s5 + $0x24] sm:$0xf]  ;;  %v3765_v57 = vld [vmem:[%s6730_s5 + $0x28] sm:$0xf0] }
 0x2b6   :  { %v1928_v18 = vsel %vm1923_vm6, %v5968_v20, %v4632_v2  ;;  %v1929_v37 = vsel %vm1923_vm6, %v5999_v5, %v4633_v52  ;;  %v1499_v5 = vadd.f32 %v1498_v12, %v1419_v60 }
 0x2b7   :  { %v4679_v3 = vpack.i.bf16 %v1788_v4, %v1787_v6  ;;  %v6188_v50 = vpack.c.bf16 %v1929_v37, %v1928_v18  ;;  %v1937_v6 = vsel %vm1298_vm4, %v4613_v7, %v4618_v44  ;;  %v3869_v7 = vld [vmem:[%s6730_s5 + $0xf8] sm:$0xf0]  ;;  %2469 = vmatpush.bf16.msrb.mxu1 %v3808_v41  ;;  %v2331_v60 = vsel %vm2326_vm5, %v2257_v10, 0  ;;  %v3781_v44 = vld [vmem:[%s6730_s5 + $0x48] sm:$0xf0] }
 0x2b8   :  { %v1743_v0 = vpop.f32.mrf.mxu2  ;;  %v3872_v23 = vor.u32 %v4288_v28, %v3869_v7  ;;  %2576 = vmatpush.bf16.msrb.mxu2 %v2331_v60  ;;  %v3853_v28 = vld [vmem:[%s6730_s5 + $0xd8] sm:$0xf0]  ;;  %v4264_v7 = vld [vmem:[%s6730_s5 + $0x34] sm:$0xf]  ;;  %v3768_v41 = vor.u32 %v4262_v25, %v3765_v57  ;;  %v3941_v25 = vld [vmem:[%s6730_s5 + $0x188] sm:$0xf0] }
 0x2b9   :  { %4680 = vrot.lane.b32.xlu0 %v4679_v3, %s4809_s27  ;;  %v1744_v11 = vadd.f32 %v1743_v0, %v1664_v48  ;;  %v4270_v48 = vld [vmem:[%s6730_s5 + $0x64] sm:$0xf]  ;;  %v3797_v0 = vld [vmem:[%s6730_s5 + $0x68] sm:$0xf0]  ;;  %v4300_v10 = vld [vmem:[%s6730_s5 + $0x154] sm:$0xf] }
 0x2ba   :  { %v1666_v20 = vpop.f32.mrf.mxu0  ;;  %2503 = vmatpush.bf16.msrb.mxu3 %v3872_v23  ;;  %v3800_v18 = vor.u32 %v4270_v48, %v3797_v0  ;;  %v4260_v60 = vld [vmem:[%s6730_s5 + $0x14] sm:$0xf]  ;;  %v4282_v48 = vld [vmem:[%s6730_s5 + $0xc4] sm:$0xf] }
 0x2bb   :  { %v4606_v30 = vpop.permute.xlu0 %4605  ;;  %v4276_v57 = vld [vmem:[%s6730_s5 + $0x94] sm:$0xf] }
 0x2bc   :  { %v4608_v32 = vunpack.i.h.bf16 %v4606_v30  ;;  %v4607_v38 = vunpack.i.l.bf16 %v4606_v30  ;;  %v4286_v30 = vld [vmem:[%s6730_s5 + $0xe4] sm:$0xf]  ;;  %2470 = vmatpush.bf16.msrb.mxu1 %v3800_v18 }
 0x2be   :  { %v1957_v19 = vsel %vm1955_vm8, %v4603_v56, %v4608_v32  ;;  %v1956_v47 = vsel %vm1955_vm8, %v4602_v33, %v4607_v38  ;;  %v6184_v40 = vpack.c.bf16 %v4608_v32, %v4607_v38  ;;  %v1774_v56 = vmax.f32 %v1499_v5, %v1744_v11  ;;  %v3861_v32 = vld [vmem:[%s6730_s5 + $0xe8] sm:$0xf0] }
 0x2bf   :  { %v6186_v58 = vpack.c.bf16 %v1957_v19, %v1956_v47  ;;  %v3864_v37 = vor.u32 %v4286_v30, %v3861_v32  ;;  %v3789_v19 = vld [vmem:[%s6730_s5 + $0x58] sm:$0xf0]  ;;  %v4308_v32 = vld [vmem:[%s6730_s5 + $0x194] sm:$0xf] }
 0x2c0   :  { %v1745_v27 = vpop.f32.mrf.mxu2  ;;  %3953 = vmatmul.msk.bf16.vlgmr.msra.gmra.mxu2 %vm2310_vm9, %v6184_v40  ;;  %v3792_v47 = vor.u32 %v4268_v36, %v3789_v19 }
 0x2c1   :  { %v1746_v17 = vadd.f32 %v1745_v27, %v1666_v20  ;;  %2351 = vmatmul.bf16.gmra.mxu1 %v6188_v50  ;;  %2409 = vmatmul.bf16.vlgmr.msra.gmra.mxu0 %v6186_v58 }
 0x2c2   :  { %2504 = vmatpush.bf16.msrb.mxu3 %v3864_v37  ;;  %2471 = vmatpush.bf16.msrb.mxu1 %v3792_v47 }
 0x2c3   :  { %v1775_v33 = vmax.f32 %v1501_v46, %v1746_v17 }
 0x2c5   :  { %v1789_v24 = vmax.f32 %v1774_v56, %v1775_v33 }
 0x2c7   :  { %v4684_v15 = vpack.i.bf16 %v1789_v24, %v1788_v4  ;;  %v4304_v4 = vld [vmem:[%s6730_s5 + $0x174] sm:$0xf] }
 0x2c8   :  { %v3936_v3 = vor.u32 %v4304_v4, %v3933_v63  ;;  %v3757_v63 = vld [vmem:[%s6730_s5 + $0x18] sm:$0xf0] }
 0x2c9   :  { %4685 = vrot.lane.b32.xlu1 %v4684_v15, %s4810_s19  ;;  %v4266_v15 = vld [vmem:[%s6730_s5 + $0x44] sm:$0xf]  ;;  %v3760_v0 = vor.u32 %v4260_v60, %v3757_v63 }
 0x2ca   :  { %2537 = vmatpush.bf16.msrb.mxu0 %v3936_v3  ;;  %v3845_v3 = vld [vmem:[%s6730_s5 + $0xc8] sm:$0xf0] }
 0x2cb   :  { %v4621_v39 = vpop.permute.xlu0 %4620  ;;  %v3848_v30 = vor.u32 %v4282_v48, %v3845_v3  ;;  %v4274_v48 = vld [vmem:[%s6730_s5 + $0x84] sm:$0xf]  ;;  %v3813_v3 = vld [vmem:[%s6730_s5 + $0x88] sm:$0xf0] }
 0x2cc   :  { %v4623_v43 = vunpack.i.h.bf16 %v4621_v39  ;;  %v4622_v13 = vunpack.i.l.bf16 %v4621_v39 }
 0x2ce   :  { %v1947_v55 = vsel %vm1944_vm7, %v1936_v29, %v4622_v13  ;;  %v1948_v53 = vsel %vm1944_vm7, %v1937_v6, %v4623_v43 }
 0x2cf   :  { %v6199_v45 = vpack.c.bf16 %v1948_v53, %v1947_v55 }
 0x2d1   :  { %2380 = vmatmul.bf16.gmra.mxu3 %v6199_v45 }
 0x2db   :  { %v4626_v31 = vpop.permute.xlu1 %4625  ;;  %v4636_v12 = vpop.permute.xlu0 %4635 }
 0x2dc   :  { %v4628_v34 = vunpack.i.h.bf16 %v4626_v31  ;;  %v4627_v14 = vunpack.i.l.bf16 %v4626_v31  ;;  %v4638_v21 = vunpack.i.h.bf16 %v4636_v12  ;;  %v4637_v11 = vunpack.i.l.bf16 %v4636_v12  ;;  %v3917_v12 = vld [vmem:[%s6730_s5 + $0x158] sm:$0xf0] }
 0x2dd   :  { %v3920_v4 = vor.u32 %v4300_v10, %v3917_v12 }
 0x2de   :  { %v6202_v51 = vpack.c.bf16 %v4628_v34, %v4627_v14  ;;  %v1958_v62 = vsel %vm1955_vm8, %v4622_v13, %v4627_v14  ;;  %v1959_v8 = vsel %vm1955_vm8, %v4623_v43, %v4628_v34  ;;  %v1939_v59 = vsel %vm1298_vm4, %v4633_v52, %v4638_v21  ;;  %v4284_v34 = vld [vmem:[%s6730_s5 + $0xd4] sm:$0xf]  ;;  %v4258_v21 = vld [vmem:[%s6730_s5 + $0x4] sm:$0xf] }
 0x2df   :  { %v6221_v42 = vpack.c.bf16 %v1959_v8, %v1958_v62  ;;  %v1938_v39 = vsel %vm1298_vm4, %v4632_v2, %v4637_v11  ;;  %v3784_v13 = vor.u32 %v4266_v15, %v3781_v44  ;;  %v3856_v22 = vor.u32 %v4284_v34, %v3853_v28  ;;  %v3773_v8 = vld [vmem:[%s6730_s5 + $0x38] sm:$0xf0]  ;;  %v3749_v11 = vld [vmem:[%s6730_s5 + $0x8] sm:$0xf0]  ;;  %v4278_v28 = vld [vmem:[%s6730_s5 + $0xa4] sm:$0xf] }
 0x2e0   :  { %3954 = vmatmul.msk.bf16.gmra.mxu2 %vm2310_vm9, %v6202_v51  ;;  %v3776_v23 = vor.u32 %v4264_v7, %v3773_v8  ;;  %v3829_v7 = vld [vmem:[%s6730_s5 + $0xa8] sm:$0xf0]  ;;  %v4306_v8 = vld [vmem:[%s6730_s5 + $0x184] sm:$0xf] }
 0x2e1   :  { %2414 = vmatmul.bf16.gmra.mxu0 %v6221_v42  ;;  %2472 = vmatpush.bf16.msrb.mxu1 %v3784_v13  ;;  %v3909_v13 = vld [vmem:[%s6730_s5 + $0x148] sm:$0xf0]  ;;  %v3944_v10 = vor.u32 %v4306_v8, %v3941_v25  ;;  %v6487_v25 = vld [vmem:[%s6732_s6] sm:$0x3]  ;;  %s4811_s6 = smov 112  }
 0x2e2   :  { %2505 = vmatpush.bf16.msrb.mxu3 %v3856_v22  ;;  %v3832_v22 = vor.u32 %v4278_v28, %v3829_v7  ;;  %v4312_v28 = vld [vmem:[%s6731_s7 + $0x10] sm:$0xff]  ;;  %v4311_v7 = vld [vmem:[%s6731_s7 + $0x8] sm:$0xff] }
 0x2e3   :  { %v4646_v38 = vpop.permute.xlu2 %4645 }
 0x2e4   :  { %v4648_v20 = vunpack.i.h.bf16 %v4646_v38  ;;  %v4647_v27 = vunpack.i.l.bf16 %v4646_v38  ;;  %v3949_v38 = vld [vmem:[%s6730_s5 + $0x198] sm:$0xf0] }
 0x2e5   :  { %2473 = vmatpush.bf16.msrb.mxu1 %v3776_v23  ;;  %v3952_v37 = vor.u32 %v4308_v32, %v3949_v38 }
 0x2e6   :  { %v6265_v43 = vpack.c.bf16 %v4648_v20, %v4647_v27  ;;  %2506 = vmatpush.bf16.msrb.mxu3 %v3848_v30 }
 0x2e7   :  { %2577 = vmatpush.bf16.msrb.mxu2 %v3952_v37  ;;  %v4292_v37 = vld [vmem:[%s6730_s5 + $0x114] sm:$0xf] }
 0x2e9   :  { %2474 = vmatpush.bf16.msrb.mxu1 %v3768_v41  ;;  %v3821_v41 = vld [vmem:[%s6730_s5 + $0x98] sm:$0xf0] }
 0x2ea   :  { %v3824_v12 = vor.u32 %v4276_v57, %v3821_v41 }
 0x2eb   :  { %v6249_v5 = vpop.permute.xlu0 %4650  ;;  %v4641_v46 = vpop.permute.xlu1 %4640  ;;  %2578 = vmatpush.bf16.msrb.mxu2 %v3944_v10  ;;  %v6490_v10 = vperm.slane %v6487_v25, 0 }
 0x2ec   :  { %v4653_v17 = vunpack.i.h.bf16 %v6249_v5  ;;  %v4652_v56 = vunpack.i.l.bf16 %v6249_v5  ;;  %v4643_v33 = vunpack.i.h.bf16 %v4641_v46  ;;  %v4642_v24 = vunpack.i.l.bf16 %v4641_v46  ;;  %v4280_v5 = vld [vmem:[%s6730_s5 + $0xb4] sm:$0xf] }
 0x2ed   :  { %2475 = vmatpush.bf16.msrb.mxu1 %v3760_v0  ;;  %v3752_v46 = vor.u32 %v4258_v21, %v3749_v11  ;;  %v3816_v0 = vor.u32 %v4274_v48, %v3813_v3  ;;  %v3877_v21 = vld [vmem:[%s6730_s5 + $0x108] sm:$0xf0] }
 0x2ee   :  { %v1930_v29 = vsel %vm1923_vm6, %v6016_v9, %v4652_v56  ;;  %v1931_v6 = vsel %vm1923_vm6, %v6053_v35, %v4653_v17  ;;  %v1949_v55 = vsel %vm1944_vm7, %v1938_v39, %v4642_v24  ;;  %v1950_v52 = vsel %vm1944_vm7, %v1939_v59, %v4643_v33  ;;  %v4302_v9 = vld [vmem:[%s6730_s5 + $0x164] sm:$0xf]  ;;  %v3925_v35 = vld [vmem:[%s6730_s5 + $0x168] sm:$0xf0] }
 0x2ef   :  { %v6277_v49 = vpack.c.bf16 %v1931_v6, %v1930_v29  ;;  %v6279_v2 = vpack.c.bf16 %v1950_v52, %v1949_v55  ;;  %v1960_v53 = vsel %vm1955_vm8, %v4642_v24, %v4647_v27  ;;  %v1961_v31 = vsel %vm1955_vm8, %v4643_v33, %v4648_v20  ;;  %v4298_v39 = vld [vmem:[%s6730_s5 + $0x144] sm:$0xf] }
 0x2f0   :  { %3955 = vmatmul.msk.bf16.gmra.mxu2 %vm2310_vm9, %v6265_v43  ;;  %v6294_v14 = vpack.c.bf16 %v1961_v31, %v1960_v53  ;;  %v3928_v62 = vor.u32 %v4302_v9, %v3925_v35  ;;  %v4296_v53 = vld [vmem:[%s6730_s5 + $0x134] sm:$0xf]  ;;  %v3901_v31 = vld [vmem:[%s6730_s5 + $0x138] sm:$0xf0] }
 0x2f1   :  { %2356 = vmatmul.bf16.gmra.mxu1 %v6277_v49  ;;  %2385 = vmatmul.bf16.gmra.mxu3 %v6279_v2  ;;  %v3904_v9 = vor.u32 %v4296_v53, %v3901_v31 }
 0x2f2   :  { %2419 = vmatmul.bf16.gmra.mxu0 %v6294_v14  ;;  %2476 = vmatpush.bf16.msrb.mxu1 %v3752_v46 }
 0x2f3   :  { %2538 = vmatpush.bf16.msrb.mxu0 %v3928_v62  ;;  %v6338_v18 = vpop.permute.xlu2 %4660 }
 0x2f4   :  { %v4663_v20 = vunpack.i.h.bf16 %v6338_v18  ;;  %v4662_v27 = vunpack.i.l.bf16 %v6338_v18 }
 0x2f7   :  { %2539 = vmatpush.bf16.msrb.mxu0 %v3920_v4 }
 0x2fb   :  { %v4656_v36 = vpop.permute.xlu1 %4655 }
 0x2fc   :  { %v4658_v19 = vunpack.i.h.bf16 %v4656_v36  ;;  %v4657_v47 = vunpack.i.l.bf16 %v4656_v36  ;;  %v3885_v36 = vld [vmem:[%s6730_s5 + $0x118] sm:$0xf0] }
 0x2fe   :  { %v1941_v33 = vsel %vm1298_vm4, %v4653_v17, %v4658_v19  ;;  %v1940_v24 = vsel %vm1298_vm4, %v4652_v56, %v4657_v47  ;;  %v3912_v17 = vor.u32 %v4298_v39, %v3909_v13  ;;  %v3837_v56 = vld [vmem:[%s6730_s5 + $0xb8] sm:$0xf0]  ;;  %v3888_v19 = vor.u32 %v4292_v37, %v3885_v36  ;;  %v4290_v47 = vld [vmem:[%s6730_s5 + $0x104] sm:$0xf] }
 0x2ff   :  { %v1951_v15 = vsel %vm1944_vm7, %v1940_v24, %v4662_v27  ;;  %v1952_v44 = vsel %vm1944_vm7, %v1941_v33, %v4663_v20  ;;  %v3840_v29 = vor.u32 %v4280_v5, %v3837_v56  ;;  %v4316_v56 = vld [vmem:[%s6731_s7 + $0x30] sm:$0xff] }
 0x300   :  { %v6356_v59 = vpack.c.bf16 %v1952_v44, %v1951_v15  ;;  %2540 = vmatpush.bf16.msrb.mxu0 %v3912_v17  ;;  %v4317_v17 = vld [vmem:[%s6731_s7 + $0x38] sm:$0xff] }
 0x301   :  { %2507 = vmatpush.bf16.msrb.mxu3 %v3840_v29  ;;  %2730 = vmatpush.bf16.msra.mxu1 %v4317_v17  ;;  %v4315_v29 = vld [vmem:[%s6731_s7 + $0x28] sm:$0xff] }
 0x302   :  { %2390 = vmatmul.bf16.gmra.mxu3 %v6356_v59 }
 0x303   :  { %v4676_v11 = vpop.permute.xlu2 %4675 }
 0x304   :  { %2541 = vmatpush.bf16.msrb.mxu0 %v3904_v9  ;;  %v4677_v46 = vunpack.i.l.bf16 %v4676_v11 }
 0x305   :  { %2508 = vmatpush.bf16.msrb.mxu3 %v3832_v22  ;;  %2731 = vmatpush.bf16.msra.mxu1 %v4316_v56 }
 0x309   :  { %2509 = vmatpush.bf16.msrb.mxu3 %v3824_v12  ;;  %2732 = vmatpush.bf16.msra.mxu1 %v4315_v29 }
 0x30b   :  { %v4671_v6 = vpop.permute.xlu1 %4670 }
 0x30c   :  { %v4673_v55 = vunpack.i.h.bf16 %v4671_v6  ;;  %v4672_v52 = vunpack.i.l.bf16 %v4671_v6 }
 0x30d   :  { %2510 = vmatpush.bf16.msrb.mxu3 %v3816_v0  ;;  %v4325_v0 = vld [vmem:[%s6733_s8 + $0x28] sm:$0xff] }
 0x30e   :  { %v1932_v35 = vsel %vm1923_vm6, %v6085_v54, %v4672_v52  ;;  %v1933_v34 = vsel %vm1923_vm6, %v6109_v26, %v4673_v55  ;;  %v4294_v54 = vld [vmem:[%s6730_s5 + $0x124] sm:$0xf]  ;;  %v3893_v26 = vld [vmem:[%s6730_s5 + $0x128] sm:$0xf0]  ;;  %v2342_v22 = vpop.f32.mrf.mxu1 }
 0x30f   :  { %v6381_v62 = vpack.c.bf16 %v1933_v34, %v1932_v35  ;;  %v3896_v23 = vor.u32 %v4294_v54, %v3893_v26  ;;  %v4313_v34 = vld [vmem:[%s6731_s7 + $0x18] sm:$0xff]  ;;  %v2343_v12 = vadd.f32 %v2342_v22, %v6490_v10 }
 0x311   :  { %2361 = vmatmul.bf16.gmra.mxu1 %v6381_v62  ;;  %2542 = vmatpush.bf16.msrb.mxu0 %v3896_v23 }
 0x315   :  { %2543 = vmatpush.bf16.msrb.mxu0 %v3888_v19  ;;  %v4324_v19 = vld [vmem:[%s6733_s8 + $0x20] sm:$0xff] }
 0x316   :  { %v2344_v26 = vpop.f32.mrf.mxu1 }
 0x31b   :  { %v4666_v60 = vpop.permute.xlu0 %4665 }
 0x31c   :  { %v4668_v4 = vunpack.i.h.bf16 %v4666_v60  ;;  %v4667_v63 = vunpack.i.l.bf16 %v4666_v60 }
 0x31e   :  { %v6414_v30 = vpack.c.bf16 %v4668_v4, %v4667_v63  ;;  %v1962_v32 = vsel %vm1955_vm8, %v4662_v27, %v4667_v63  ;;  %v1963_v38 = vsel %vm1955_vm8, %v4663_v20, %v4668_v4  ;;  %v3880_v20 = vor.u32 %v4290_v47, %v3877_v21 }
 0x31f   :  { %v6418_v18 = vpack.c.bf16 %v1963_v38, %v1962_v32  ;;  %v4678_v27 = vunpack.i.h.bf16 %v4676_v11 }
 0x320   :  { %3956 = vmatmul.msk.bf16.gmra.mxu2 %vm2310_vm9, %v6414_v30  ;;  %2544 = vmatpush.bf16.msrb.mxu0 %v3880_v20 }
 0x321   :  { %2424 = vmatmul.bf16.gmra.mxu0 %v6418_v18  ;;  %2477 = vmatmul.bf16.vlgmr.msrb.gmra.mxu1 %v6119_v1  ;;  %v1942_v1 = vsel %vm1298_vm4, %v4672_v52, %v4677_v46  ;;  %v1943_v44 = vsel %vm1298_vm4, %v4673_v55, %v4678_v27  ;;  %v4319_v27 = vld [vmem:[%s6731_s7 + $0x48] sm:$0xff]  ;;  %v4323_v46 = vld [vmem:[%s6733_s8 + $0x18] sm:$0xff] }
 0x322   :  { %2770 = vmatpush.bf16.msra.mxu3 %v4319_v27 }
 0x325   :  { %v2376_v54 = vpop.f32.mrf.mxu3 }
 0x326   :  { %v2377_v63 = vadd.f32 %v2376_v54, %v2343_v12 }
 0x32b   :  { %v4681_v33 = vpop.permute.xlu0 %4680 }
 0x32c   :  { %v4683_v24 = vunpack.i.h.bf16 %v4681_v33  ;;  %v4682_v15 = vunpack.i.l.bf16 %v4681_v33  ;;  %v4329_v33 = vld [vmem:[%s6733_s8 + $0x48] sm:$0xff] }
 0x32d   :  { %v2378_v23 = vpop.f32.mrf.mxu3  ;;  %2918 = vmatpush.bf16.msra.mxu2 %v4329_v33 }
 0x32e   :  { %v1953_v39 = vsel %vm1944_vm7, %v1942_v1, %v4682_v15  ;;  %v1954_v13 = vsel %vm1944_vm7, %v1943_v44, %v4683_v24  ;;  %v2347_v57 = vpop.f32.mrf.mxu1 }
 0x32f   :  { %v6440_v5 = vpack.c.bf16 %v1954_v13, %v1953_v39  ;;  %v4322_v39 = vld [vmem:[%s6733_s8 + $0x10] sm:$0xff] }
 0x331   :  { %2395 = vmatmul.bf16.gmra.mxu3 %v6440_v5  ;;  %2482 = vmatmul.bf16.gmra.mxu1 %v6166_v61  ;;  %v4314_v61 = vld [vmem:[%s6731_s7 + $0x20] sm:$0xff] }
 0x332   :  { %2733 = vmatpush.bf16.msra.mxu1 %v4314_v61 }
 0x336   :  { %2734 = vmatpush.bf16.msra.mxu1 %v4313_v34  ;;  %v2349_v48 = vpop.f32.mrf.mxu1  ;;  %v4320_v34 = vld [vmem:[%s6733_s8] sm:$0xff] }
 0x337   :  { %v2350_v20 = vadd.f32 %v2349_v48, %v6490_v10 }
 0x33a   :  { %2735 = vmatpush.bf16.msra.mxu1 %v4312_v28 }
 0x33b   :  { %v4686_v6 = vpop.permute.xlu1 %4685 }
 0x33c   :  { %v4688_v55 = vunpack.i.h.bf16 %v4686_v6  ;;  %v4687_v52 = vunpack.i.l.bf16 %v4686_v6 }
 0x33e   :  { %v6456_v53 = vpack.c.bf16 %v4688_v55, %v4687_v52  ;;  %v1964_v31 = vsel %vm1955_vm8, %v4682_v15, %v4687_v52  ;;  %v1965_v9 = vsel %vm1955_vm8, %v4683_v24, %v4688_v55  ;;  %2736 = vmatpush.bf16.msra.mxu1 %v4311_v7  ;;  %v2352_v11 = vpop.f32.mrf.mxu1 }
 0x33f   :  { %v6460_v35 = vpack.c.bf16 %v1965_v9, %v1964_v31  ;;  %v2353_v28 = vadd.f32 %v2352_v11, %v6490_v10 }
 0x340   :  { %3957 = vmatmul.msk.bf16.gmra.mxu2 %vm2310_vm9, %v6456_v53 }
 0x341   :  { %2429 = vmatmul.bf16.gmra.mxu0 %v6460_v35  ;;  %2487 = vmatmul.bf16.gmra.mxu1 %v6188_v50  ;;  %v4310_v50 = vld [vmem:[%s6731_s7] sm:$0xff] }
 0x342   :  { %2511 = vmatmul.bf16.vlgmr.msrb.gmra.mxu3 %v6157_v16  ;;  %2737 = vmatpush.bf16.msra.mxu1 %v4310_v50  ;;  %v2410_v16 = vpop.f32.mrf.mxu0 }
 0x343   :  { %v2444_v8 = vpop.f32.mrf.mxu2 }
 0x346   :  { %v2354_v6 = vpop.f32.mrf.mxu1 }
 0x347   :  { %v2355_v31 = vadd.f32 %v2354_v6, %v6490_v10 }
 0x34a   :  { %v2412_v41 = vpop.f32.mrf.mxu0 }
 0x350   :  { %3958 = vmatmul.msk.bf16.vlgmr.msrb.gmra.mxu2 %vm2310_vm9, %v6184_v40  ;;  %v2446_v40 = vpop.f32.mrf.mxu2 }
 0x351   :  { %2492 = vmatmul.bf16.gmra.mxu1 %v6277_v49  ;;  %2545 = vmatmul.bf16.vlgmr.msrb.gmra.mxu0 %v6186_v58  ;;  %v2345_v58 = vadd.f32 %v2344_v26, %v6490_v10 }
 0x352   :  { %2516 = vmatmul.bf16.gmra.mxu3 %v6199_v45  ;;  %v4327_v45 = vld [vmem:[%s6733_s8 + $0x38] sm:$0xff] }
 0x353   :  { %v2379_v60 = vadd.f32 %v2378_v23, %v2345_v58  ;;  %2878 = vmatpush.bf16.msra.mxu0 %v4327_v45 }
 0x354   :  { %v2381_v49 = vpop.f32.mrf.mxu3 }
 0x35c   :  { %v2383_v37 = vpop.f32.mrf.mxu3 }
 0x35e   :  { %v2415_v4 = vpop.f32.mrf.mxu0 }
 0x360   :  { %3959 = vmatmul.msk.bf16.gmra.mxu2 %vm2310_vm9, %v6202_v51  ;;  %v2413_v51 = vadd.f32 %v2412_v41, %v2379_v60 }
 0x361   :  { %2497 = vmatmul.bf16.gmra.mxu1 %v6381_v62  ;;  %2550 = vmatmul.bf16.gmra.mxu0 %v6221_v42  ;;  %v4326_v62 = vld [vmem:[%s6733_s8 + $0x30] sm:$0xff]  ;;  %v2411_v42 = vadd.f32 %v2410_v16, %v2377_v63 }
 0x362   :  { %2521 = vmatmul.bf16.gmra.mxu3 %v6279_v2  ;;  %v2447_v3 = vadd.f32 %v2446_v40, %v2413_v51  ;;  %2879 = vmatpush.bf16.msra.mxu0 %v4326_v62 }
 0x363   :  { %v2449_v2 = vpop.f32.mrf.mxu2  ;;  %v2445_v32 = vadd.f32 %v2444_v8, %v2411_v42 }
 0x364   :  { %v2607_v38 = vmax.f32 %v2447_v3, 0.0 }
 0x365   :  { %v2605_v36 = vmax.f32 %v2445_v32, 0.0 }
 0x366   :  { %2880 = vmatpush.bf16.msra.mxu0 %v4325_v0  ;;  %v2417_v47 = vpop.f32.mrf.mxu0 }
 0x367   :  { %v6511_v21 = vpack.c.bf16 %v2607_v38, %v2605_v36 }
 0x36a   :  { %2881 = vmatpush.bf16.msra.mxu0 %v4324_v19 }
 0x36b   :  { %v2451_v24 = vpop.f32.mrf.mxu2 }
 0x36e   :  { %2882 = vmatpush.bf16.msra.mxu0 %v4323_v46 }
 0x36f   :  { %v2420_v56 = vpop.f32.mrf.mxu0 }
 0x370   :  { %3960 = vmatmul.msk.bf16.gmra.mxu2 %vm2310_vm9, %v6265_v43  ;;  %v2348_v43 = vadd.f32 %v2347_v57, %v6490_v10 }
 0x371   :  { %2555 = vmatmul.bf16.gmra.mxu0 %v6294_v14  ;;  %2738 = vmatmul.bf16.vlgmr.msra.gmra.mxu1 %v6511_v21  ;;  %v2384_v14 = vadd.f32 %v2383_v37, %v2350_v20 }
 0x372   :  { %2526 = vmatmul.bf16.gmra.mxu3 %v6356_v59  ;;  %v2382_v1 = vadd.f32 %v2381_v49, %v2348_v43  ;;  %2883 = vmatpush.bf16.msra.mxu0 %v4322_v39  ;;  %v4321_v59 = vld [vmem:[%s6733_s8 + $0x8] sm:$0xff] }
 0x373   :  { %v2418_v44 = vadd.f32 %v2417_v47, %v2384_v14  ;;  %v2454_v52 = vpop.f32.mrf.mxu2 }
 0x374   :  { %v2386_v15 = vpop.f32.mrf.mxu3  ;;  %v2416_v13 = vadd.f32 %v2415_v4, %v2382_v1 }
 0x375   :  { %v2452_v17 = vadd.f32 %v2451_v24, %v2418_v44  ;;  %v2387_v50 = vadd.f32 %v2386_v15, %v2353_v28 }
 0x376   :  { %v2450_v29 = vadd.f32 %v2449_v2, %v2416_v13  ;;  %2884 = vmatpush.bf16.msra.mxu0 %v4321_v59 }
 0x377   :  { %v2611_v55 = vmax.f32 %v2452_v17, 0.0  ;;  %v2422_v54 = vpop.f32.mrf.mxu0  ;;  %v2421_v26 = vadd.f32 %v2420_v56, %v2387_v50 }
 0x378   :  { %v2609_v9 = vmax.f32 %v2450_v29, 0.0 }
 0x379   :  { %v2455_v57 = vadd.f32 %v2454_v52, %v2421_v26 }
 0x37a   :  { %v2627_v22 = vpack.c.bf16 %v2611_v55, %v2609_v9  ;;  %2885 = vmatpush.bf16.msra.mxu0 %v4320_v34 }
 0x37b   :  { %v2456_v8 = vpop.f32.mrf.mxu2  ;;  %v2613_v40 = vmax.f32 %v2455_v57, 0.0 }
 0x37c   :  { %v2388_v61 = vpop.f32.mrf.mxu3 }
 0x37d   :  { %v2389_v7 = vadd.f32 %v2388_v61, %v2355_v31  ;;  %v6559_v61 = vperm.slane %v6487_v25, 1 }
 0x37f   :  { %v2423_v16 = vadd.f32 %v2422_v54, %v2389_v7 }
 0x380   :  { %3961 = vmatmul.msk.bf16.gmra.mxu2 %vm2310_vm9, %v6414_v30  ;;  %v2357_v30 = vpop.f32.mrf.mxu1 }
 0x381   :  { %2560 = vmatmul.bf16.gmra.mxu0 %v6418_v18  ;;  %2743 = vmatmul.bf16.gmra.mxu1 %v2627_v22  ;;  %v2457_v23 = vadd.f32 %v2456_v8, %v2423_v16  ;;  %v4318_v18 = vld [vmem:[%s6731_s7 + $0x40] sm:$0xff] }
 0x382   :  { %2531 = vmatmul.bf16.gmra.mxu3 %v6440_v5  ;;  %v4328_v5 = vld [vmem:[%s6733_s8 + $0x40] sm:$0xff] }
 0x383   :  { %v2615_v41 = vmax.f32 %v2457_v23, 0.0  ;;  %2771 = vmatpush.bf16.msra.mxu3 %v4318_v18  ;;  %2919 = vmatpush.bf16.msra.mxu2 %v4328_v5 }
 0x385   :  { %v2629_v58 = vpack.c.bf16 %v2615_v41, %v2613_v40  ;;  %v2391_v45 = vpop.f32.mrf.mxu3 }
 0x388   :  { %v2359_v49 = vpop.f32.mrf.mxu1 }
 0x389   :  { %v2360_v63 = vadd.f32 %v2359_v49, %v6490_v10 }
 0x38d   :  { %v2393_v60 = vpop.f32.mrf.mxu3 }
 0x38e   :  { %v2394_v48 = vadd.f32 %v2393_v60, %v2360_v63 }
 0x390   :  { %3962 = vmatmul.msk.bf16.gmra.mxu2 %vm2310_vm9, %v6456_v53  ;;  %v2362_v4 = vpop.f32.mrf.mxu1 }
 0x391   :  { %2565 = vmatmul.bf16.gmra.mxu0 %v6460_v35  ;;  %2748 = vmatmul.bf16.gmra.mxu1 %v2629_v58  ;;  %v2358_v35 = vadd.f32 %v2357_v30, %v6490_v10  ;;  %v2363_v33 = vadd.f32 %v2362_v4, %v6490_v10 }
 0x393   :  { %v2392_v51 = vadd.f32 %v2391_v45, %v2358_v35 }
 0x398   :  { %v2364_v36 = vpop.f32.mrf.mxu1 }
 0x399   :  { %v2365_v43 = vadd.f32 %v2364_v36, %v6490_v10 }
 0x39e   :  { %v2425_v12 = vpop.f32.mrf.mxu0 }
 0x39f   :  { %v2426_v42 = vadd.f32 %v2425_v12, %v2392_v51 }
 0x3a1   :  { %2886 = vmatmul.bf16.vlgmr.msra.gmra.mxu0 %v6511_v21  ;;  %v2478_v21 = vpop.f32.mrf.mxu1 }
 0x3a2   :  { %v2479_v9 = vadd.f32 %v2478_v21, %v6559_v61 }
 0x3a3   :  { %v2459_v53 = vpop.f32.mrf.mxu2 }
 0x3a4   :  { %v2460_v3 = vadd.f32 %v2459_v53, %v2426_v42 }
 0x3a6   :  { %v2427_v62 = vpop.f32.mrf.mxu0  ;;  %v2617_v38 = vmax.f32 %v2460_v3, 0.0 }
 0x3a7   :  { %v2428_v0 = vadd.f32 %v2427_v62, %v2394_v48 }
 0x3a9   :  { %v2480_v27 = vpop.f32.mrf.mxu1 }
 0x3aa   :  { %v2481_v28 = vadd.f32 %v2480_v27, %v6559_v61 }
 0x3ab   :  { %v2461_v2 = vpop.f32.mrf.mxu2 }
 0x3ac   :  { %v2462_v32 = vadd.f32 %v2461_v2, %v2428_v0 }
 0x3ae   :  { %v2619_v37 = vmax.f32 %v2462_v32, 0.0 }
 0x3b0   :  { %v2631_v19 = vpack.c.bf16 %v2619_v37, %v2617_v38 }
 0x3b1   :  { %2891 = vmatmul.bf16.gmra.mxu0 %v2627_v22  ;;  %v2483_v56 = vpop.f32.mrf.mxu1 }
 0x3b2   :  { %2753 = vmatmul.bf16.gmra.mxu1 %v2631_v19  ;;  %v2484_v45 = vadd.f32 %v2483_v56, %v6559_v61 }
 0x3b4   :  { %v2396_v47 = vpop.f32.mrf.mxu3 }
 0x3b5   :  { %v2397_v14 = vadd.f32 %v2396_v47, %v2363_v33 }
 0x3b9   :  { %v2485_v50 = vpop.f32.mrf.mxu1 }
 0x3ba   :  { %v2486_v12 = vadd.f32 %v2485_v50, %v6559_v61 }
 0x3bc   :  { %v2398_v11 = vpop.f32.mrf.mxu3 }
 0x3bd   :  { %v2399_v1 = vadd.f32 %v2398_v11, %v2365_v43 }
 0x3be   :  { %v2430_v20 = vpop.f32.mrf.mxu0 }
 0x3bf   :  { %v2431_v44 = vadd.f32 %v2430_v20, %v2397_v14 }
 0x3c1   :  { %2896 = vmatmul.bf16.gmra.mxu0 %v2629_v58  ;;  %v2488_v18 = vpop.f32.mrf.mxu1 }
 0x3c2   :  { %v2489_v36 = vadd.f32 %v2488_v18, %v6559_v61 }
 0x3c3   :  { %v2464_v46 = vpop.f32.mrf.mxu2 }
 0x3c4   :  { %v2465_v39 = vadd.f32 %v2464_v46, %v2431_v44 }
 0x3c5   :  { %v2512_v24 = vpop.f32.mrf.mxu3 }
 0x3c6   :  { %v2432_v15 = vpop.f32.mrf.mxu0  ;;  %v2621_v6 = vmax.f32 %v2465_v39, 0.0  ;;  %v2513_v7 = vadd.f32 %v2512_v24, %v2479_v9 }
 0x3c7   :  { %v2433_v13 = vadd.f32 %v2432_v15, %v2399_v1 }
 0x3c9   :  { %v2490_v62 = vpop.f32.mrf.mxu1 }
 0x3ca   :  { %v2491_v47 = vadd.f32 %v2490_v62, %v6559_v61 }
 0x3cb   :  { %v2466_v17 = vpop.f32.mrf.mxu2 }
 0x3cc   :  { %v2467_v59 = vadd.f32 %v2466_v17, %v2433_v13 }
 0x3cd   :  { %v2514_v29 = vpop.f32.mrf.mxu3 }
 0x3ce   :  { %v2623_v55 = vmax.f32 %v2467_v59, 0.0  ;;  %v2546_v52 = vpop.f32.mrf.mxu0  ;;  %v2515_v54 = vadd.f32 %v2514_v29, %v2481_v28 }
 0x3cf   :  { %v2547_v16 = vadd.f32 %v2546_v52, %v2513_v7 }
 0x3d0   :  { %v2633_v31 = vpack.c.bf16 %v2623_v55, %v2621_v6 }
 0x3d1   :  { %2901 = vmatmul.bf16.gmra.mxu0 %v2631_v19  ;;  %v2493_v19 = vpop.f32.mrf.mxu1 }
 0x3d2   :  { %2758 = vmatmul.bf16.gmra.mxu1 %v2633_v31  ;;  %v2494_v56 = vadd.f32 %v2493_v19, %v6559_v61 }
 0x3d3   :  { %v2580_v10 = vpop.f32.mrf.mxu2 }
 0x3d4   :  { %v2581_v26 = vadd.f32 %v2580_v10, %v2547_v16 }
 0x3d5   :  { %v2517_v34 = vpop.f32.mrf.mxu3 }
 0x3d6   :  { %v2548_v22 = vpop.f32.mrf.mxu0  ;;  %v2606_v41 = vmax.f32 %v2581_v26, 0.0  ;;  %v2518_v53 = vadd.f32 %v2517_v34, %v2484_v45 }
 0x3d7   :  { %v2549_v8 = vadd.f32 %v2548_v22, %v2515_v54 }
 0x3d9   :  { %v2495_v39 = vpop.f32.mrf.mxu1 }
 0x3da   :  { %v2496_v29 = vadd.f32 %v2495_v39, %v6559_v61 }
 0x3db   :  { %v2582_v23 = vpop.f32.mrf.mxu2 }
 0x3dc   :  { %v2583_v57 = vadd.f32 %v2582_v23, %v2549_v8 }
 0x3dd   :  { %v2519_v25 = vpop.f32.mrf.mxu3 }
 0x3de   :  { %v2608_v40 = vmax.f32 %v2583_v57, 0.0  ;;  %v2551_v58 = vpop.f32.mrf.mxu0  ;;  %v2520_v60 = vadd.f32 %v2519_v25, %v2486_v12 }
 0x3df   :  { %v2552_v4 = vadd.f32 %v2551_v58, %v2518_v53 }
 0x3e0   :  { %v2626_v30 = vpack.c.bf16 %v2608_v40, %v2606_v41 }
 0x3e1   :  { %2906 = vmatmul.bf16.gmra.mxu0 %v2633_v31  ;;  %v2498_v10 = vpop.f32.mrf.mxu1 }
 0x3e2   :  { %4003 = vmatmul.msk.bf16.vlgmr.msra.gmra.mxu3 %vm531_vm0, %v2626_v30  ;;  %4048 = vmatmul.msk.bf16.vlgmr.msra.gmra.mxu2 %vm531_vm0, %v2626_v30  ;;  %v2499_v57 = vadd.f32 %v2498_v10, %v6559_v61 }
 0x3e3   :  { %v2585_v5 = vpop.f32.mrf.mxu2 }
 0x3e4   :  { %v2586_v63 = vadd.f32 %v2585_v5, %v2552_v4 }
 0x3e5   :  { %v2522_v49 = vpop.f32.mrf.mxu3 }
 0x3e6   :  { %v2553_v35 = vpop.f32.mrf.mxu0  ;;  %v2610_v0 = vmax.f32 %v2586_v63, 0.0  ;;  %v2523_v21 = vadd.f32 %v2522_v49, %v2489_v36 }
 0x3e7   :  { %v2554_v51 = vadd.f32 %v2553_v35, %v2520_v60 }
 0x3e9   :  { %v2500_v8 = vpop.f32.mrf.mxu1 }
 0x3ea   :  { %v2501_v41 = vadd.f32 %v2500_v8, %v6559_v61  ;;  %v4345_v8 = vld [vmem:[%s6734_s9 + $0x78] sm:$0xff] }
 0x3eb   :  { %v2587_v48 = vpop.f32.mrf.mxu2  ;;  %3207 = vmatpush.bf16.msrb.mxu3 %v4345_v8 }
 0x3ec   :  { %v2588_v42 = vadd.f32 %v2587_v48, %v2554_v51 }
 0x3ed   :  { %v2524_v3 = vpop.f32.mrf.mxu3 }
 0x3ee   :  { %v2612_v2 = vmax.f32 %v2588_v42, 0.0  ;;  %v2556_v32 = vpop.f32.mrf.mxu0  ;;  %v2525_v27 = vadd.f32 %v2524_v3, %v2491_v47 }
 0x3ef   :  { %v2557_v46 = vadd.f32 %v2556_v32, %v2523_v21 }
 0x3f0   :  { %v2628_v38 = vpack.c.bf16 %v2612_v2, %v2610_v0 }
 0x3f1   :  { %v2739_v63 = vpop.f32.mrf.mxu1 }
 0x3f2   :  { %4004 = vmatmul.msk.bf16.gmra.mxu3 %vm531_vm0, %v2628_v38  ;;  %4049 = vmatmul.msk.bf16.gmra.mxu2 %vm531_vm0, %v2628_v38 }
 0x3f3   :  { %v2590_v37 = vpop.f32.mrf.mxu2 }
 0x3f4   :  { %v2591_v33 = vadd.f32 %v2590_v37, %v2557_v46 }
 0x3f5   :  { %v2527_v20 = vpop.f32.mrf.mxu3 }
 0x3f6   :  { %v2558_v11 = vpop.f32.mrf.mxu0  ;;  %v2614_v15 = vmax.f32 %v2591_v33, 0.0  ;;  %v2528_v6 = vadd.f32 %v2527_v20, %v2494_v56 }
 0x3f7   :  { %v2559_v24 = vadd.f32 %v2558_v11, %v2525_v27 }
 0x3f9   :  { %v2741_v62 = vpop.f32.mrf.mxu1 }
 0x3fb   :  { %v2592_v43 = vpop.f32.mrf.mxu2 }
 0x3fc   :  { %v2593_v14 = vadd.f32 %v2592_v43, %v2559_v24 }
 0x3fd   :  { %v2529_v17 = vpop.f32.mrf.mxu3 }
 0x3fe   :  { %v2616_v1 = vmax.f32 %v2593_v14, 0.0  ;;  %v2561_v44 = vpop.f32.mrf.mxu0  ;;  %v2530_v52 = vadd.f32 %v2529_v17, %v2496_v29 }
 0x3ff   :  { %v2562_v31 = vadd.f32 %v2561_v44, %v2528_v6 }
 0x400   :  { %v2630_v13 = vpack.c.bf16 %v2616_v1, %v2614_v15 }
 0x401   :  { %v2744_v32 = vpop.f32.mrf.mxu1 }
 0x402   :  { %4005 = vmatmul.msk.bf16.gmra.mxu3 %vm531_vm0, %v2630_v13  ;;  %4050 = vmatmul.msk.bf16.gmra.mxu2 %vm531_vm0, %v2630_v13 }
 0x403   :  { %v2595_v59 = vpop.f32.mrf.mxu2 }
 0x404   :  { %v2596_v9 = vadd.f32 %v2595_v59, %v2562_v31 }
 0x405   :  { %v2532_v28 = vpop.f32.mrf.mxu3 }
 0x406   :  { %v2563_v55 = vpop.f32.mrf.mxu0  ;;  %v2618_v50 = vmax.f32 %v2596_v9, 0.0  ;;  %v2533_v40 = vadd.f32 %v2532_v28, %v2499_v57 }
 0x407   :  { %v2564_v34 = vadd.f32 %v2563_v55, %v2530_v52 }
 0x409   :  { %v2746_v20 = vpop.f32.mrf.mxu1 }
 0x40b   :  { %v2597_v7 = vpop.f32.mrf.mxu2 }
 0x40c   :  { %v2598_v22 = vadd.f32 %v2597_v7, %v2564_v34 }
 0x40d   :  { %v2534_v25 = vpop.f32.mrf.mxu3 }
 0x40e   :  { %v2620_v54 = vmax.f32 %v2598_v22, 0.0  ;;  %v2566_v16 = vpop.f32.mrf.mxu0  ;;  %v2535_v30 = vadd.f32 %v2534_v25, %v2501_v41  ;;  %v4353_v25 = vld [vmem:[%s6734_s9 + $0xb8] sm:$0xff]  ;;  %v4336_v41 = vld [vmem:[%s6734_s9 + $0x30] sm:$0xff] }
 0x40f   :  { %v2567_v18 = vadd.f32 %v2566_v16, %v2533_v40  ;;  %v4344_v40 = vld [vmem:[%s6734_s9 + $0x70] sm:$0xff]  ;;  %3220 = vmatpush.bf16.msrb.mxu0 %v4353_v25  ;;  %v4359_v25 = vld [vmem:[%s6736_s11 + $0x20] sm:$0xff] }
 0x410   :  { %v2632_v26 = vpack.c.bf16 %v2620_v54, %v2618_v50  ;;  %3208 = vmatpush.bf16.msrb.mxu3 %v4344_v40  ;;  %v4357_v40 = vld [vmem:[%s6736_s11 + $0x10] sm:$0xff] }
 0x411   :  { %v2749_v1 = vpop.f32.mrf.mxu1 }
 0x412   :  { %4006 = vmatmul.msk.bf16.gmra.mxu3 %vm531_vm0, %v2632_v26  ;;  %4051 = vmatmul.msk.bf16.gmra.mxu2 %vm531_vm0, %v2632_v26  ;;  %v4337_v26 = vld [vmem:[%s6734_s9 + $0x38] sm:$0xff] }
 0x413   :  { %v2600_v23 = vpop.f32.mrf.mxu2  ;;  %3194 = vmatpush.bf16.msrb.mxu1 %v4337_v26 }
 0x414   :  { %v2601_v5 = vadd.f32 %v2600_v23, %v2567_v18 }
 0x416   :  { %v2568_v58 = vpop.f32.mrf.mxu0  ;;  %v2622_v53 = vmax.f32 %v2601_v5, 0.0  ;;  %v4335_v5 = vld [vmem:[%s6734_s9 + $0x28] sm:$0xff] }
 0x417   :  { %v2569_v45 = vadd.f32 %v2568_v58, %v2535_v30  ;;  %v4352_v58 = vld [vmem:[%s6734_s9 + $0xb0] sm:$0xff]  ;;  %3195 = vmatpush.bf16.msrb.mxu1 %v4336_v41  ;;  %v4358_v41 = vld [vmem:[%s6736_s11 + $0x18] sm:$0xff] }
 0x418   :  { %3221 = vmatpush.bf16.msrb.mxu0 %v4352_v58 }
 0x419   :  { %v2751_v55 = vpop.f32.mrf.mxu1 }
 0x41b   :  { %v2602_v49 = vpop.f32.mrf.mxu2  ;;  %3196 = vmatpush.bf16.msrb.mxu1 %v4335_v5  ;;  %v4355_v5 = vld [vmem:[%s6736_s11] sm:$0xff] }
 0x41c   :  { %v2603_v12 = vadd.f32 %v2602_v49, %v2569_v45  ;;  %v4343_v45 = vld [vmem:[%s6734_s9 + $0x68] sm:$0xff] }
 0x41d   :  { %3209 = vmatpush.bf16.msrb.mxu3 %v4343_v45  ;;  %v4370_v45 = vld [vmem:[%s6738_s13 + $0x38] sm:$0xff] }
 0x41e   :  { %v2624_v35 = vmax.f32 %v2603_v12, 0.0  ;;  %v2887_v4 = vpop.f32.mrf.mxu0 }
 0x420   :  { %v2634_v60 = vpack.c.bf16 %v2624_v35, %v2622_v53 }
 0x422   :  { %4007 = vmatmul.msk.bf16.gmra.mxu3 %vm531_vm0, %v2634_v60  ;;  %4052 = vmatmul.msk.bf16.gmra.mxu2 %vm531_vm0, %v2634_v60 }
 0x426   :  { %v2889_v51 = vpop.f32.mrf.mxu0 }
 0x42e   :  { %v2892_v42 = vpop.f32.mrf.mxu0 }
 0x42f   :  { %v2754_v22 = vpop.f32.mrf.mxu1 }
 0x436   :  { %v2894_v47 = vpop.f32.mrf.mxu0 }
 0x437   :  { %v2756_v18 = vpop.f32.mrf.mxu1 }
 0x43e   :  { %v2897_v33 = vpop.f32.mrf.mxu0 }
 0x446   :  { %v2899_v56 = vpop.f32.mrf.mxu0 }
 0x44e   :  { %v2902_v34 = vpop.f32.mrf.mxu0 }
 0x456   :  { %v2904_v30 = vpop.f32.mrf.mxu0 }
 0x465   :  { %v2773_v61 = vpop.f32.mrf.mxu3  ;;  %v2921_v48 = vpop.f32.mrf.mxu2 }
 0x466   :  { %v2774_v3 = vadd.f32 %v2773_v61, %v2739_v63  ;;  %v2922_v0 = vadd.f32 %v2921_v48, %v2887_v4  ;;  %v4334_v63 = vld [vmem:[%s6734_s9 + $0x20] sm:$0xff]  ;;  %v2759_v61 = vpop.f32.mrf.mxu1  ;;  %v2907_v48 = vpop.f32.mrf.mxu0 }
 0x467   :  { %3197 = vmatpush.bf16.msrb.mxu1 %v4334_v63 }
 0x468   :  { %v2946_v2 = vmax.f32 %v2774_v3, %v2922_v0  ;;  %v4333_v3 = vld [vmem:[%s6734_s9 + $0x18] sm:$0xff] }
 0x46b   :  { %3198 = vmatpush.bf16.msrb.mxu1 %v4333_v3 }
 0x46d   :  { %v2775_v38 = vpop.f32.mrf.mxu3  ;;  %v2923_v37 = vpop.f32.mrf.mxu2 }
 0x46e   :  { %v2776_v36 = vadd.f32 %v2775_v38, %v2741_v62  ;;  %v2924_v19 = vadd.f32 %v2923_v37, %v2889_v51  ;;  %v4331_v38 = vld [vmem:[%s6734_s9 + $0x8] sm:$0xff]  ;;  %v2761_v37 = vpop.f32.mrf.mxu1 }
 0x470   :  { %v2947_v21 = vmax.f32 %v2776_v36, %v2924_v19  ;;  %v2909_v36 = vpop.f32.mrf.mxu0 }
 0x472   :  { %v6581_v11 = vmax.f32 %v2946_v2, %v2947_v21 }
 0x475   :  { %v2778_v27 = vpop.f32.mrf.mxu3  ;;  %v2926_v46 = vpop.f32.mrf.mxu2 }
 0x476   :  { %v2779_v24 = vadd.f32 %v2778_v27, %v2744_v32  ;;  %v2927_v43 = vadd.f32 %v2926_v46, %v2892_v42  ;;  %v4332_v32 = vld [vmem:[%s6734_s9 + $0x10] sm:$0xff] }
 0x477   :  { %3199 = vmatpush.bf16.msrb.mxu1 %v4332_v32 }
 0x478   :  { %v2948_v13 = vmax.f32 %v2779_v24, %v2927_v43 }
 0x47b   :  { %3200 = vmatpush.bf16.msrb.mxu1 %v4331_v38 }
 0x47d   :  { %v2780_v14 = vpop.f32.mrf.mxu3  ;;  %v2928_v15 = vpop.f32.mrf.mxu2 }
 0x47e   :  { %v2781_v44 = vadd.f32 %v2780_v14, %v2746_v20  ;;  %v2929_v39 = vadd.f32 %v2928_v15, %v2894_v47  ;;  %v4330_v14 = vld [vmem:[%s6734_s9] sm:$0xff]  ;;  %v4351_v15 = vld [vmem:[%s6734_s9 + $0xa8] sm:$0xff] }
 0x47f   :  { %3201 = vmatpush.bf16.msrb.mxu1 %v4330_v14  ;;  %3222 = vmatpush.bf16.msrb.mxu0 %v4351_v15 }
 0x480   :  { %v2949_v17 = vmax.f32 %v2781_v44, %v2929_v39  ;;  %v4350_v44 = vld [vmem:[%s6734_s9 + $0xa0] sm:$0xff]  ;;  %v4341_v39 = vld [vmem:[%s6734_s9 + $0x58] sm:$0xff] }
 0x482   :  { %v2957_v59 = vmax.f32 %v2948_v13, %v2949_v17  ;;  %v4349_v13 = vld [vmem:[%s6734_s9 + $0x98] sm:$0xff]  ;;  %v4340_v17 = vld [vmem:[%s6734_s9 + $0x50] sm:$0xff] }
 0x483   :  { %3223 = vmatpush.bf16.msrb.mxu0 %v4350_v44 }
 0x484   :  { %2962 = vrot.lane.b32.xlu2 %v2957_v59, %s4810_s19  ;;  %v4348_v59 = vld [vmem:[%s6734_s9 + $0x90] sm:$0xff] }
 0x485   :  { %v2783_v29 = vpop.f32.mrf.mxu3  ;;  %v2931_v6 = vpop.f32.mrf.mxu2 }
 0x486   :  { %v2784_v52 = vadd.f32 %v2783_v29, %v2749_v1  ;;  %v2932_v31 = vadd.f32 %v2931_v6, %v2897_v33  ;;  %v4342_v1 = vld [vmem:[%s6734_s9 + $0x60] sm:$0xff] }
 0x487   :  { %3210 = vmatpush.bf16.msrb.mxu3 %v4342_v1  ;;  %3224 = vmatpush.bf16.msrb.mxu0 %v4349_v13 }
 0x488   :  { %v2950_v50 = vmax.f32 %v2784_v52, %v2932_v31  ;;  %v4347_v52 = vld [vmem:[%s6734_s9 + $0x88] sm:$0xff]  ;;  %v4354_v31 = vld [vmem:[%s6734_s9 + $0xc0] sm:$0xff] }
 0x489   :  { %3240 = vmatpush.bf16.msra.mxu1 %v4354_v31 }
 0x48b   :  { %3211 = vmatpush.bf16.msrb.mxu3 %v4341_v39  ;;  %3225 = vmatpush.bf16.msrb.mxu0 %v4348_v59 }
 0x48d   :  { %v2785_v10 = vpop.f32.mrf.mxu3  ;;  %v2933_v9 = vpop.f32.mrf.mxu2 }
 0x48e   :  { %v2786_v28 = vadd.f32 %v2785_v10, %v2751_v55  ;;  %v2934_v7 = vadd.f32 %v2933_v9, %v2899_v56  ;;  %v4339_v56 = vld [vmem:[%s6734_s9 + $0x48] sm:$0xff]  ;;  %v4338_v10 = vld [vmem:[%s6734_s9 + $0x40] sm:$0xff]  ;;  %v4362_v9 = vld [vmem:[%s6736_s11 + $0x38] sm:$0xff] }
 0x48f   :  { %3212 = vmatpush.bf16.msrb.mxu3 %v4340_v17  ;;  %3226 = vmatpush.bf16.msrb.mxu0 %v4347_v52 }
 0x490   :  { %v2951_v54 = vmax.f32 %v2786_v28, %v2934_v7  ;;  %3316 = vmatpush.bf16.msrb.mxu2 %v4362_v9 }
 0x492   :  { %v2958_v16 = vmax.f32 %v2950_v50, %v2951_v54 }
 0x493   :  { %3213 = vmatpush.bf16.msrb.mxu3 %v4339_v56 }
 0x494   :  { %2966 = vrot.lane.b32.xlu0 %v2958_v16, %s4804_s17 }
 0x495   :  { %v2788_v23 = vpop.f32.mrf.mxu3  ;;  %v2936_v57 = vpop.f32.mrf.mxu2 }
 0x496   :  { %v2789_v49 = vadd.f32 %v2788_v23, %v2754_v22  ;;  %v2937_v12 = vadd.f32 %v2936_v57, %v2902_v34  ;;  %v4361_v23 = vld [vmem:[%s6736_s11 + $0x30] sm:$0xff]  ;;  %v4360_v57 = vld [vmem:[%s6736_s11 + $0x28] sm:$0xff] }
 0x497   :  { %3214 = vmatpush.bf16.msrb.mxu3 %v4338_v10  ;;  %3317 = vmatpush.bf16.msrb.mxu2 %v4361_v23 }
 0x498   :  { %v2952_v51 = vmax.f32 %v2789_v49, %v2937_v12  ;;  %v4369_v49 = vld [vmem:[%s6738_s13 + $0x30] sm:$0xff] }
 0x49b   :  { %3318 = vmatpush.bf16.msrb.mxu2 %v4360_v57  ;;  %3399 = vmatpush.bf16.msra.mxu3 %v4370_v45 }
 0x49d   :  { %v2790_v53 = vpop.f32.mrf.mxu3  ;;  %v2938_v35 = vpop.f32.mrf.mxu2 }
 0x49e   :  { %v2791_v60 = vadd.f32 %v2790_v53, %v2756_v18  ;;  %v2939_v4 = vadd.f32 %v2938_v35, %v2904_v30  ;;  %v4356_v18 = vld [vmem:[%s6736_s11 + $0x8] sm:$0xff]  ;;  %v4367_v35 = vld [vmem:[%s6738_s13 + $0x20] sm:$0xff] }
 0x49f   :  { %3319 = vmatpush.bf16.msrb.mxu2 %v4359_v25  ;;  %3400 = vmatpush.bf16.msra.mxu3 %v4369_v49  ;;  %v4368_v53 = vld [vmem:[%s6738_s13 + $0x28] sm:$0xff] }
 0x4a0   :  { %v2953_v62 = vmax.f32 %v2791_v60, %v2939_v4  ;;  %v4366_v4 = vld [vmem:[%s6738_s13 + $0x18] sm:$0xff] }
 0x4a2   :  { %v2959_v42 = vmax.f32 %v2952_v51, %v2953_v62  ;;  %v4689_v51 = vld [vmem:[%s6735_s10] ss:$0 sm:$0xff]  ;;  %v4365_v62 = vld [vmem:[%s6738_s13 + $0x10] sm:$0xff] }
 0x4a3   :  { %3320 = vmatpush.bf16.msrb.mxu2 %v4358_v41  ;;  %3401 = vmatpush.bf16.msra.mxu3 %v4368_v53 }
 0x4a4   :  { %2970 = vrot.lane.b32.xlu1 %v2959_v42, %s4811_s6 }
 0x4a5   :  { %v2793_v0 = vpop.f32.mrf.mxu3  ;;  %v2941_v2 = vpop.f32.mrf.mxu2 }
 0x4a6   :  { %v2794_v19 = vadd.f32 %v2793_v0, %v2759_v61  ;;  %v2942_v47 = vadd.f32 %v2941_v2, %v2907_v48 }
 0x4a7   :  { %3321 = vmatpush.bf16.msrb.mxu2 %v4357_v40  ;;  %3402 = vmatpush.bf16.msra.mxu3 %v4367_v35 }
 0x4a8   :  { %v2954_v33 = vmax.f32 %v2794_v19, %v2942_v47  ;;  %v4363_v19 = vld [vmem:[%s6738_s13] sm:$0xff] }
 0x4a9   :  { %v4690_v47 = vld [vmem:[%s6737_s12] ss:$0 sm:$0xff] }
 0x4ab   :  { %3322 = vmatpush.bf16.msrb.mxu2 %v4356_v18  ;;  %3403 = vmatpush.bf16.msra.mxu3 %v4366_v4 }
 0x4ad   :  { %v2795_v21 = vpop.f32.mrf.mxu3  ;;  %v2943_v20 = vpop.f32.mrf.mxu2 }
 0x4ae   :  { %v2796_v27 = vadd.f32 %v2795_v21, %v2761_v37  ;;  %v2944_v46 = vadd.f32 %v2943_v20, %v2909_v36  ;;  %v4364_v36 = vld [vmem:[%s6738_s13 + $0x8] sm:$0xff] }
 0x4af   :  { %3323 = vmatpush.bf16.msrb.mxu2 %v4355_v5  ;;  %3404 = vmatpush.bf16.msra.mxu3 %v4365_v62 }
 0x4b0   :  { %v2955_v24 = vmax.f32 %v2796_v27, %v2944_v46 }
 0x4b2   :  { %v2960_v43 = vmax.f32 %v2954_v33, %v2955_v24  ;;  %v4691_v24 = vld [vmem:[%s6739_s14] ss:$0 sm:$0xff] }
 0x4b3   :  { %3405 = vmatpush.bf16.msra.mxu3 %v4364_v36 }
 0x4b4   :  { %2974 = vrot.lane.b32.xlu2 %v2960_v43, %s4806_s25 }
 0x4b7   :  { %3406 = vmatpush.bf16.msra.mxu3 %v4363_v19 }
 0x4de   :  { %v2963_v29 = vpop.permute.xlu2 %2962 }
 0x4df   :  { %v2977_v6 = vsel %vm1955_vm8, %v6581_v11, %v2963_v29  ;;  %v4346_v11 = vld [vmem:[%s6734_s9 + $0x80] sm:$0xff] }
 0x4e0   :  { %v2982_v55 = vpack.c.bf16 %v2977_v6, %v2977_v6  ;;  %3227 = vmatpush.bf16.msrb.mxu0 %v4346_v11 }
 0x4e2   :  { %3202 = vmatmul.bf16.vlgmr.msrb.gmra.mxu1 %v2982_v55 }
 0x506   :  { %v2967_v7 = vpop.permute.xlu0 %2966 }
 0x507   :  { %v2978_v22 = vsel %vm531_vm0, %v2963_v29, %v2967_v7 }
 0x50e   :  { %v2975_v34 = vpop.permute.xlu2 %2974 }
 0x50f   :  { %v2985_v28 = vpack.c.bf16 %v2975_v34, %v2975_v34 }
 0x511   :  { %4153 = vmatmul.msk.bf16.vlgmr.msra.gmra.mxu1 %vm3190_vm10, %v2985_v28 }
 0x516   :  { %v2971_v50 = vpop.permute.xlu1 %2970 }
 0x517   :  { %v2980_v54 = vsel %vm2979_vm11, %v2978_v22, %v2971_v50  ;;  %v2981_v16 = vsel %vm560_vm2, %v2971_v50, %v2975_v34 }
 0x518   :  { %v2983_v26 = vpack.c.bf16 %v2980_v54, %v2980_v54  ;;  %v2984_v8 = vpack.c.bf16 %v2981_v16, %v2981_v16 }
 0x51a   :  { %3215 = vmatmul.bf16.vlgmr.msrb.gmra.mxu3 %v2983_v26  ;;  %3228 = vmatmul.bf16.vlgmr.msrb.gmra.mxu0 %v2984_v8 }
 0x55f   :  { %v3203_v58 = vpop.f32.mrf.mxu1 }
 0x560   :  { %v3204_v61 = vadd.f32 %v4689_v51, %v3203_v58 }
 0x567   :  { %v3205_v30 = vpop.f32.mrf.mxu1 }
 0x58e   :  { %v3242_v12 = vpop.f32.mrf.mxu1 }
 0x596   :  { %v3244_v60 = vpop.f32.mrf.mxu1 }
 0x597   :  { %v3229_v63 = vpop.f32.mrf.mxu0 }
 0x59d   :  { %v3216_v48 = vpop.f32.mrf.mxu3 }
 0x59e   :  { %v3217_v42 = vadd.f32 %v3216_v48, %v3204_v61 }
 0x59f   :  { %v3231_v3 = vpop.f32.mrf.mxu0 }
 0x5a0   :  { %v3230_v0 = vadd.f32 %v3229_v63, %v3217_v42 }
 0x5a2   :  { %v3243_v2 = vadd.f32 %v3242_v12, %v3230_v0 }
 0x5a4   :  { %v3246_v32 = vmax.f32 %v3243_v2, 0.0 }
 0x5a5   :  { %v3218_v38 = vpop.f32.mrf.mxu3 }
 0x5a6   :  { %v3247_v37 = vpack.c.bf16 %v3246_v32, %v3246_v32 }
 0x5a8   :  { %3324 = vmatmul.bf16.vlgmr.msrb.gmra.mxu2 %v3247_v37 }
 0x62b   :  { %v3325_v21 = vpop.f32.mrf.mxu2 }
 0x62c   :  { %v3326_v20 = vadd.f32 %v4690_v47, %v3325_v21 }
 0x62e   :  { %v3329_v27 = vmax.f32 %v3326_v20, 0.0 }
 0x630   :  { %v3330_v46 = vpack.c.bf16 %v3329_v27, %v3329_v27 }
 0x632   :  { %3407 = vmatmul.bf16.vlgmr.msra.gmra.mxu3 %v3330_v46 }
 0x633   :  { %v3327_v33 = vpop.f32.mrf.mxu2 }
 0x6b5   :  { %v3408_v43 = vpop.f32.mrf.mxu3 }
 0x6b6   :  { %v3409_v14 = vadd.f32 %v4691_v24, %v3408_v43 }
 0x6b8   :  { %3412 = vst [vmem:[%s6740_s15] sm:$0xff] %v3409_v14 }
 0x6bd   :  { %v3410_v15 = vpop.f32.mrf.mxu3 }

</bundles_post_ra>
